<compile_context>
chip_gen: v7x
topology: tpu7x:2x2x1
jax: 0.10.0
libtpu: 0.0.40
codegen_flags: <defaults>
</compile_context>

<pallas_src>
import numpy as np
import jax
import jax.numpy as jnp
from jax.experimental import pallas as pl
from jax.experimental.pallas import tpu as pltpu

DIM = 12          # tri-plane feature channels
WIDTH = 128       # MLP hidden width
FEAPE = 2         # feature positional-encoding freqs
VIEWPE = 2        # view-dir positional-encoding freqs
N_PLANES = 3
MAX_TM = 512      # rows per grid tile (lanes)
OUT_ROWS = 8      # 4 real output channels (sigma, rgb) padded to 8 sublanes


def _round8(n):
    return ((n + 7) // 8) * 8


# sublane offsets of each PE group inside the fused layer-1 input (8-aligned)
_X_STRIDE = _round8(DIM)                                                   # 16
_V_STRIDE = _round8(3)                                                     # 8
_X_OFFS = tuple(g * _X_STRIDE for g in range(1 + 2 * FEAPE))               # 0,16,32,48,64
_V_BASE = (1 + 2 * FEAPE) * _X_STRIDE                                      # 80
_V_OFFS = tuple(_V_BASE + g * _V_STRIDE for g in range(1 + 2 * VIEWPE))    # 80,88,96,104,112
K_PAD = max(128, _round8(_V_OFFS[-1] + 3))                                 # 128
IN_DIM = DIM + 2 * FEAPE * DIM + 3 + 2 * VIEWPE * 3                        # 75


# ---------------------------------------------------------------------------
# elementwise helpers
# ---------------------------------------------------------------------------
def _softplus(x):
    # numerically stable log(1 + exp(x))
    return jnp.maximum(x, 0.0) + jnp.log(1.0 + jnp.exp(-jnp.abs(x)))


def _sigmoid(x):
    return 1.0 / (1.0 + jnp.exp(-x))


def _pe_groups_fm(p, n_freqs):
    """[p, sin(p*2^0)..sin(p*2^(F-1)), cos(p*2^0)..cos(p*2^(F-1))].

    Only one sin+cos is evaluated; higher frequencies come from double-angle
    identities (sin2a = 2*s*c, cos2a = 1-2*s^2) on the VPU.
    """
    s, c = jnp.sin(p), jnp.cos(p)
    sins, coss = [s], [c]
    for _ in range(1, n_freqs):
        s, c = 2.0 * s * c, 1.0 - 2.0 * s * s   # both RHS use the previous s, c
        sins.append(s)
        coss.append(c)
    return [p] + sins + coss


# ---------------------------------------------------------------------------
# Pallas kernel (feature-major): plane-mean -> PE -> fused FC(128) -> softplus
#                 -> FC(128) -> softplus -> FC(8-padded) -> sigma / sigmoid(rgb)
# ---------------------------------------------------------------------------
def triplane_mlp_kernel(feat_ref, view_ref, w1_ref, b1_ref, w2_ref, b2_ref,
                        w3_ref, b3_ref, out_ref, inp_ref):
    # feat_ref: (P, C, TM)   view_ref: (3, TM)   -- rows (samples) on lanes
    x = jnp.mean(feat_ref[...], axis=0)                      # (C, TM) f32
    v = view_ref[...]                                        # (3, TM) f32

    # fused layer-1 input: [x | PE(x) | v | PE(v)] written at 8-aligned rows,
    # gap rows zeroed (matching zero columns in the packed W1).
    inp_ref[...] = jnp.zeros(inp_ref.shape, jnp.float32)
    for off, g in zip(_X_OFFS, _pe_groups_fm(x, FEAPE)):
        inp_ref[off:off + DIM, :] = g
    for off, g in zip(_V_OFFS, _pe_groups_fm(v, VIEWPE)):
        inp_ref[off:off + 3, :] = g
    inp = inp_ref[...].astype(jnp.bfloat16)

    # MLP: bf16 MXU operands, f32 accumulation, f32 bias/activations.
    h = jnp.dot(w1_ref[...], inp, preferred_element_type=jnp.float32) + b1_ref[...]
    h = _softplus(h)
    h = jnp.dot(w2_ref[...], h.astype(jnp.bfloat16),
                preferred_element_type=jnp.float32) + b2_ref[...]
    h = _softplus(h)
    o = jnp.dot(w3_ref[...], h.astype(jnp.bfloat16),
                preferred_element_type=jnp.float32) + b3_ref[...]     # (8, TM)

    # row 0 = sigma (raw), rows 1..3 = rgb (sigmoid-rescaled), rows 4..7 = pad.
    row = jax.lax.broadcasted_iota(jnp.int32, o.shape, 0)
    rgb = _sigmoid(o) * (1.0 + 2.0 * 0.001) - 0.001
    out_ref[...] = jnp.where((row >= 1) & (row < 4), rgb, o)


# ---------------------------------------------------------------------------
# parameter init (deterministic, matches the PyTorch module's shapes)
# ---------------------------------------------------------------------------
def init_params(key):
    k1, k2, k3 = jax.random.split(key, 3)
    return dict(
        w1=jax.random.normal(k1, (WIDTH, IN_DIM), jnp.float32),  # (out, in) PT layout
        b1=jnp.zeros((WIDTH,), jnp.float32),
        w2=jax.random.normal(k2, (WIDTH, WIDTH), jnp.float32),
        b2=jnp.zeros((WIDTH,), jnp.float32),
        w3=jax.random.normal(k3, (4, WIDTH), jnp.float32),
        b3=jnp.zeros((4,), jnp.float32),
    )


def _layer1_column_layout():
    """(dst_row_offset, pytorch_column_indices) per PE group, kernel order.

    PyTorch feature order: [x(12), x_pe(sin 24, cos 24), v(3), v_pe(sin 6, cos 6)]
    with PE flattening channel-major / freq-minor (col = c*F + f).
    """
    x_srcs = [np.arange(DIM)]
    x_srcs += [DIM + np.arange(DIM) * FEAPE + f for f in range(FEAPE)]            # sin
    x_srcs += [DIM + FEAPE * DIM + np.arange(DIM) * FEAPE + f for f in range(FEAPE)]  # cos
    vb = DIM + 2 * FEAPE * DIM
    v_srcs = [vb + np.arange(3)]
    v_srcs += [vb + 3 + np.arange(3) * VIEWPE + f for f in range(VIEWPE)]          # sin
    v_srcs += [vb + 3 + VIEWPE * 3 + np.arange(3) * VIEWPE + f for f in range(VIEWPE)]  # cos
    return list(zip(_X_OFFS, x_srcs)) + list(zip(_V_OFFS, v_srcs))


def _pack_layer1(w1):
    """Re-pack PyTorch W1 (WIDTH, 75) into the fused (WIDTH, K_PAD) layout."""
    gain = 1.0 / np.sqrt(w1.shape[1])          # weight_gain = 1/sqrt(in_features)
    w1 = w1 * gain
    w1p = jnp.zeros((WIDTH, K_PAD), jnp.float32)
    for off, src in _layer1_column_layout():
        w1p = w1p.at[:, off:off + len(src)].set(w1[:, src])
    return w1p.astype(jnp.bfloat16)


def _pick_tile(nm):
    for tm in (MAX_TM, 256, 128):
        if nm % tm == 0:
            return tm
    return MAX_TM      # fall back to zero-padding up to a MAX_TM multiple


# ---------------------------------------------------------------------------
# wrapper: layout + parameter plumbing + pallas_call
# ---------------------------------------------------------------------------
@jax.jit
def triplane_decoder_pe(sampled_features, viewdir, params):
    N, P, M, C = sampled_features.shape
    assert P == N_PLANES and C == DIM
    NM = N * M

    # feature-major inputs: sample rows on lanes, channels on sublanes.
    # TODO(synk): store tri-plane features upstream as (P, C, N*M) to remove
    # this wrapper-side relayout (an extra HBM round trip of the feature grid).
    feat = jnp.transpose(sampled_features, (1, 3, 0, 2)).reshape(P, C, NM)
    view = jnp.transpose(viewdir.reshape(NM, 3), (1, 0))               # (3, NM)

    tm = _pick_tile(NM)
    nm_pad = ((NM + tm - 1) // tm) * tm
    if nm_pad != NM:
        feat = jnp.pad(feat, ((0, 0), (0, 0), (0, nm_pad - NM)))
        view = jnp.pad(view, ((0, 0), (0, nm_pad - NM)))

    # weight packing: gains folded in, matmul operands as bf16
    w1p = _pack_layer1(params['w1'])
    g_h = 1.0 / np.sqrt(WIDTH)
    w2p = (params['w2'] * g_h).astype(jnp.bfloat16)                    # (WIDTH, WIDTH)
    w3p = jnp.zeros((OUT_ROWS, WIDTH), jnp.float32).at[0:4].set(params['w3'] * g_h)
    w3p = w3p.astype(jnp.bfloat16)
    b1 = params['b1'].reshape(WIDTH, 1)
    b2 = params['b2'].reshape(WIDTH, 1)
    b3 = jnp.zeros((OUT_ROWS, 1), jnp.float32).at[0:4, 0].set(params['b3'])

    grid = (nm_pad // tm,)
    in_specs = [
        pl.BlockSpec((P, C, tm), lambda i: (0, 0, i)),      # tri-plane features
        pl.BlockSpec((3, tm), lambda i: (0, i)),            # view dirs
        pl.BlockSpec((WIDTH, K_PAD), lambda i: (0, 0)),     # fused W1 (bf16)
        pl.BlockSpec((WIDTH, 1), lambda i: (0, 0)),         # b1
        pl.BlockSpec((WIDTH, WIDTH), lambda i: (0, 0)),     # W2 (bf16)
        pl.BlockSpec((WIDTH, 1), lambda i: (0, 0)),         # b2
        pl.BlockSpec((OUT_ROWS, WIDTH), lambda i: (0, 0)),  # W3 (padded, bf16)
        pl.BlockSpec((OUT_ROWS, 1), lambda i: (0, 0)),      # b3 (padded)
    ]
    out_spec = pl.BlockSpec((OUT_ROWS, tm), lambda i: (0, i))

    out_fm = pl.pallas_call(
        triplane_mlp_kernel,
        grid=grid,
        in_specs=in_specs,
        out_specs=out_spec,
        out_shape=jax.ShapeDtypeStruct((OUT_ROWS, nm_pad), jnp.float32),
        scratch_shapes=[pltpu.VMEM((K_PAD, tm), jnp.float32)],
        compiler_params=pltpu.CompilerParams(dimension_semantics=("parallel",)),
    )(feat, view, w1p, b1, w2p, b2, w3p, b3)

    out = jnp.transpose(out_fm[:4, :NM], (1, 0))             # (NM, 4)
    return {'rgb': out[:, 1:4].reshape(N, M, 3),
            'sigma': out[:, 0:1].reshape(N, M, 1)}


# ---------------------------------------------------------------------------
# pure-JAX reference mirroring the PyTorch module exactly (for validation)
# ---------------------------------------------------------------------------
def reference_forward(sampled_features, viewdir, params):
    x = jnp.mean(sampled_features, axis=1)                   # (N, M, C)
    N, M, C = x.shape
    x = x.reshape(N * M, C)
    vd = viewdir.reshape(N * M, 3)

    def pe(p, freqs):
        fb = 2.0 ** jnp.arange(freqs, dtype=jnp.float32)
        pts = (p[..., None] * fb).reshape(p.shape[:-1] + (freqs * p.shape[-1],))
        return jnp.concatenate([jnp.sin(pts), jnp.cos(pts)], axis=-1)

    feat = jnp.concatenate([x, pe(x, FEAPE), vd, pe(vd, VIEWPE)], axis=-1)

    def fc(h, w, b):
        gain = 1.0 / np.sqrt(w.shape[1])
        return jnp.dot(h, (w * gain).T, precision=jax.lax.Precision.HIGHEST) + b

    h = _softplus(fc(feat, params['w1'], params['b1']))
    h = _softplus(fc(h, params['w2'], params['b2']))
    o = fc(h, params['w3'], params['b3'])
    rgb = _sigmoid(o[:, 1:]) * (1.0 + 2.0 * 0.001) - 0.001
    sigma = o[:, 0:1]
    return {'rgb': rgb.reshape(N, M, 3), 'sigma': sigma.reshape(N, M, 1)}


if __name__ == "__main__":
    key = jax.random.PRNGKey(0)
    kf, kv, kp = jax.random.split(key, 3)

    N, M = 2, 1024          # NM = 2048 -> TM = 512, grid = (4,)
    sampled_features = jax.random.normal(kf, (N, N_PLANES, M, DIM), jnp.float32)
    viewdir = jax.random.normal(kv, (N, M, 3), jnp.float32)
    viewdir = viewdir / jnp.linalg.norm(viewdir, axis=-1, keepdims=True)
    params = init_params(kp)

    out = triplane_decoder_pe(sampled_features, viewdir, params)
    jax.block_until_ready(out)

    ref = reference_forward(sampled_features, viewdir, params)
    # tolerance chosen for bf16 MXU operands with f32 accumulation
    np.testing.assert_allclose(np.asarray(out['rgb']), np.asarray(ref['rgb']),
                               rtol=2e-2, atol=2e-2)
    np.testing.assert_allclose(np.asarray(out['sigma']), np.asarray(ref['sigma']),
                               rtol=2e-2, atol=2e-2)
    print("KERNEL_OK")
</pallas_src>

<mosaic_0001>
module attributes {stable_mosaic.version = 11 : i64} {
  func.func @triplane_mlp_kernel(%arg0: i32, %arg1: memref<3x12x512xf32, #tpu.memory_space<vmem>>, %arg2: memref<3x512xf32, #tpu.memory_space<vmem>>, %arg3: memref<128x128xbf16, #tpu.memory_space<vmem>>, %arg4: memref<128x1xf32, #tpu.memory_space<vmem>>, %arg5: memref<128x128xbf16, #tpu.memory_space<vmem>>, %arg6: memref<128x1xf32, #tpu.memory_space<vmem>>, %arg7: memref<8x128xbf16, #tpu.memory_space<vmem>>, %arg8: memref<8x1xf32, #tpu.memory_space<vmem>>, %arg9: memref<8x512xf32, #tpu.memory_space<vmem>>, %arg10: memref<128x512xf32, #tpu.memory_space<vmem>>) attributes {dimension_semantics = [#tpu.dimension_semantics<parallel>], iteration_bounds = array<i64: 4>, scalar_prefetch = 0 : i64, scratch_operands = 1 : i64, tpu.core_type = #tpu.core_type<tc>, window_params = [{transform_indices = @transform_0, window_bounds = array<i64: 3, 12, 512>}, {transform_indices = @transform_1, window_bounds = array<i64: 3, 512>}, {pipeline_mode = #tpu.pipeline_mode<synchronous>, transform_indices = @transform_2, window_bounds = array<i64: 128, 128>}, {pipeline_mode = #tpu.pipeline_mode<synchronous>, transform_indices = @transform_3, window_bounds = array<i64: 128, 1>}, {pipeline_mode = #tpu.pipeline_mode<synchronous>, transform_indices = @transform_4, window_bounds = array<i64: 128, 128>}, {pipeline_mode = #tpu.pipeline_mode<synchronous>, transform_indices = @transform_5, window_bounds = array<i64: 128, 1>}, {pipeline_mode = #tpu.pipeline_mode<synchronous>, transform_indices = @transform_6, window_bounds = array<i64: 8, 128>}, {pipeline_mode = #tpu.pipeline_mode<synchronous>, transform_indices = @transform_7, window_bounds = array<i64: 8, 1>}, {transform_indices = @transform_8, window_bounds = array<i64: 8, 512>}]} {
    %c0 = arith.constant 0 : index
    %c0_0 = arith.constant 0 : index
    %c0_1 = arith.constant 0 : index
    %0 = vector.load %arg1[%c0, %c0_0, %c0_1] : memref<3x12x512xf32, #tpu.memory_space<vmem>>, vector<3x12x512xf32>
    %cst = arith.constant dense<0.000000e+00> : vector<12x512xf32>
    %1 = vector.multi_reduction <add>, %0, %cst [0] : vector<3x12x512xf32> to vector<12x512xf32>
    %cst_2 = arith.constant 3.000000e+00 : f32
    %2 = vector.broadcast %cst_2 : f32 to vector<12x512xf32>
    %3 = arith.divf %1, %2 : vector<12x512xf32>
    %c0_3 = arith.constant 0 : index
    %c0_4 = arith.constant 0 : index
    %4 = vector.load %arg2[%c0_3, %c0_4] : memref<3x512xf32, #tpu.memory_space<vmem>>, vector<3x512xf32>
    %cst_5 = arith.constant 0.000000e+00 : f32
    %5 = vector.broadcast %cst_5 : f32 to vector<128x512xf32>
    %c0_6 = arith.constant 0 : index
    %c0_7 = arith.constant 0 : index
    %6 = vector.load %arg10[%c0_6, %c0_7] : memref<128x512xf32, #tpu.memory_space<vmem>>, vector<128x512xf32>
    tpu.vector_store %arg10[%c0_6, %c0_7], %5 {strides = array<i32>} : memref<128x512xf32, #tpu.memory_space<vmem>>, vector<128x512xf32>,
    %7 = math.sin %3 : vector<12x512xf32>
    %8 = math.cos %3 : vector<12x512xf32>
    %cst_8 = arith.constant 2.000000e+00 : f32
    %9 = vector.broadcast %cst_8 : f32 to vector<12x512xf32>
    %10 = arith.mulf %9, %7 : vector<12x512xf32>
    %11 = arith.mulf %10, %8 : vector<12x512xf32>
    %cst_9 = arith.constant 2.000000e+00 : f32
    %12 = vector.broadcast %cst_9 : f32 to vector<12x512xf32>
    %13 = arith.mulf %12, %7 : vector<12x512xf32>
    %14 = arith.mulf %13, %7 : vector<12x512xf32>
    %cst_10 = arith.constant 1.000000e+00 : f32
    %15 = vector.broadcast %cst_10 : f32 to vector<12x512xf32>
    %16 = arith.subf %15, %14 : vector<12x512xf32>
    %c0_11 = arith.constant 0 : index
    %c0_12 = arith.constant 0 : index
    %17 = vector.load %arg10[%c0_11, %c0_12] : memref<128x512xf32, #tpu.memory_space<vmem>>, vector<12x512xf32>
    tpu.vector_store %arg10[%c0_11, %c0_12], %3 {strides = array<i32>} : memref<128x512xf32, #tpu.memory_space<vmem>>, vector<12x512xf32>,
    %c16 = arith.constant 16 : index
    %c0_13 = arith.constant 0 : index
    %18 = vector.load %arg10[%c16, %c0_13] : memref<128x512xf32, #tpu.memory_space<vmem>>, vector<12x512xf32>
    tpu.vector_store %arg10[%c16, %c0_13], %7 {strides = array<i32>} : memref<128x512xf32, #tpu.memory_space<vmem>>, vector<12x512xf32>,
    %c32 = arith.constant 32 : index
    %c0_14 = arith.constant 0 : index
    %19 = vector.load %arg10[%c32, %c0_14] : memref<128x512xf32, #tpu.memory_space<vmem>>, vector<12x512xf32>
    tpu.vector_store %arg10[%c32, %c0_14], %11 {strides = array<i32>} : memref<128x512xf32, #tpu.memory_space<vmem>>, vector<12x512xf32>,
    %c48 = arith.constant 48 : index
    %c0_15 = arith.constant 0 : index
    %20 = vector.load %arg10[%c48, %c0_15] : memref<128x512xf32, #tpu.memory_space<vmem>>, vector<12x512xf32>
    tpu.vector_store %arg10[%c48, %c0_15], %8 {strides = array<i32>} : memref<128x512xf32, #tpu.memory_space<vmem>>, vector<12x512xf32>,
    %c64 = arith.constant 64 : index
    %c0_16 = arith.constant 0 : index
    %21 = vector.load %arg10[%c64, %c0_16] : memref<128x512xf32, #tpu.memory_space<vmem>>, vector<12x512xf32>
    tpu.vector_store %arg10[%c64, %c0_16], %16 {strides = array<i32>} : memref<128x512xf32, #tpu.memory_space<vmem>>, vector<12x512xf32>,
    %22 = math.sin %4 : vector<3x512xf32>
    %23 = math.cos %4 : vector<3x512xf32>
    %cst_17 = arith.constant 2.000000e+00 : f32
    %24 = vector.broadcast %cst_17 : f32 to vector<3x512xf32>
    %25 = arith.mulf %24, %22 : vector<3x512xf32>
    %26 = arith.mulf %25, %23 : vector<3x512xf32>
    %cst_18 = arith.constant 2.000000e+00 : f32
    %27 = vector.broadcast %cst_18 : f32 to vector<3x512xf32>
    %28 = arith.mulf %27, %22 : vector<3x512xf32>
    %29 = arith.mulf %28, %22 : vector<3x512xf32>
    %cst_19 = arith.constant 1.000000e+00 : f32
    %30 = vector.broadcast %cst_19 : f32 to vector<3x512xf32>
    %31 = arith.subf %30, %29 : vector<3x512xf32>
    %c80 = arith.constant 80 : index
    %c0_20 = arith.constant 0 : index
    %32 = vector.load %arg10[%c80, %c0_20] : memref<128x512xf32, #tpu.memory_space<vmem>>, vector<3x512xf32>
    tpu.vector_store %arg10[%c80, %c0_20], %4 {strides = array<i32>} : memref<128x512xf32, #tpu.memory_space<vmem>>, vector<3x512xf32>,
    %c88 = arith.constant 88 : index
    %c0_21 = arith.constant 0 : index
    %33 = vector.load %arg10[%c88, %c0_21] : memref<128x512xf32, #tpu.memory_space<vmem>>, vector<3x512xf32>
    tpu.vector_store %arg10[%c88, %c0_21], %22 {strides = array<i32>} : memref<128x512xf32, #tpu.memory_space<vmem>>, vector<3x512xf32>,
    %c96 = arith.constant 96 : index
    %c0_22 = arith.constant 0 : index
    %34 = vector.load %arg10[%c96, %c0_22] : memref<128x512xf32, #tpu.memory_space<vmem>>, vector<3x512xf32>
    tpu.vector_store %arg10[%c96, %c0_22], %26 {strides = array<i32>} : memref<128x512xf32, #tpu.memory_space<vmem>>, vector<3x512xf32>,
    %c104 = arith.constant 104 : index
    %c0_23 = arith.constant 0 : index
    %35 = vector.load %arg10[%c104, %c0_23] : memref<128x512xf32, #tpu.memory_space<vmem>>, vector<3x512xf32>
    tpu.vector_store %arg10[%c104, %c0_23], %23 {strides = array<i32>} : memref<128x512xf32, #tpu.memory_space<vmem>>, vector<3x512xf32>,
    %c112 = arith.constant 112 : index
    %c0_24 = arith.constant 0 : index
    %36 = vector.load %arg10[%c112, %c0_24] : memref<128x512xf32, #tpu.memory_space<vmem>>, vector<3x512xf32>
    tpu.vector_store %arg10[%c112, %c0_24], %31 {strides = array<i32>} : memref<128x512xf32, #tpu.memory_space<vmem>>, vector<3x512xf32>,
    %c0_25 = arith.constant 0 : index
    %c0_26 = arith.constant 0 : index
    %37 = vector.load %arg10[%c0_25, %c0_26] : memref<128x512xf32, #tpu.memory_space<vmem>>, vector<128x512xf32>
    %38 = arith.truncf %37 : vector<128x512xf32> to vector<128x512xbf16>
    %c0_27 = arith.constant 0 : index
    %c0_28 = arith.constant 0 : index
    %39 = vector.load %arg3[%c0_27, %c0_28] : memref<128x128xbf16, #tpu.memory_space<vmem>>, vector<128x128xbf16>
    %cst_29 = arith.constant dense<0.000000e+00> : vector<128x512xf32>
    %40 = tpu.matmul %39, %38, %cst_29 {dimension_numbers = #tpu.dot_dimension_numbers<[1], [0], [0], [1], [0, 0, 1, 1], [], []>} : vector<128x128xbf16>, vector<128x512xbf16>, vector<128x512xf32> -> vector<128x512xf32>
    %c0_30 = arith.constant 0 : index
    %c0_31 = arith.constant 0 : index
    %41 = vector.load %arg4[%c0_30, %c0_31] : memref<128x1xf32, #tpu.memory_space<vmem>>, vector<128x1xf32>
    %42 = vector.broadcast %41 : vector<128x1xf32> to vector<128x512xf32>
    %43 = arith.addf %40, %42 : vector<128x512xf32>
    %cst_32 = arith.constant 0.000000e+00 : f32
    %44 = vector.broadcast %cst_32 : f32 to vector<128x512xf32>
    %45 = arith.maximumf %43, %44 : vector<128x512xf32>
    %46 = math.absf %43 : vector<128x512xf32>
    %cst_33 = arith.constant 0.000000e+00 : f32
    %47 = vector.broadcast %cst_33 : f32 to vector<128x512xf32>
    %48 = arith.subf %47, %46 : vector<128x512xf32>
    %49 = math.exp %48 : vector<128x512xf32>
    %cst_34 = arith.constant 1.000000e+00 : f32
    %50 = vector.broadcast %cst_34 : f32 to vector<128x512xf32>
    %51 = arith.addf %50, %49 : vector<128x512xf32>
    %52 = math.log %51 : vector<128x512xf32>
    %53 = arith.addf %45, %52 : vector<128x512xf32>
    %c0_35 = arith.constant 0 : index
    %c0_36 = arith.constant 0 : index
    %54 = vector.load %arg5[%c0_35, %c0_36] : memref<128x128xbf16, #tpu.memory_space<vmem>>, vector<128x128xbf16>
    %55 = arith.truncf %53 : vector<128x512xf32> to vector<128x512xbf16>
    %cst_37 = arith.constant dense<0.000000e+00> : vector<128x512xf32>
    %56 = tpu.matmul %54, %55, %cst_37 {dimension_numbers = #tpu.dot_dimension_numbers<[1], [0], [0], [1], [0, 0, 1, 1], [], []>} : vector<128x128xbf16>, vector<128x512xbf16>, vector<128x512xf32> -> vector<128x512xf32>
    %c0_38 = arith.constant 0 : index
    %c0_39 = arith.constant 0 : index
    %57 = vector.load %arg6[%c0_38, %c0_39] : memref<128x1xf32, #tpu.memory_space<vmem>>, vector<128x1xf32>
    %58 = vector.broadcast %57 : vector<128x1xf32> to vector<128x512xf32>
    %59 = arith.addf %56, %58 : vector<128x512xf32>
    %cst_40 = arith.constant 0.000000e+00 : f32
    %60 = vector.broadcast %cst_40 : f32 to vector<128x512xf32>
    %61 = arith.maximumf %59, %60 : vector<128x512xf32>
    %62 = math.absf %59 : vector<128x512xf32>
    %cst_41 = arith.constant 0.000000e+00 : f32
    %63 = vector.broadcast %cst_41 : f32 to vector<128x512xf32>
    %64 = arith.subf %63, %62 : vector<128x512xf32>
    %65 = math.exp %64 : vector<128x512xf32>
    %cst_42 = arith.constant 1.000000e+00 : f32
    %66 = vector.broadcast %cst_42 : f32 to vector<128x512xf32>
    %67 = arith.addf %66, %65 : vector<128x512xf32>
    %68 = math.log %67 : vector<128x512xf32>
    %69 = arith.addf %61, %68 : vector<128x512xf32>
    %c0_43 = arith.constant 0 : index
    %c0_44 = arith.constant 0 : index
    %70 = vector.load %arg7[%c0_43, %c0_44] : memref<8x128xbf16, #tpu.memory_space<vmem>>, vector<8x128xbf16>
    %71 = arith.truncf %69 : vector<128x512xf32> to vector<128x512xbf16>
    %cst_45 = arith.constant dense<0.000000e+00> : vector<8x512xf32>
    %72 = tpu.matmul %70, %71, %cst_45 {dimension_numbers = #tpu.dot_dimension_numbers<[1], [0], [0], [1], [0, 0, 1, 1], [], []>} : vector<8x128xbf16>, vector<128x512xbf16>, vector<8x512xf32> -> vector<8x512xf32>
    %c0_46 = arith.constant 0 : index
    %c0_47 = arith.constant 0 : index
    %73 = vector.load %arg8[%c0_46, %c0_47] : memref<8x1xf32, #tpu.memory_space<vmem>>, vector<8x1xf32>
    %74 = vector.broadcast %73 : vector<8x1xf32> to vector<8x512xf32>
    %75 = arith.addf %72, %74 : vector<8x512xf32>
    %76 = tpu.iota {dimensions = array<i32: 0>} : vector<8x512xi32>
    %cst_48 = arith.constant 0.000000e+00 : f32
    %77 = vector.broadcast %cst_48 : f32 to vector<8x512xf32>
    %78 = arith.subf %77, %75 : vector<8x512xf32>
    %79 = math.exp %78 : vector<8x512xf32>
    %cst_49 = arith.constant 1.000000e+00 : f32
    %80 = vector.broadcast %cst_49 : f32 to vector<8x512xf32>
    %81 = arith.addf %80, %79 : vector<8x512xf32>
    %cst_50 = arith.constant 1.000000e+00 : f32
    %82 = vector.broadcast %cst_50 : f32 to vector<8x512xf32>
    %83 = arith.divf %82, %81 : vector<8x512xf32>
    %cst_51 = arith.constant 1.002000e+00 : f32
    %84 = vector.broadcast %cst_51 : f32 to vector<8x512xf32>
    %85 = arith.mulf %83, %84 : vector<8x512xf32>
    %cst_52 = arith.constant 1.000000e-03 : f32
    %86 = vector.broadcast %cst_52 : f32 to vector<8x512xf32>
    %87 = arith.subf %85, %86 : vector<8x512xf32>
    %c1_i32 = arith.constant 1 : i32
    %88 = vector.broadcast %c1_i32 : i32 to vector<8x512xi32>
    %89 = arith.cmpi sge, %76, %88 : vector<8x512xi32>
    %c4_i32 = arith.constant 4 : i32
    %90 = vector.broadcast %c4_i32 : i32 to vector<8x512xi32>
    %91 = arith.cmpi slt, %76, %90 : vector<8x512xi32>
    %92 = arith.andi %89, %91 : vector<8x512xi1>
    %93 = arith.select %92, %87, %75 : vector<8x512xi1>, vector<8x512xf32>
    %c0_53 = arith.constant 0 : index
    %c0_54 = arith.constant 0 : index
    %94 = vector.load %arg9[%c0_53, %c0_54] : memref<8x512xf32, #tpu.memory_space<vmem>>, vector<8x512xf32>
    tpu.vector_store %arg9[%c0_53, %c0_54], %93 {strides = array<i32>} : memref<8x512xf32, #tpu.memory_space<vmem>>, vector<8x512xf32>,
    return
  }
  func.func @transform_0(%arg0: i32) -> (i32, i32, i32) {
    %c0_i32 = arith.constant 0 : i32
    %c0_i32_0 = arith.constant 0 : i32
    %c0_i32_1 = arith.constant 0 : i32
    return %c0_i32, %c0_i32_0, %arg0 : i32, i32, i32
  }
  func.func @transform_1(%arg0: i32) -> (i32, i32) {
    %c0_i32 = arith.constant 0 : i32
    %c0_i32_0 = arith.constant 0 : i32
    return %c0_i32, %arg0 : i32, i32
  }
  func.func @transform_2(%arg0: i32) -> (i32, i32) {
    %c0_i32 = arith.constant 0 : i32
    %c0_i32_0 = arith.constant 0 : i32
    %c0_i32_1 = arith.constant 0 : i32
    return %c0_i32, %c0_i32_0 : i32, i32
  }
  func.func @transform_3(%arg0: i32) -> (i32, i32) {
    %c0_i32 = arith.constant 0 : i32
    %c0_i32_0 = arith.constant 0 : i32
    %c0_i32_1 = arith.constant 0 : i32
    return %c0_i32, %c0_i32_0 : i32, i32
  }
  func.func @transform_4(%arg0: i32) -> (i32, i32) {
    %c0_i32 = arith.constant 0 : i32
    %c0_i32_0 = arith.constant 0 : i32
    %c0_i32_1 = arith.constant 0 : i32
    return %c0_i32, %c0_i32_0 : i32, i32
  }
  func.func @transform_5(%arg0: i32) -> (i32, i32) {
    %c0_i32 = arith.constant 0 : i32
    %c0_i32_0 = arith.constant 0 : i32
    %c0_i32_1 = arith.constant 0 : i32
    return %c0_i32, %c0_i32_0 : i32, i32
  }
  func.func @transform_6(%arg0: i32) -> (i32, i32) {
    %c0_i32 = arith.constant 0 : i32
    %c0_i32_0 = arith.constant 0 : i32
    %c0_i32_1 = arith.constant 0 : i32
    return %c0_i32, %c0_i32_0 : i32, i32
  }
  func.func @transform_7(%arg0: i32) -> (i32, i32) {
    %c0_i32 = arith.constant 0 : i32
    %c0_i32_0 = arith.constant 0 : i32
    %c0_i32_1 = arith.constant 0 : i32
    return %c0_i32, %c0_i32_0 : i32, i32
  }
  func.func @transform_8(%arg0: i32) -> (i32, i32) {
    %c0_i32 = arith.constant 0 : i32
    %c0_i32_0 = arith.constant 0 : i32
    return %c0_i32, %arg0 : i32, i32
  }
}

</mosaic_0001>

<bundles_post_ra>
// kernel: triplane_decoder_pe.1
= control target key start
LH: loop header
LB: loop body
LE: loop exit
PB: predicated region body
PF: predicated region fallthrough
CT: control target
= control target key end

     0   :  { %s5874_s27 = smov 0   ;;  %s5876_s28 = smov 0   ;;  %s8751_s0 = inlined_call_operand.vmem [shape: f32[3,12,2048], index: 0, kind: input, shape index: {}]   ;;  %s8752_s1 = inlined_call_operand.vmem [shape: f32[3,2048], index: 1, kind: input, shape index: {}]   ;;  %s8753_s2 = inlined_call_operand.vmem [shape: bf16[128,128], index: 2, kind: input, shape index: {}]   ;;  %s8754_s3 = inlined_call_operand.vmem [shape: f32[128,1], index: 3, kind: input, shape index: {}]   ;;  %s8755_s4 = inlined_call_operand.vmem [shape: bf16[128,128], index: 4, kind: input, shape index: {}]   ;;  %s8756_s5 = inlined_call_operand.vmem [shape: f32[128,1], index: 5, kind: input, shape index: {}]   ;;  %s8757_s6 = inlined_call_operand.vmem [shape: bf16[8,128], index: 6, kind: input, shape index: {}]   ;;  %s8758_s7 = inlined_call_operand.vmem [shape: f32[8,1], index: 7, kind: input, shape index: {}]   ;;  %s8759_s8 = inlined_call_operand.vmem [shape: f32[8,2048], index: 8, kind: output, shape index: {}]  }
   0x1   :  { %s5878_s29 = smov 0  }
   0x2 LB: > { %s5017_s30 = sadd.s32 4294967295, %s5819_s29   ;;  %s5891_s9 = sadd.s32 1, %s5819_s29   ;;  %s5819_s29 = sphi %s5878_s29, %s9096_s29   ;;  %s5815_s28 = sphi %s5876_s28, %s9095_s28   ;;  %s5811_s27 = sphi %s5874_s27, %s9094_s27  }
   0x3   : > { %s22_s10 = ssub.s32 %s5819_s29, %s5891_s9  ;;  %s25_s11 = sadd.s32 1, %s5815_s28 }
   0x4   : > { %p23_p0 = scmp.eq.s32.totalorder %s22_s10, 0  ;;  %p32_p1 = scmp.ne.s32.totalorder %s5815_s28, %s5811_s27 }
   0x5   : > { %p33_p2 = scmp.eq.s32.totalorder %s5819_s29, 0  ;;  %p5020_p4 = scmp.ge.s32.totalorder %s5819_s29, 4 }
   0x6   : > { %s5900_s12 = scalar_select %p23_p0, %s5815_s28, %s25_s11  }
   0x7   : > { %p34_p3 = por %p33_p2, %p32_p1  ;;  %254 = sbr.rel (%p5020_p4) target bundleno = 31 (0x1f), region = 40 }
   0xe   : > { %257 = sbr.rel (!%p34_p3) target bundleno = 31 (0x1f), region = 44  ;;  %s259_s13 = sand.u32 (%p34_p3), 1, %s5815_s28  }
   0xf   : > { %s5130_s14 = sshll.u32 (%p34_p3), %s5819_s29, 5  ;;  %s5131_s15 = smul.u32 (%p34_p3), 192, %s259_s13 }
  0x10   : > { %s5908_s18 = scalar_lea.vmem (%p34_p3), %s8751_s0, %s5130_s14 }
  0x11   : > { %v277_v0 = vld [vmem:[%s5908_s18] sm:$0xff] (%p34_p3)  ;;  %v279_v1 = vld [vmem:[%s5908_s18 + $0x8] sm:$0xff] (%p34_p3)  ;;  %v281_v2 = vld [vmem:[%s5908_s18 + $0x10] sm:$0xff] (%p34_p3)  ;;  %s5916_s19 = scalar_lea.vmem (%p34_p3), [#allocation3], %s5131_s15 }
  0x12   : > { %v283_v3 = vld [vmem:[%s5908_s18 + $0x18] sm:$0xff] (%p34_p3)  ;;  %v285_v4 = vld [vmem:[%s5908_s18 + $0x80] sm:$0xff] (%p34_p3)  ;;  %v287_v5 = vld [vmem:[%s5908_s18 + $0x88] sm:$0xff] (%p34_p3)  ;;  %278 = vst [vmem:[%s5916_s19] sm:$0xff] (%p34_p3), %v277_v0 }
  0x13   : > { %280 = vst [vmem:[%s5916_s19 + $0x8] sm:$0xff] (%p34_p3), %v279_v1  ;;  %282 = vst [vmem:[%s5916_s19 + $0x10] sm:$0xff] (%p34_p3), %v281_v2  ;;  %v289_v6 = vld [vmem:[%s5908_s18 + $0x90] sm:$0xff] (%p34_p3)  ;;  %v291_v7 = vld [vmem:[%s5908_s18 + $0x98] sm:$0xff] (%p34_p3) }
  0x14   : > { %284 = vst [vmem:[%s5916_s19 + $0x18] sm:$0xff] (%p34_p3), %v283_v3  ;;  %286 = vst [vmem:[%s5916_s19 + $0x20] sm:$0xff] (%p34_p3), %v285_v4  ;;  %v293_v8 = vld [vmem:[%s5908_s18 + $0x100] sm:$0xff] (%p34_p3)  ;;  %v295_v9 = vld [vmem:[%s5908_s18 + $0x108] sm:$0xff] (%p34_p3) }
  0x15   : > { %288 = vst [vmem:[%s5916_s19 + $0x28] sm:$0xff] %v287_v5  ;;  %290 = vst [vmem:[%s5916_s19 + $0x30] sm:$0xff] %v289_v6  ;;  %v297_v10 = vld [vmem:[%s5908_s18 + $0x110] sm:$0xff]  ;;  %v299_v11 = vld [vmem:[%s5908_s18 + $0x118] sm:$0xff] }
  0x16   : > { %292 = vst [vmem:[%s5916_s19 + $0x38] sm:$0xff] %v291_v7  ;;  %294 = vst [vmem:[%s5916_s19 + $0x40] sm:$0xff] %v293_v8  ;;  %v301_v12 = vld [vmem:[%s5908_s18 + $0x180] sm:$0xff]  ;;  %v303_v13 = vld [vmem:[%s5908_s18 + $0x188] sm:$0xff] }
  0x17   : > { %296 = vst [vmem:[%s5916_s19 + $0x48] sm:$0xff] %v295_v9  ;;  %298 = vst [vmem:[%s5916_s19 + $0x50] sm:$0xff] %v297_v10  ;;  %v305_v14 = vld [vmem:[%s5908_s18 + $0x190] sm:$0xff]  ;;  %v307_v15 = vld [vmem:[%s5908_s18 + $0x198] sm:$0xff] }
  0x18   : > { %300 = vst [vmem:[%s5916_s19 + $0x58] sm:$0xff] %v299_v11  ;;  %302 = vst [vmem:[%s5916_s19 + $0x60] sm:$0xff] %v301_v12  ;;  %v309_v16 = vld [vmem:[%s5908_s18 + $0x200] sm:$0xff]  ;;  %v311_v17 = vld [vmem:[%s5908_s18 + $0x208] sm:$0xff] }
  0x19   : > { %304 = vst [vmem:[%s5916_s19 + $0x68] sm:$0xff] %v303_v13  ;;  %306 = vst [vmem:[%s5916_s19 + $0x70] sm:$0xff] %v305_v14  ;;  %v313_v18 = vld [vmem:[%s5908_s18 + $0x210] sm:$0xff]  ;;  %v315_v19 = vld [vmem:[%s5908_s18 + $0x218] sm:$0xff] }
  0x1a   : > { %308 = vst [vmem:[%s5916_s19 + $0x78] sm:$0xff] %v307_v15  ;;  %310 = vst [vmem:[%s5916_s19 + $0x80] sm:$0xff] %v309_v16  ;;  %v317_v20 = vld [vmem:[%s5908_s18 + $0x280] sm:$0xff]  ;;  %v319_v21 = vld [vmem:[%s5908_s18 + $0x288] sm:$0xff] }
  0x1b   : > { %312 = vst [vmem:[%s5916_s19 + $0x88] sm:$0xff] %v311_v17  ;;  %314 = vst [vmem:[%s5916_s19 + $0x90] sm:$0xff] %v313_v18  ;;  %v321_v22 = vld [vmem:[%s5908_s18 + $0x290] sm:$0xff]  ;;  %v323_v23 = vld [vmem:[%s5908_s18 + $0x298] sm:$0xff] }
  0x1c   : > { %316 = vst [vmem:[%s5916_s19 + $0x98] sm:$0xff] %v315_v19  ;;  %318 = vst [vmem:[%s5916_s19 + $0xa0] sm:$0xff] %v317_v20 }
  0x1d   : > { %320 = vst [vmem:[%s5916_s19 + $0xa8] sm:$0xff] %v319_v21  ;;  %322 = vst [vmem:[%s5916_s19 + $0xb0] sm:$0xff] %v321_v22 }
  0x1e   : > { %324 = vst [vmem:[%s5916_s19 + $0xb8] sm:$0xff] %v323_v23 }
  0x1f PF: > { %p5023_p5 = scmp.ge.s32.totalorder %s5819_s29, 1  ;;  %p338_p6 = scmp.lt.s32.totalorder %s5819_s29, 5 }
  0x21   : > { %p339_p7 = pnand %p5023_p5, %p338_p6 }
  0x23   : > { %342 = sbr.rel (%p339_p7) target bundleno = 1459 (0x5b3), region = 71 }
  0x2a   : > { %s345_s20 = sand.u32 1, %s5811_s27   ;;  %v5821_v24 = vmov 0.0   ;;  %vm429_vm0 = vcmask 1043456   ;;  %s5024_s23 = sshll.u32 %s5017_s30, 2 }
  0x2b   : > { %s5963_s21 = smul.u32 192, %s345_s20  ;;  %466 = vst [vmem:[#allocation2 + $0x28] sm:$0xff] %v5821_v24  ;;  %465 = vst [vmem:[#allocation2 + $0x20] sm:$0xff] %v5821_v24  ;;  %p385_p8 = scmp.lt.s32.totalorder %s5024_s23, 15 }
  0x2c   : > { %467 = vst [vmem:[#allocation2 + $0x30] sm:$0xff] %v5821_v24  ;;  %468 = vst [vmem:[#allocation2 + $0x38] sm:$0xff] %v5821_v24 }
  0x2d   : > { %473 = vst [vmem:[#allocation2 + $0x60] sm:$0xff] %v5821_v24  ;;  %474 = vst [vmem:[#allocation2 + $0x68] sm:$0xff] %v5821_v24  ;;  %s5966_s22 = scalar_lea.vmem [#allocation3], %s5963_s21  ;;  %s9098_s23 = smov (!%p385_p8, %s5024_s23), 15 }
  0x2e   : > { %475 = vst [vmem:[#allocation2 + $0x70] sm:$0xff] %v5821_v24  ;;  %476 = vst [vmem:[#allocation2 + $0x78] sm:$0xff] %v5821_v24  ;;  %v398_v25 = vld [vmem:[%s5966_s22 + $0x8] sm:$0xff]  ;;  %v400_v35 = vld [vmem:[%s5966_s22 + $0x18] sm:$0xff]  ;;  %s5025_s24 = sshll.u32 %s9098_s23, 2  ;;  %s5027_s19 = sshll.u32 %s9098_s23, 3 }
  0x2f   : > { %481 = vst [vmem:[#allocation2 + $0xa0] sm:$0xff] %v5821_v24  ;;  %482 = vst [vmem:[#allocation2 + $0xa8] sm:$0xff] %v5821_v24  ;;  %v402_v26 = vld [vmem:[%s5966_s22 + $0x28] sm:$0xf]  ;;  %v404_v36 = vld [vmem:[%s5966_s22 + $0x38] sm:$0xf]  ;;  %s6145_s27 = scalar_lea.vmem %s8752_s1, %s5025_s24 }
  0x30   : > { %483 = vst [vmem:[#allocation2 + $0xb0] sm:$0xff] %v5821_v24  ;;  %484 = vst [vmem:[#allocation2 + $0xb8] sm:$0xff] %v5821_v24  ;;  %v406_v27 = vld [vmem:[%s5966_s22 + $0x48] sm:$0xff]  ;;  %v435_v32 = vsel %vm429_vm0, %v402_v26, 0.0  ;;  %v408_v37 = vld [vmem:[%s5966_s22 + $0x58] sm:$0xff]  ;;  %v445_v44 = vsel %vm429_vm0, %v404_v36, 0.0 }
  0x31   : > { %489 = vst [vmem:[#allocation2 + $0xe0] sm:$0xff] %v5821_v24  ;;  %490 = vst [vmem:[#allocation2 + $0xe8] sm:$0xff] %v5821_v24  ;;  %v410_v28 = vld [vmem:[%s5966_s22 + $0x68] sm:$0xf]  ;;  %v423_v31 = vadd.f32 %v406_v27, %v398_v25  ;;  %v412_v40 = vld [vmem:[%s5966_s22 + $0x78] sm:$0xf]  ;;  %v427_v43 = vadd.f32 %v408_v37, %v400_v35 }
  0x32   : > { %491 = vst [vmem:[#allocation2 + $0xf0] sm:$0xff] %v5821_v24  ;;  %492 = vst [vmem:[#allocation2 + $0xf8] sm:$0xff] %v5821_v24  ;;  %v414_v29 = vld [vmem:[%s5966_s22 + $0x88] sm:$0xff]  ;;  %v436_v33 = vsel %vm429_vm0, %v410_v28, 0.0  ;;  %v416_v41 = vld [vmem:[%s5966_s22 + $0x98] sm:$0xff]  ;;  %v446_v45 = vsel %vm429_vm0, %v412_v40, 0.0 }
  0x33   : > { %497 = vst [vmem:[#allocation2 + $0x120] sm:$0xff] %v5821_v24  ;;  %498 = vst [vmem:[#allocation2 + $0x128] sm:$0xff] %v5821_v24  ;;  %v418_v30 = vld [vmem:[%s5966_s22 + $0xa8] sm:$0xf]  ;;  %v424_v38 = vadd.f32 %v423_v31, %v414_v29  ;;  %v437_v39 = vadd.f32 %v436_v33, %v435_v32  ;;  %v420_v42 = vld [vmem:[%s5966_s22 + $0xb8] sm:$0xf]  ;;  %v428_v52 = vadd.f32 %v427_v43, %v416_v41 }
  0x34   : > { %499 = vst [vmem:[#allocation2 + $0x130] sm:$0xff] %v5821_v24  ;;  %500 = vst [vmem:[#allocation2 + $0x138] sm:$0xff] %v5821_v24  ;;  %v438_v34 = vsel %vm429_vm0, %v418_v30, 0.0  ;;  %v448_v46 = vsel %vm429_vm0, %v420_v42, 0.0  ;;  %v397_v47 = vld [vmem:[%s5966_s22] sm:$0xff]  ;;  %v447_v53 = vadd.f32 %v446_v45, %v445_v44  ;;  %v399_v56 = vld [vmem:[%s5966_s22 + $0x10] sm:$0xff] }
  0x35   : > { %501 = vst [vmem:[#allocation2 + $0x140] sm:$0xff] %v5821_v24  ;;  %502 = vst [vmem:[#allocation2 + $0x148] sm:$0xff] %v5821_v24  ;;  %v401_v48 = vld [vmem:[%s5966_s22 + $0x20] sm:$0xf]  ;;  %v439_v50 = vadd.f32 %v438_v34, %v437_v39  ;;  %v5989_v51 = vmul.f32 0.33333334, %v424_v38 }
  0x36   : > { %503 = vst [vmem:[#allocation2 + $0x150] sm:$0xff] %v5821_v24  ;;  %504 = vst [vmem:[#allocation2 + $0x158] sm:$0xff] %v5821_v24  ;;  %v405_v49 = vld [vmem:[%s5966_s22 + $0x40] sm:$0xff]  ;;  %v430_v59 = vsel %vm429_vm0, %v401_v48, 0.0  ;;  %v449_v63 = vadd.f32 %v448_v46, %v447_v53  ;;  %v6000_v0 = vmul.f32 0.33333334, %v428_v52 }
  0x37   : > { %505 = vst [vmem:[#allocation2 + $0x160] sm:$0xff] %v5821_v24  ;;  %506 = vst [vmem:[#allocation2 + $0x168] sm:$0xff] %v5821_v24  ;;  %v409_v54 = vld [vmem:[%s5966_s22 + $0x60] sm:$0xf]  ;;  %v421_v58 = vadd.f32 %v405_v49, %v397_v47  ;;  %v5997_v61 = vmul.f32 0.33333334, %v439_v50 }
  0x38   : > { %507 = vst [vmem:[#allocation2 + $0x170] sm:$0xff] %v5821_v24  ;;  %508 = vst [vmem:[#allocation2 + $0x178] sm:$0xff] %v5821_v24  ;;  %v413_v55 = vld [vmem:[%s5966_s22 + $0x80] sm:$0xff]  ;;  %v431_v60 = vsel %vm429_vm0, %v409_v54, 0.0  ;;  %v632_v62 = vand.u32 2139095040, %v5989_v51  ;;  %v407_v1 = vld [vmem:[%s5966_s22 + $0x50] sm:$0xff] }
  0x39   : > { %509 = vst [vmem:[#allocation2 + $0x180] sm:$0xff] %v5821_v24  ;;  %510 = vst [vmem:[#allocation2 + $0x188] sm:$0xff] %v5821_v24  ;;  %v417_v57 = vld [vmem:[%s5966_s22 + $0xa0] sm:$0xf]  ;;  %v422_v2 = vadd.f32 %v421_v58, %v413_v55  ;;  %v432_v3 = vadd.f32 %v431_v60, %v430_v59  ;;  %v403_v5 = vld [vmem:[%s5966_s22 + $0x30] sm:$0xf]  ;;  %v425_v8 = vadd.f32 %v407_v1, %v399_v56 }
  0x3a   : > { %511 = vst [vmem:[#allocation2 + $0x190] sm:$0xff] %v5821_v24  ;;  %512 = vst [vmem:[#allocation2 + $0x198] sm:$0xff] %v5821_v24  ;;  %v433_v4 = vsel %vm429_vm0, %v417_v57, 0.0  ;;  %v411_v6 = vld [vmem:[%s5966_s22 + $0x70] sm:$0xf]  ;;  %v633_v9 = vshrl.u32 %v632_v62, 23 }
  0x3b   : > { %513 = vst [vmem:[#allocation2 + $0x1a0] sm:$0xff] %v5821_v24  ;;  %514 = vst [vmem:[#allocation2 + $0x1a8] sm:$0xff] %v5821_v24  ;;  %v415_v7 = vld [vmem:[%s5966_s22 + $0x90] sm:$0xff]  ;;  %v6008_v10 = vmul.f32 0.33333334, %v449_v63  ;;  %v1048_v12 = vand.u32 2139095040, %v5997_v61  ;;  %v434_v13 = vadd.f32 %v433_v4, %v432_v3 }
  0x3c   : > { %515 = vst [vmem:[#allocation2 + $0x1b0] sm:$0xff] %v5821_v24  ;;  %516 = vst [vmem:[#allocation2 + $0x1b8] sm:$0xff] %v5821_v24  ;;  %v419_v11 = vld [vmem:[%s5966_s22 + $0xb0] sm:$0xf]  ;;  %v6012_v14 = vmul.f32 0.33333334, %v422_v2  ;;  %v426_v15 = vadd.f32 %v425_v8, %v415_v7  ;;  %s394_s22 = scalar_lea.vmem %s8759_s8, %s5027_s19 }
  0x3d   : > { %517 = vst [vmem:[#allocation2 + $0x1c0] sm:$0xff] %v5821_v24  ;;  %518 = vst [vmem:[#allocation2 + $0x1c8] sm:$0xff] %v5821_v24  ;;  %v5032_v16 = vadd.s32 4294967169, %v633_v9  ;;  %v440_v17 = vsel %vm429_vm0, %v403_v5, 0.0  ;;  %v6016_v18 = vmul.f32 0.33333334, %v434_v13 }
  0x3e   : > { %519 = vst [vmem:[#allocation2 + $0x1d0] sm:$0xff] %v5821_v24  ;;  %520 = vst [vmem:[#allocation2 + $0x1d8] sm:$0xff] %v5821_v24  ;;  %v441_v19 = vsel %vm429_vm0, %v411_v6, 0.0  ;;  %v840_v20 = vand.u32 2139095040, %v6000_v0  ;;  %v443_v21 = vsel %vm429_vm0, %v419_v11, 0.0  ;;  %v1049_v22 = vshrl.u32 %v1048_v12, 23 }
  0x3f   : > { %2218 = vst [vmem:[#allocation2 + $0x28] sm:$0xf] %v5997_v61  ;;  %2220 = vst [vmem:[#allocation2 + $0x38] sm:$0xf] %v6008_v10  ;;  %v442_v23 = vadd.f32 %v441_v19, %v440_v17  ;;  %v6023_v24 = vmul.f32 0.33333334, %v426_v15 }
  0x40   : > { %2213 = vst [vmem:[#allocation2] sm:$0xff] %v6012_v14  ;;  %2217 = vst [vmem:[#allocation2 + $0x20] sm:$0xf] %v6016_v18  ;;  %v639_v25 = vadd.s32 1, %v5032_v16  ;;  %v629_v26 = vand.u32 2147483647, %v5989_v51 }
  0x41   : > { %v444_v28 = vadd.f32 %v443_v21, %v442_v23  ;;  %2215 = vst [vmem:[#allocation2 + $0x10] sm:$0xff] %v6023_v24  ;;  %v841_v30 = vshrl.u32 %v840_v20, 23  ;;  %v1256_v31 = vand.u32 2139095040, %v6008_v10  ;;  %v5048_v32 = vadd.s32 4294967169, %v1049_v22 }
  0x42   : > { %v636_v36 = vand.u32 8388607, %v629_v26  ;;  %vm640_vm1 = vcmp.gt.s32.totalorder %v639_v25, 0  ;;  %v528_v40 = vand.u32 2139095040, %v6012_v14  ;;  %v8775_v48 = vmov 683565275  }
  0x43   : > { %v6029_v34 = vmul.f32 0.33333334, %v444_v28  ;;  %v641_v37 = vsel %vm640_vm1, %v639_v25, 0  ;;  %v5040_v38 = vadd.s32 4294967169, %v841_v30  ;;  %v1257_v39 = vshrl.u32 %v1256_v31, 23 }
  0x44   : > { %v643_v42 = vand.u32 31, %v641_v37  ;;  %v1055_v43 = vadd.s32 1, %v5048_v32  ;;  %v637_v45 = vor.u32 8388608, %v636_v36  ;;  %v642_v46 = vshrl.u32 %v641_v37, 5 }
  0x45   : > { %2219 = vst [vmem:[#allocation2 + $0x30] sm:$0xf] %v6029_v34  ;;  %v8772_v50 = vmov 2475754826   ;;  %v8769_v53 = vmov 2131351028  }
  0x46   : > { %v2730_v27 = vld [vmem:[#allocation2 + $0x28] sm:$0xff]  ;;  %v2732_v33 = vld [vmem:[#allocation2 + $0x38] sm:$0xff]  ;;  %v644_v47 = vsub.s32 32, %v643_v42  ;;  %v646_v49 = vshll.u32 %v8775_v48, %v643_v42  ;;  %v649_v52 = vshll.u32 %v8772_v50, %v643_v42  ;;  %v652_v54 = vshll.u32 %v8769_v53, %v643_v42 }
  0x47   : > { %v2790_v29 = vpack.c.bf16 %v2730_v27, %v5989_v51  ;;  %v2792_v35 = vpack.c.bf16 %v2732_v33, %v6000_v0  ;;  %v2729_v41 = vld [vmem:[#allocation2 + $0x20] sm:$0xff]  ;;  %v8767_v55 = vmov 2102212464   ;;  %v5826_v57 = vmov 920167782  }
  0x48   : > { %v2789_v44 = vpack.c.bf16 %v2729_v41, %v6012_v14  ;;  %v655_v56 = vshll.u32 %v8767_v55, %v643_v42  ;;  %v658_v58 = vshll.u32 %v5826_v57, %v643_v42  ;;  %v1045_v59 = vand.u32 2147483647, %v5997_v61 }
  0x49   : > { %2981 = vmatprep.subr.bf16.mxu0 %v2790_v29  ;;  %3094 = vmatprep.subr.bf16.mxu1 %v2792_v35  ;;  %v645_v60 = vshrl.u32 %v8775_v48, %v644_v47  ;;  %v647_v62 = vshrl.u32 %v8772_v50, %v644_v47  ;;  %v650_v63 = vshrl.u32 %v8769_v53, %v644_v47  ;;  %v8779_v3 = vmov 1326507024  }
  0x4a   : > { %2982 = vmatpush1.bf16.msra.mxu0 %v2789_v44  ;;  %v653_v1 = vshrl.u32 %v8767_v55, %v644_v47  ;;  %v656_v2 = vshrl.u32 %v5826_v57, %v644_v47  ;;  %v659_v4 = vshrl.u32 %v8779_v3, %v644_v47  ;;  %vm661_vm2 = vcmp.lt.s32.totalorder %v642_v46, 1 }
  0x4b   : > { %vm662_vm3 = vcmp.lt.s32.totalorder %v642_v46, 2  ;;  %v648_v6 = vor.u32 %v647_v62, %v646_v49  ;;  %v651_v7 = vor.u32 %v650_v63, %v649_v52  ;;  %vm663_vm4 = vcmp.lt.s32.totalorder %v642_v46, 3 }
  0x4c   : > { %v2731_v5 = vld [vmem:[#allocation2 + $0x30] sm:$0xff]  ;;  %v654_v8 = vor.u32 %v653_v1, %v652_v54  ;;  %v657_v11 = vor.u32 %v656_v2, %v655_v56  ;;  %v660_v12 = vor.u32 %v659_v4, %v658_v58  ;;  %vm664_vm5 = vcmp.lt.s32.totalorder %v642_v46, 4 }
  0x4d   : > { %v2791_v9 = vpack.c.bf16 %v2731_v5, %v6023_v24  ;;  %v665_v13 = vsel %vm661_vm2, %v645_v60, %v648_v6  ;;  %v669_v16 = vsel %vm661_vm2, %v648_v6, %v651_v7  ;;  %v677_v22 = vshll.u32 %v637_v45, 8 }
  0x4e   : > { %v666_v15 = vsel %vm664_vm5, %v654_v8, 2102212464  ;;  %v673_v17 = vsel %vm661_vm2, %v651_v7, %v654_v8  ;;  %v670_v20 = vsel %vm664_vm5, %v657_v11, 920167782  ;;  %v674_v21 = vsel %vm664_vm5, %v660_v12, 1326507024 }
  0x4f   : > { %3095 = vmatpush1.bf16.msra.mxu1 %v2791_v9  ;;  %v667_v19 = vsel %vm663_vm4, %v651_v7, %v666_v15  ;;  %v529_v23 = vshrl.u32 %v528_v40, 23  ;;  %v944_v25 = vand.u32 2139095040, %v6016_v18  ;;  %v671_v27 = vsel %vm663_vm4, %v654_v8, %v670_v20 }
  0x50   : > { %v675_v28 = vsel %vm663_vm4, %v657_v11, %v674_v21  ;;  %v668_v29 = vsel %vm662_vm3, %v665_v13, %v667_v19  ;;  %v672_v30 = vsel %vm662_vm3, %v669_v16, %v671_v27  ;;  %v1052_v32 = vand.u32 8388607, %v1045_v59 }
  0x51   : > { %v676_v31 = vsel %vm662_vm3, %v673_v17, %v675_v28  ;;  %v6062_v36 = vmul.u32.u64.low %v677_v22, %v672_v30  ;;  %v6063_v37 = vmul.u32.u64.high %v677_v22, %v672_v30, %v6062_v36  ;;  %v847_v40 = vadd.s32 1, %v5040_v38 }
  0x52   : > { %v6059_v33 = vmul.u32.u64.low %v677_v22, %v676_v31  ;;  %v6060_v35 = vmul.u32.u64.high %v677_v22, %v676_v31, %v6059_v33  ;;  %vm1056_vm6 = vcmp.gt.s32.totalorder %v1055_v43, 0  ;;  %v6066_v41 = vadd.s32 4294967169, %v1257_v39 }
  0x53   : > { %v6068_v42 = vadd.s32 4294967169, %v529_v23  ;;  %v6070_v44 = vshrl.u32 %v944_v25, 23  ;;  %v1057_v45 = vsel %vm1056_vm6, %v1055_v43, 0  ;;  %v736_v46 = vand.u32 2139095040, %v6023_v24 }
  0x54   : > { %v684_v47 = vmul.u32 %v677_v22, %v668_v29  ;;  %v1058_v49 = vshrl.u32 %v1057_v45, 5  ;;  %v1059_v52 = vand.u32 31, %v1057_v45  ;;  %vm686_vm7 = vc.u32 %v6060_v35, %v6062_v36 }
  0x55   : > { %v687_v54 = vadd.s32 1, %v6063_v37  ;;  %v1053_v56 = vor.u32 8388608, %v1052_v32  ;;  %v837_v38 = vand.u32 2147483647, %v6000_v0  ;;  %vm848_vm8 = vcmp.gt.s32.totalorder %v847_v40, 0 }
  0x56   : > { %v1060_v39 = vsub.s32 32, %v1059_v52  ;;  %v1062_v58 = vshll.u32 %v8775_v48, %v1059_v52  ;;  %v1065_v60 = vshll.u32 %v8772_v50, %v1059_v52  ;;  %v1068_v24 = vshll.u32 %v8769_v53, %v1059_v52 }
  0x57   : > { %v688_v43 = vsel %vm686_vm7, %v687_v54, %v6063_v37  ;;  %v1071_v62 = vshll.u32 %v8767_v55, %v1059_v52  ;;  %v1074_v63 = vshll.u32 %v5826_v57, %v1059_v52  ;;  %vm1077_vm9 = vcmp.lt.s32.totalorder %v1058_v49, 1 }
  0x58   : > { %v689_v1 = vadd.s32 %v688_v43, %v684_v47  ;;  %v1063_v2 = vshrl.u32 %v8772_v50, %v1060_v39  ;;  %v1066_v4 = vshrl.u32 %v8769_v53, %v1060_v39  ;;  %v1061_v5 = vshrl.u32 %v8775_v48, %v1060_v39 }
  0x59   : > { %v1069_v6 = vshrl.u32 %v8767_v55, %v1060_v39  ;;  %v1072_v7 = vshrl.u32 %v5826_v57, %v1060_v39  ;;  %v1075_v8 = vshrl.u32 %v8779_v3, %v1060_v39  ;;  %vm1079_vm10 = vcmp.lt.s32.totalorder %v1058_v49, 3 }
  0x5a   : > { %v690_v9 = vadd.s32 536870912, %v689_v1  ;;  %v1064_v11 = vor.u32 %v1063_v2, %v1062_v58  ;;  %v1067_v12 = vor.u32 %v1066_v4, %v1065_v60  ;;  %vm1080_vm11 = vcmp.lt.s32.totalorder %v1058_v49, 4 }
  0x5b   : > { %v1070_v13 = vor.u32 %v1069_v6, %v1068_v24  ;;  %v1073_v15 = vor.u32 %v1072_v7, %v1071_v62  ;;  %v1076_v16 = vor.u32 %v1075_v8, %v1074_v63  ;;  %vm1078_vm12 = vcmp.lt.s32.totalorder %v1058_v49, 2  ;;  %v6150_v7 = vld [vmem:[%s6145_s27] sm:$0x77] }
  0x5c   : > { %v691_v17 = vshrl.u32 %v690_v9, 30  ;;  %v1085_v19 = vsel %vm1077_vm9, %v1064_v11, %v1067_v12  ;;  %v6090_v20 = vshll.u32 %v1053_v56, 8  ;;  %v1081_v28 = vsel %vm1077_vm9, %v1061_v5, %v1064_v11  ;;  %8817 = vst [vmem:[#allocation4_spill] sm:$0xff] %v6150_v7  ;;  %2681 = vst [vmem:[#allocation2 + $0x140] sm:$0x7] %v6150_v7 }
  0x5d   : > { %v1082_v21 = vsel %vm1080_vm11, %v1070_v13, 2102212464  ;;  %v1086_v22 = vsel %vm1080_vm11, %v1073_v15, 920167782  ;;  %v1089_v23 = vsel %vm1077_vm9, %v1067_v12, %v1070_v13  ;;  %v1090_v25 = vsel %vm1080_vm11, %v1076_v16, 1326507024 }
  0x5e   : > { %v692_v27 = vshll.u32 %v691_v17, 30  ;;  %v1083_v29 = vsel %vm1079_vm10, %v1067_v12, %v1082_v21  ;;  %v1087_v30 = vsel %vm1079_vm10, %v1070_v13, %v1086_v22  ;;  %vm631_vm13 = vcmp.lt.s32.totalorder %v5989_v51, 0 }
  0x5f   : > { %v715_v31 = vsub.s32 4, %v691_v17  ;;  %v1088_v32 = vsel %vm1078_vm12, %v1085_v19, %v1087_v30  ;;  %v1091_v33 = vsel %vm1079_vm10, %v1073_v15, %v1090_v25  ;;  %v737_v37 = vshrl.u32 %v736_v46, 23 }
  0x60   : > { %v6101_v45 = vsub.s32 %v689_v1, %v692_v27  ;;  %v1092_v47 = vsel %vm1078_vm12, %v1089_v23, %v1091_v33  ;;  %v849_v52 = vsel %vm848_vm8, %v847_v40, 0  ;;  %v1084_v54 = vsel %vm1078_vm12, %v1081_v28, %v1083_v29 }
  0x61   : > { %v6107_v56 = vmul.u32.u64.low %v6090_v20, %v1092_v47  ;;  %v6108_v39 = vmul.u32.u64.high %v6090_v20, %v1092_v47, %v6107_v56  ;;  %v844_v58 = vand.u32 8388607, %v837_v38  ;;  %v6120_v40 = vshrl.u32 %v849_v52, 5 }
  0x62   : > { %v695_v46 = vsub.s32 0, %v6101_v45  ;;  %v6116_v60 = vmul.u32.u64.low %v6090_v20, %v1088_v32  ;;  %v6117_v43 = vmul.u32.u64.high %v6090_v20, %v1088_v32, %v6116_v60  ;;  %v6123_v49 = vadd.s32 1, %v6066_v41 }
  0x63   : > { %vm6127_vm14 = vcmp.le.f32.partialorder %v629_v26, 0.7853982  ;;  %v716_v62 = vsel %vm631_vm13, %v715_v31, %v691_v17  ;;  %v851_v63 = vand.u32 31, %v849_v52  ;;  %v6135_v1 = vadd.s32 4294967169, %v6070_v44 }
  0x64   : > { %v6137_v2 = vadd.s32 4294967169, %v737_v37  ;;  %v685_v41 = vadd.s32 %v6062_v36, %v6060_v35  ;;  %v5033_v4 = vmin.u32 %v695_v46, %v6101_v45  ;;  %v1100_v26 = vmul.u32 %v6090_v20, %v1084_v54 }
  0x65   : > { %v845_v5 = vor.u32 8388608, %v844_v58  ;;  %v852_v6 = vsub.s32 32, %v851_v63  ;;  %v854_v44 = vshll.u32 %v8775_v48, %v851_v63  ;;  %v6154_v35 = vsel %vm6127_vm14, 0, %v716_v62 }
  0x66   : > { %v697_v8 = vclz %v5033_v4  ;;  %vm1102_vm15 = vc.u32 %v6108_v39, %v6116_v60  ;;  %vm869_vm0 = vcmp.lt.s32.totalorder %v6120_v40, 1  ;;  %v1103_v36 = vadd.s32 1, %v6117_v43 }
  0x67   : > { %v855_v9 = vshrl.u32 %v8772_v50, %v852_v6  ;;  %v857_v11 = vshll.u32 %v8772_v50, %v851_v63  ;;  %vm872_vm1 = vcmp.lt.s32.totalorder %v6120_v40, 4  ;;  %v858_v13 = vshrl.u32 %v8769_v53, %v852_v6 }
  0x68   : > { %v5034_v12 = vadd.s32 4294967294, %v697_v8  ;;  %v860_v15 = vshll.u32 %v8769_v53, %v851_v63  ;;  %v861_v16 = vshrl.u32 %v8767_v55, %v852_v6  ;;  %vm870_vm2 = vcmp.lt.s32.totalorder %v6120_v40, 2 }
  0x69   : > { %v1104_v17 = vsel %vm1102_vm15, %v1103_v36, %v6117_v43  ;;  %v856_v19 = vor.u32 %v855_v9, %v854_v44  ;;  %v863_v20 = vshll.u32 %v8767_v55, %v851_v63  ;;  %v864_v21 = vshrl.u32 %v5826_v57, %v852_v6 }
  0x6a   : > { %vm5035_vm3 = vcmp.lt.s32.totalorder %v5034_v12, 0  ;;  %v1105_v22 = vadd.s32 %v1104_v17, %v1100_v26  ;;  %v859_v23 = vor.u32 %v858_v13, %v857_v11  ;;  %v862_v25 = vor.u32 %v861_v16, %v860_v15 }
  0x6b   : > { %v700_v27 = vsel %vm5035_vm3, 0, %v5034_v12  ;;  %v865_v28 = vor.u32 %v864_v21, %v863_v20  ;;  %v866_v29 = vshll.u32 %v5826_v57, %v851_v63  ;;  %v867_v30 = vshrl.u32 %v8779_v3, %v852_v6 }
  0x6c   : > { %v701_v31 = vsub.s32 32, %v700_v27  ;;  %v702_v32 = vshll.u32 %v6101_v45, %v700_v27  ;;  %v705_v33 = vsub.s32 4294967266, %v700_v27  ;;  %v1106_v37 = vadd.s32 536870912, %v1105_v22 }
  0x6d   : > { %v853_v47 = vshrl.u32 %v8775_v48, %v852_v6  ;;  %v868_v52 = vor.u32 %v867_v30, %v866_v29  ;;  %vm871_vm4 = vcmp.lt.s32.totalorder %v6120_v40, 3  ;;  %v885_v54 = vshll.u32 %v845_v5, 8 }
  0x6e   : > { %v703_v56 = vshrl.u32 %v685_v41, %v701_v31  ;;  %v706_v58 = vadd.s32 127, %v705_v33  ;;  %v1107_v46 = vshrl.u32 %v1106_v37, 30  ;;  %v874_v43 = vsel %vm872_vm1, %v862_v25, 2102212464 }
  0x6f   : > { %v877_v62 = vsel %vm869_vm0, %v856_v19, %v859_v23  ;;  %v878_v45 = vsel %vm872_vm1, %v865_v28, 920167782  ;;  %v881_v63 = vsel %vm869_vm0, %v859_v23, %v862_v25  ;;  %v882_v4 = vsel %vm872_vm1, %v868_v52, 1326507024 }
  0x70   : > { %v704_v26 = vor.u32 %v703_v56, %v702_v32  ;;  %v707_v5 = vshll.u32 %v706_v58, 23  ;;  %v1108_v41 = vshll.u32 %v1107_v46, 30  ;;  %v1131_v6 = vsub.s32 4, %v1107_v46 }
  0x71   : > { %v873_v44 = vsel %vm869_vm0, %v853_v47, %v856_v19  ;;  %v875_v8 = vsel %vm871_vm4, %v859_v23, %v874_v43  ;;  %v879_v36 = vsel %vm871_vm4, %v862_v25, %v878_v45  ;;  %v883_v9 = vsel %vm871_vm4, %v865_v28, %v882_v4 }
  0x72   : > { %v1152_v11 = vand.u32 2139095040, %v6029_v34  ;;  %v708_v12 = vor.u32 4788187, %v707_v5  ;;  %v711_v13 = vcvt.s32.f32 %v704_v26  ;;  %v6195_v15 = vsub.s32 %v1105_v22, %v1108_v41 }
  0x73   : > { %v722_v16 = vadd.s32 3, %v6154_v35  ;;  %vm1047_vm5 = vcmp.lt.s32.totalorder %v5997_v61, 0  ;;  %v880_v17 = vsel %vm870_vm2, %v877_v62, %v879_v36  ;;  %v884_v19 = vsel %vm870_vm2, %v881_v63, %v883_v9 }
  0x74   : > { %v709_v20 = vand.u32 2147483647, %v708_v12  ;;  %v1111_v21 = vsub.s32 0, %v6195_v15  ;;  %v1132_v23 = vsel %vm1047_vm5, %v1131_v6, %v1107_v46  ;;  %v876_v22 = vsel %vm870_vm2, %v873_v44, %v875_v8 }
  0x75   : > { %v6208_v25 = vmul.u32.u64.low %v885_v54, %v884_v19  ;;  %v6209_v27 = vmul.u32.u64.high %v885_v54, %v884_v19, %v6208_v25  ;;  %v6211_v28 = vmul.u32.u64.low %v885_v54, %v880_v17  ;;  %v6212_v29 = vmul.u32.u64.high %v885_v54, %v880_v17, %v6211_v28 }
  0x76   : > { %v6215_v30 = vadd.s32 1, %v6068_v42  ;;  %v6218_v31 = vadd.s32 1, %v6135_v1  ;;  %v712_v32 = vmul.f32 %v711_v13, %v709_v20  ;;  %v5049_v33 = vmin.u32 %v1111_v21, %v6195_v15 }
  0x77   : > { %v6222_v37 = vadd.s32 1, %v6137_v2  ;;  %vm6226_vm6 = vcmp.le.f32.partialorder %v1045_v59, 0.7853982  ;;  %v892_v47 = vmul.u32 %v885_v54, %v876_v22  ;;  %vm1264_vm7 = vcmp.gt.s32.totalorder %v6123_v49, 0 }
  0x78   : > { %v713_v42 = vxor.u32 2147483648, %v712_v32  ;;  %v1113_v52 = vclz %v5049_v33  ;;  %v6233_v1 = vsel %vm6226_vm6, 0, %v1132_v23  ;;  %v1253_v56 = vand.u32 2147483647, %v6008_v10 }
  0x79   : > { %v1153_v58 = vshrl.u32 %v1152_v11, 23  ;;  %v6236_v2 = vand.u32 3, %v722_v16  ;;  %vm894_vm8 = vc.u32 %v6209_v27, %v6211_v28  ;;  %v895_v59 = vadd.s32 1, %v6212_v29 }
  0x7a   : > { %v714_v54 = vsel %vm631_vm13, %v713_v42, %v712_v32  ;;  %v1101_v46 = vadd.s32 %v6116_v60, %v6108_v39  ;;  %v5050_v43 = vadd.s32 4294967294, %v1113_v52  ;;  %v1265_v62 = vsel %vm1264_vm7, %v6123_v49, 0 }
  0x7b   : > { %v717_v45 = vsel %vm6127_vm14, %v5989_v51, %v714_v54  ;;  %v1138_v63 = vadd.s32 3, %v6233_v1  ;;  %v896_v4 = vsel %vm894_vm8, %v895_v59, %v6212_v29  ;;  %v1267_v26 = vand.u32 31, %v1265_v62 }
  0x7c   : > { %5225 = vcosq.f32 %v717_v45  ;;  %vm5051_vm9 = vcmp.lt.s32.totalorder %v5050_v43, 0  ;;  %v897_v5 = vadd.s32 %v896_v4, %v892_v47  ;;  %v1260_v41 = vand.u32 8388607, %v1253_v56 }
  0x7d   : > { %v6252_v6 = vadd.s32 4294967169, %v1153_v58  ;;  %5227 = vsinq.f32 %v717_v45  ;;  %v1116_v39 = vsel %vm5051_vm9, 0, %v5050_v43  ;;  %v1268_v60 = vsub.s32 32, %v1267_v26 }
  0x7e   : > { %v1117_v49 = vsub.s32 32, %v1116_v39  ;;  %v1118_v24 = vshll.u32 %v6195_v15, %v1116_v39  ;;  %v1121_v44 = vsub.s32 4294967266, %v1116_v39  ;;  %v898_v8 = vadd.s32 536870912, %v897_v5 }
  0x7f   : > { %vm725_vm10 = vcmp.eq.s32.totalorder %v6236_v2, 0  ;;  %vm728_vm11 = vcmp.eq.s32.totalorder %v6236_v2, 2  ;;  %v6257_v36 = vand.u32 3, %v1138_v63  ;;  %v6260_v9 = vadd.s32 %v6211_v28, %v6209_v27 }
  0x80   : > { %vm724_vm12 = vcmp.lt.s32.totalorder %v6236_v2, 2  ;;  %v1119_v11 = vshrl.u32 %v1101_v46, %v1117_v49  ;;  %v1122_v12 = vadd.s32 127, %v1121_v44  ;;  %v6263_v13 = vshrl.u32 %v898_v8, 30 }
  0x81   : > { %v1261_v16 = vor.u32 8388608, %v1260_v41  ;;  %vm721_vm13 = vweird.f32 %v5989_v51  ;;  %v1270_v15 = vshll.u32 %v8775_v48, %v1267_v26  ;;  %v1271_v17 = vshrl.u32 %v8772_v50, %v1268_v60 }
  0x82   : > { %v1273_v19 = vshll.u32 %v8772_v50, %v1267_v26  ;;  %v1274_v20 = vshrl.u32 %v8769_v53, %v1268_v60  ;;  %v1120_v21 = vor.u32 %v1119_v11, %v1118_v24  ;;  %v1123_v23 = vshll.u32 %v1122_v12, 23 }
  0x83   : > { %v900_v22 = vshll.u32 %v6263_v13, 30  ;;  %v1279_v25 = vshll.u32 %v8767_v55, %v1267_v26  ;;  %v1266_v27 = vshrl.u32 %v1265_v62, 5  ;;  %v1276_v28 = vshll.u32 %v8769_v53, %v1267_v26 }
  0x84   : > { %v1277_v29 = vshrl.u32 %v8767_v55, %v1268_v60  ;;  %v1280_v32 = vshrl.u32 %v5826_v57, %v1268_v60  ;;  %v1124_v33 = vor.u32 4788187, %v1123_v23  ;;  %v1127_v47 = vcvt.s32.f32 %v1120_v21 }
  0x85   : > { %v6275_v42 = vsub.s32 %v897_v5, %v900_v22  ;;  %v6277_v52 = vshll.u32 %v1261_v16, 8  ;;  %v1269_v58 = vshrl.u32 %v8775_v48, %v1268_v60  ;;  %v1272_v59 = vor.u32 %v1271_v17, %v1270_v15 }
  0x86   : > { %v1282_v54 = vshll.u32 %v5826_v57, %v1267_v26  ;;  %v1283_v46 = vshrl.u32 %v8779_v3, %v1268_v60  ;;  %v6282_v43 = vpop.eup %5225  ;;  %v1125_v62 = vand.u32 2147483647, %v1124_v33  ;;  %vm839_vm14 = vcmp.lt.s32.totalorder %v6000_v0, 0 }
  0x87   : > { %v903_v45 = vsub.s32 0, %v6275_v42  ;;  %v1275_v63 = vor.u32 %v1274_v20, %v1273_v19  ;;  %v1281_v4 = vor.u32 %v1280_v32, %v1279_v25  ;;  %v6286_v5 = vpop.eup %5227  ;;  %v8764_v41 = vxor.u32 2147483648, %v6282_v43 }
  0x88   : > { %v923_v39 = vsub.s32 4, %v6263_v13  ;;  %v1278_v49 = vor.u32 %v1277_v29, %v1276_v28  ;;  %vm1288_vm15 = vcmp.lt.s32.totalorder %v1266_v27, 4  ;;  %v8765_v26 = vxor.u32 2147483648, %v6286_v5 }
  0x89   : > { %v1128_v60 = vmul.f32 %v1127_v47, %v1125_v62  ;;  %v5041_v24 = vmin.u32 %v903_v45, %v6275_v42  ;;  %vm1285_vm0 = vcmp.lt.s32.totalorder %v1266_v27, 1  ;;  %v730_v44 = vsel %vm728_vm11, %v8764_v41, %v6286_v5 }
  0x8a   : > { %v1284_v8 = vor.u32 %v1283_v46, %v1282_v54  ;;  %vm1287_vm1 = vcmp.lt.s32.totalorder %v1266_v27, 3  ;;  %v1290_v11 = vsel %vm1288_vm15, %v1278_v49, 2102212464  ;;  %v727_v12 = vsel %vm725_vm10, %v6282_v43, %v8765_v26 }
  0x8b   : > { %v1129_v16 = vxor.u32 2147483648, %v1128_v60  ;;  %vm6305_vm2 = vcmp.le.f32.partialorder %v837_v38, 0.7853982  ;;  %v905_v17 = vclz %v5041_v24  ;;  %v1294_v19 = vsel %vm1288_vm15, %v1281_v4, 920167782 }
  0x8c   : > { %v731_v20 = vsel %vm724_vm12, %v727_v12, %v730_v44  ;;  %vm1286_vm3 = vcmp.lt.s32.totalorder %v1266_v27, 2  ;;  %v1289_v21 = vsel %vm1285_vm0, %v1269_v58, %v1272_v59  ;;  %v1293_v23 = vsel %vm1285_vm0, %v1272_v59, %v1275_v63 }
  0x8d   : > { %v6316_v22 = vsel %vm721_vm13, nan, %v731_v20  ;;  %v1130_v38 = vsel %vm1047_vm5, %v1129_v16, %v1128_v60  ;;  %v5042_v25 = vadd.s32 4294967294, %v905_v17  ;;  %v1291_v28 = vsel %vm1287_vm1, %v1275_v63, %v1290_v11 }
  0x8e   : > { %v1133_v2 = vsel %vm6226_vm6, %v5997_v61, %v1130_v38  ;;  %2222 = vst [vmem:[#allocation2 + $0x48] sm:$0xff] %v6316_v22  ;;  %v1295_v29 = vsel %vm1287_vm1, %v1278_v49, %v1294_v19  ;;  %v1297_v32 = vsel %vm1285_vm0, %v1275_v63, %v1278_v49  ;;  %v1298_v33 = vsel %vm1288_vm15, %v1284_v8, 1326507024 }
  0x8f   : > { %5229 = vcosq.f32 %v1133_v2  ;;  %vm5043_vm4 = vcmp.lt.s32.totalorder %v5042_v25, 0  ;;  %v1296_v47 = vsel %vm1286_vm3, %v1293_v23, %v1295_v29  ;;  %v1299_v58 = vsel %vm1287_vm1, %v1281_v4, %v1298_v33 }
  0x90   : > { %5231 = vsinq.f32 %v1133_v2  ;;  %v908_v59 = vsel %vm5043_vm4, 0, %v5042_v25  ;;  %v924_v40 = vsel %vm839_vm14, %v923_v39, %v6263_v13  ;;  %v1300_v54 = vsel %vm1286_vm3, %v1297_v32, %v1299_v58 }
  0x91   : > { %v909_v46 = vsub.s32 32, %v908_v59  ;;  %v910_v62 = vshll.u32 %v6275_v42, %v908_v59  ;;  %v913_v45 = vsub.s32 4294967266, %v908_v59  ;;  %v1292_v63 = vsel %vm1286_vm3, %v1289_v21, %v1291_v28 }
  0x92   : > { %v6337_v49 = vmul.u32.u64.low %v6277_v52, %v1300_v54  ;;  %v6338_v60 = vmul.u32.u64.high %v6277_v52, %v1300_v54, %v6337_v49  ;;  %v6341_v4 = vmul.u32.u64.low %v6277_v52, %v1296_v47  ;;  %v6342_v24 = vmul.u32.u64.high %v6277_v52, %v1296_v47, %v6341_v4  ;;  %v6381_v54 = vld [vmem:[%s6145_s27 + $0x8] sm:$0x77] }
  0x93   : > { %v911_v44 = vshrl.u32 %v6260_v9, %v909_v46  ;;  %v914_v13 = vadd.s32 127, %v913_v45  ;;  %v525_v39 = vand.u32 2147483647, %v6012_v14  ;;  %vm536_vm5 = vcmp.gt.s32.totalorder %v6215_v30, 0  ;;  %8822 = vst [vmem:[#allocation5_spill] sm:$0xff] %v6381_v54 }
  0x94   : > { %vm1137_vm6 = vweird.f32 %v5997_v61  ;;  %vm1140_vm7 = vcmp.lt.s32.totalorder %v6257_v36, 2  ;;  %v6352_v27 = vsel %vm6305_vm2, 0, %v924_v40  ;;  %v537_v42 = vsel %vm536_vm5, %v6215_v30, 0  ;;  %2683 = vst [vmem:[#allocation2 + $0x150] sm:$0x7] %v6381_v54 }
  0x95   : > { %vm1141_vm8 = vcmp.eq.s32.totalorder %v6257_v36, 0  ;;  %v912_v8 = vor.u32 %v911_v44, %v910_v62  ;;  %v915_v11 = vshll.u32 %v914_v13, 23  ;;  %v1308_v9 = vmul.u32 %v6277_v52, %v1292_v63 }
  0x96   : > { %vm1144_vm9 = vcmp.eq.s32.totalorder %v6257_v36, 2  ;;  %vm1310_vm10 = vc.u32 %v6338_v60, %v6341_v4  ;;  %v1311_v12 = vadd.s32 1, %v6342_v24  ;;  %v539_v16 = vand.u32 31, %v537_v42 }
  0x97   : > { %v916_v17 = vor.u32 4788187, %v915_v11  ;;  %v919_v19 = vcvt.s32.f32 %v912_v8  ;;  %v930_v20 = vadd.s32 3, %v6352_v27  ;;  %v6364_v30 = vand.u32 8388607, %v525_v39 }
  0x98   : > { %v1312_v21 = vsel %vm1310_vm10, %v1311_v12, %v6342_v24  ;;  %v6367_v52 = vshrl.u32 %v537_v42, 5  ;;  %v540_v23 = vsub.s32 32, %v539_v16  ;;  %v542_v38 = vshll.u32 %v8775_v48, %v539_v16 }
  0x99   : > { %v6370_v25 = vpop.eup %5229  ;;  %v917_v28 = vand.u32 2147483647, %v916_v17  ;;  %v1313_v2 = vadd.s32 %v1312_v21, %v1308_v9  ;;  %v545_v29 = vshll.u32 %v8772_v50, %v539_v16  ;;  %v548_v32 = vshll.u32 %v8769_v53, %v539_v16 }
  0x9a   : > { %v6374_v33 = vpop.eup %5231  ;;  %v8761_v47 = vxor.u32 2147483648, %v6370_v25  ;;  %v543_v58 = vshrl.u32 %v8772_v50, %v540_v23  ;;  %v546_v59 = vshrl.u32 %v8769_v53, %v540_v23  ;;  %v551_v40 = vshll.u32 %v8767_v55, %v539_v16 }
  0x9b   : > { %v8763_v46 = vxor.u32 2147483648, %v6374_v33  ;;  %v920_v62 = vmul.f32 %v919_v19, %v917_v28  ;;  %vm1255_vm11 = vcmp.lt.s32.totalorder %v6008_v10, 0  ;;  %v1314_v45 = vadd.s32 536870912, %v1313_v2 }
  0x9c   : > { %v549_v63 = vshrl.u32 %v8767_v55, %v540_v23  ;;  %v1146_v49 = vsel %vm1144_vm9, %v8761_v47, %v6374_v33  ;;  %v544_v24 = vor.u32 %v543_v58, %v542_v38  ;;  %v552_v44 = vshrl.u32 %v5826_v57, %v540_v23  ;;  %v6502_v47 = vld [vmem:[#allocation2] sm:$0xff] }
  0x9d   : > { %vm557_vm12 = vcmp.lt.s32.totalorder %v6367_v52, 1  ;;  %v1143_v13 = vsel %vm1141_vm8, %v6370_v25, %v8763_v46  ;;  %v921_v42 = vxor.u32 2147483648, %v920_v62  ;;  %v1315_v8 = vshrl.u32 %v1314_v45, 30 }
  0x9e   : > { %v547_v11 = vor.u32 %v546_v59, %v545_v29  ;;  %v1147_v9 = vsel %vm1140_vm7, %v1143_v13, %v1146_v49  ;;  %v550_v12 = vor.u32 %v549_v63, %v548_v32  ;;  %v554_v17 = vshll.u32 %v5826_v57, %v539_v16 }
  0x9f   : > { %v555_v19 = vshrl.u32 %v8779_v3, %v540_v23  ;;  %v6405_v21 = vsel %vm1137_vm6, nan, %v1147_v9  ;;  %v922_v38 = vsel %vm839_vm14, %v921_v42, %v920_v62  ;;  %v1316_v28 = vshll.u32 %v1315_v8, 30 }
  0xa0   : > { %v553_v58 = vor.u32 %v552_v44, %v551_v40  ;;  %2226 = vst [vmem:[#allocation2 + $0x68] sm:$0xf] %v6405_v21  ;;  %v925_v36 = vsel %vm6305_vm2, %v6000_v0, %v922_v38  ;;  %v1339_v29 = vsub.s32 4, %v1315_v8  ;;  %vm560_vm15 = vcmp.lt.s32.totalorder %v6367_v52, 4 }
  0xa1   : > { %v556_v32 = vor.u32 %v555_v19, %v554_v17  ;;  %5233 = vcosq.f32 %v925_v36  ;;  %v6414_v16 = vsub.s32 %v1313_v2, %v1316_v28  ;;  %v541_v59 = vshrl.u32 %v8775_v48, %v540_v23 }
  0xa2   : > { %vm559_vm0 = vcmp.lt.s32.totalorder %v6367_v52, 3  ;;  %5235 = vsinq.f32 %v925_v36  ;;  %v931_v62 = vand.u32 3, %v930_v20  ;;  %v533_v40 = vor.u32 8388608, %v6364_v30 }
  0xa3   : > { %vm558_vm14 = vcmp.lt.s32.totalorder %v6367_v52, 2  ;;  %v1319_v15 = vsub.s32 0, %v6414_v16  ;;  %v562_v45 = vsel %vm560_vm15, %v550_v12, 2102212464  ;;  %v565_v63 = vsel %vm557_vm12, %v544_v24, %v547_v11 }
  0xa4   : > { %v566_v2 = vsel %vm560_vm15, %v553_v58, 920167782  ;;  %v1340_v23 = vsel %vm1255_vm11, %v1339_v29, %v1315_v8  ;;  %v569_v30 = vsel %vm557_vm12, %v547_v11, %v550_v12  ;;  %v570_v49 = vsel %vm560_vm15, %v556_v32, 1326507024 }
  0xa5   : > { %v567_v20 = vsel %vm559_vm0, %v550_v12, %v566_v2  ;;  %vm6437_vm1 = vcmp.le.f32.partialorder %v1253_v56, 0.7853982  ;;  %v5057_v13 = vmin.u32 %v1319_v15, %v6414_v16  ;;  %v561_v42 = vsel %vm557_vm12, %v541_v59, %v544_v24 }
  0xa6   : > { %v571_v8 = vsel %vm559_vm0, %v553_v58, %v570_v49  ;;  %v563_v9 = vsel %vm559_vm0, %v547_v11, %v562_v45  ;;  %v568_v12 = vsel %vm558_vm14, %v565_v63, %v567_v20  ;;  %v573_v17 = vshll.u32 %v533_v40, 8 }
  0xa7   : > { %v572_v56 = vsel %vm558_vm14, %v569_v30, %v571_v8  ;;  %v2738_v19 = vld [vmem:[#allocation2 + $0x68] sm:$0xff]  ;;  %vm929_vm2 = vweird.f32 %v6000_v0  ;;  %v1321_v38 = vclz %v5057_v13  ;;  %v6455_v24 = vsel %vm6437_vm1, 0, %v1340_v23 }
  0xa8   : > { %v8766_v28 = vand.u32 2147483647, %v6016_v18  ;;  %v2794_v58 = vpack.c.bf16 %v2738_v19, %v6316_v22  ;;  %vm932_vm3 = vcmp.lt.s32.totalorder %v931_v62, 2  ;;  %v564_v32 = vsel %vm558_vm14, %v561_v42, %v563_v9 }
  0xa9   : > { %v6459_v11 = vmul.u32.u64.low %v573_v17, %v572_v56  ;;  %v6460_v36 = vmul.u32.u64.high %v573_v17, %v572_v56, %v6459_v11  ;;  %v5058_v29 = vadd.s32 4294967294, %v1321_v38  ;;  %vm933_vm4 = vcmp.eq.s32.totalorder %v931_v62, 0 }
  0xaa   : > { %v6464_v59 = vmul.u32.u64.low %v573_v17, %v568_v12  ;;  %v6465_v40 = vmul.u32.u64.high %v573_v17, %v568_v12, %v6464_v59  ;;  %2983 = vmatprep.subr.bf16.mxu0 %v2794_v58  ;;  %vm936_vm5 = vcmp.eq.s32.totalorder %v931_v62, 2  ;;  %v1346_v15 = vadd.s32 3, %v6455_v24 }
  0xab   : > { %vm952_vm7 = vcmp.gt.s32.totalorder %v6218_v31, 0  ;;  %v6470_v45 = vpop.eup %5233  ;;  %v1309_v63 = vadd.s32 %v6341_v4, %v6338_v60  ;;  %vm5059_vm8 = vcmp.lt.s32.totalorder %v5058_v29, 0  ;;  %v948_v52 = vand.u32 8388607, %v8766_v28 }
  0xac   : > { %v953_v2 = vsel %vm952_vm7, %v6218_v31, 0  ;;  %v6477_v23 = vpop.eup %5235  ;;  %v8760_v20 = vxor.u32 2147483648, %v6470_v45  ;;  %v1324_v30 = vsel %vm5059_vm8, 0, %v5058_v29  ;;  %v580_v49 = vmul.u32 %v573_v17, %v564_v32 }
  0xad   : > { %vm582_vm9 = vc.u32 %v6460_v36, %v6464_v59  ;;  %v8762_v13 = vxor.u32 2147483648, %v6477_v23  ;;  %v1325_v42 = vsub.s32 32, %v1324_v30  ;;  %v1326_v60 = vshll.u32 %v6414_v16, %v1324_v30 }
  0xae   : > { %v1329_v4 = vsub.s32 4294967266, %v1324_v30  ;;  %v938_v31 = vsel %vm936_vm5, %v8760_v20, %v6477_v23  ;;  %v6488_v8 = vand.u32 3, %v1346_v15  ;;  %v583_v9 = vadd.s32 1, %v6465_v40 }
  0xaf   : > { %v955_v12 = vand.u32 31, %v953_v2  ;;  %v935_v56 = vsel %vm933_vm4, %v6470_v45, %v8762_v13  ;;  %v1327_v17 = vshrl.u32 %v1309_v63, %v1325_v42  ;;  %v949_v38 = vor.u32 8388608, %v948_v52 }
  0xb0   : > { %v1330_v19 = vadd.s32 127, %v1329_v4  ;;  %v939_v16 = vsel %vm932_vm3, %v935_v56, %v938_v31  ;;  %v584_v58 = vsel %vm582_vm9, %v583_v9, %v6465_v40  ;;  %vm527_vm10 = vcmp.lt.s32.totalorder %v6502_v47, 0 }
  0xb1   : > { %v956_v11 = vsub.s32 32, %v955_v12  ;;  %v958_v29 = vshll.u32 %v8775_v48, %v955_v12  ;;  %v6500_v32 = vsel %vm929_vm2, nan, %v939_v16  ;;  %v1328_v15 = vor.u32 %v1327_v17, %v1326_v60 }
  0xb2   : > { %v1331_v30 = vshll.u32 %v1330_v19, 23  ;;  %v585_v20 = vadd.s32 %v584_v58, %v580_v49  ;;  %v954_v63 = vshrl.u32 %v953_v2, 5  ;;  %v961_v52 = vshll.u32 %v8772_v50, %v955_v12 }
  0xb3   : > { %v959_v62 = vshrl.u32 %v8772_v50, %v956_v11  ;;  %v962_v40 = vshrl.u32 %v8769_v53, %v956_v11  ;;  %v1335_v4 = vcvt.s32.f32 %v1328_v15  ;;  %v964_v9 = vshll.u32 %v8769_v53, %v955_v12 }
  0xb4   : > { %v1332_v42 = vor.u32 4788187, %v1331_v30  ;;  %v586_v31 = vadd.s32 536870912, %v585_v20  ;;  %v957_v60 = vshrl.u32 %v8775_v48, %v956_v11  ;;  %v965_v49 = vshrl.u32 %v8767_v55, %v956_v11 }
  0xb5   : > { %v960_v56 = vor.u32 %v959_v62, %v958_v29  ;;  %v967_v17 = vshll.u32 %v8767_v55, %v955_v12  ;;  %v968_v16 = vshrl.u32 %v5826_v57, %v956_v11  ;;  %v970_v58 = vshll.u32 %v5826_v57, %v955_v12  ;;  %v6517_v55 = vld [vmem:[#allocation2 + $0x10] sm:$0xff] }
  0xb6   : > { %v1333_v19 = vand.u32 2147483647, %v1332_v42  ;;  %v587_v2 = vshrl.u32 %v586_v31, 30  ;;  %v963_v13 = vor.u32 %v962_v40, %v961_v52  ;;  %v966_v46 = vor.u32 %v965_v49, %v964_v9 }
  0xb7   : > { %v971_v15 = vshrl.u32 %v8779_v3, %v956_v11  ;;  %vm973_vm12 = vcmp.lt.s32.totalorder %v954_v63, 1  ;;  %v969_v28 = vor.u32 %v968_v16, %v967_v17  ;;  %vm976_vm15 = vcmp.lt.s32.totalorder %v954_v63, 4 }
  0xb8   : > { %v1336_v30 = vmul.f32 %v1335_v4, %v1333_v19  ;;  %v588_v41 = vshll.u32 %v587_v2, 30  ;;  %v611_v26 = vsub.s32 4, %v587_v2  ;;  %v6515_v62 = vshll.u32 %v949_v38, 8 }
  0xb9   : > { %v972_v29 = vor.u32 %v971_v15, %v970_v58  ;;  %v8771_v42 = vand.u32 2147483647, %v6517_v55  ;;  %vm975_vm0 = vcmp.lt.s32.totalorder %v954_v63, 3  ;;  %v978_v12 = vsel %vm976_vm15, %v966_v46, 2102212464 }
  0xba   : > { %v1337_v31 = vxor.u32 2147483648, %v1336_v30  ;;  %v6520_v53 = vsub.s32 %v585_v20, %v588_v41  ;;  %vm974_vm14 = vcmp.lt.s32.totalorder %v954_v63, 2  ;;  %v981_v11 = vsel %vm973_vm12, %v960_v56, %v963_v13 }
  0xbb   : > { %v982_v52 = vsel %vm976_vm15, %v969_v28, 920167782  ;;  %vm744_vm3 = vcmp.gt.s32.totalorder %v6222_v37, 0  ;;  %v612_v4 = vsel %vm527_vm10, %v611_v26, %v587_v2  ;;  %v977_v41 = vsel %vm973_vm12, %v957_v60, %v960_v56 }
  0xbc   : > { %v1338_v38 = vsel %vm1255_vm11, %v1337_v31, %v1336_v30  ;;  %v591_v40 = vsub.s32 0, %v6520_v53  ;;  %v979_v9 = vsel %vm975_vm0, %v963_v13, %v978_v12  ;;  %v983_v49 = vsel %vm975_vm0, %v966_v46, %v982_v52 }
  0xbd   : > { %v1341_v20 = vsel %vm6437_vm1, %v6008_v10, %v1338_v38  ;;  %v986_v17 = vsel %vm976_vm15, %v972_v29, 1326507024  ;;  %v984_v16 = vsel %vm974_vm14, %v981_v11, %v983_v49  ;;  %v985_v58 = vsel %vm973_vm12, %v963_v13, %v966_v46 }
  0xbe   : > { %5237 = vcosq.f32 %v1341_v20  ;;  %v5029_v19 = vmin.u32 %v591_v40, %v6520_v53  ;;  %v987_v26 = vsel %vm975_vm0, %v969_v28, %v986_v17  ;;  %v6548_v56 = vadd.s32 1, %v6252_v6 }
  0xbf   : > { %5239 = vsinq.f32 %v1341_v20  ;;  %v6543_v60 = vmul.u32.u64.low %v6515_v62, %v984_v16  ;;  %v6544_v44 = vmul.u32.u64.high %v6515_v62, %v984_v16, %v6543_v60  ;;  %vm6552_vm11 = vcmp.le.f32.partialorder %v525_v39, 0.7853982 }
  0xc0   : > { %v593_v15 = vclz %v5029_v19  ;;  %v6558_v46 = vsel %vm6552_vm11, 0, %v612_v4  ;;  %v980_v28 = vsel %vm974_vm14, %v977_v41, %v979_v9  ;;  %v988_v13 = vsel %vm974_vm14, %v985_v58, %v987_v26 }
  0xc1   : > { %v745_v6 = vsel %vm744_vm3, %v6222_v37, 0  ;;  %vm1348_vm1 = vcmp.lt.s32.totalorder %v6488_v8, 2  ;;  %vm1349_vm4 = vcmp.eq.s32.totalorder %v6488_v8, 0  ;;  %vm1345_vm5 = vweird.f32 %v6008_v10 }
  0xc2   : > { %v5030_v14 = vadd.s32 4294967294, %v593_v15  ;;  %v6568_v39 = vmul.u32.u64.low %v6515_v62, %v988_v13  ;;  %v6569_v30 = vmul.u32.u64.high %v6515_v62, %v988_v13, %v6568_v39  ;;  %vm1352_vm7 = vcmp.eq.s32.totalorder %v6488_v8, 2 }
  0xc3   : > { %v581_v63 = vadd.s32 %v6464_v59, %v6460_v36  ;;  %v6577_v29 = vand.u32 8388607, %v8771_v42  ;;  %v747_v37 = vand.u32 31, %v745_v6  ;;  %v618_v31 = vadd.s32 3, %v6558_v46 }
  0xc4   : > { %vm5031_vm8 = vcmp.lt.s32.totalorder %v5030_v14, 0  ;;  %v996_v12 = vmul.u32 %v6515_v62, %v980_v28  ;;  %v999_v11 = vadd.s32 1, %v6544_v44  ;;  %v6585_v20 = vshrl.u32 %v745_v6, 5 }
  0xc5   : > { %v596_v52 = vsel %vm5031_vm8, 0, %v5030_v14  ;;  %v748_v38 = vsub.s32 32, %v747_v37  ;;  %v750_v40 = vshll.u32 %v8775_v48, %v747_v37  ;;  %v753_v4 = vshll.u32 %v8772_v50, %v747_v37 }
  0xc6   : > { %v597_v41 = vsub.s32 32, %v596_v52  ;;  %v598_v36 = vshll.u32 %v6520_v53, %v596_v52  ;;  %v601_v59 = vsub.s32 4294967266, %v596_v52  ;;  %vm998_vm9 = vc.u32 %v6569_v30, %v6543_v60 }
  0xc7   : > { %v741_v9 = vor.u32 8388608, %v6577_v29  ;;  %v751_v62 = vshrl.u32 %v8772_v50, %v748_v38  ;;  %v8827_v49 = vmov 2131351028   ;;  %v1000_v26 = vsel %vm998_vm9, %v999_v11, %v6544_v44 }
  0xc8   : > { %v754_v17 = vshrl.u32 %v8827_v49, %v748_v38  ;;  %v6592_v19 = vpop.eup %5237  ;;  %v599_v16 = vshrl.u32 %v581_v63, %v597_v41  ;;  %v602_v58 = vadd.s32 127, %v601_v59  ;;  %v756_v53 = vshll.u32 %v8827_v49, %v747_v37 }
  0xc9   : > { %v6596_v15 = vpop.eup %5239  ;;  %v8774_v28 = vxor.u32 2147483648, %v6592_v19  ;;  %v1001_v13 = vadd.s32 %v1000_v26, %v996_v12  ;;  %v752_v6 = vor.u32 %v751_v62, %v750_v40  ;;  %v8828_v42 = vmov 2102212464  }
  0xca   : > { %v755_v14 = vor.u32 %v754_v17, %v753_v4  ;;  %v8778_v39 = vxor.u32 2147483648, %v6596_v15  ;;  %v600_v29 = vor.u32 %v599_v16, %v598_v36  ;;  %v603_v52 = vshll.u32 %v602_v58, 23 }
  0xcb   : > { %v757_v50 = vshrl.u32 %v8828_v42, %v748_v38  ;;  %v1354_v44 = vsel %vm1352_vm7, %v8774_v28, %v6596_v15  ;;  %vm943_vm12 = vcmp.lt.s32.totalorder %v6016_v18, 0  ;;  %v1002_v63 = vadd.s32 536870912, %v1001_v13 }
  0xcc   : > { %v759_v11 = vshll.u32 %v8828_v42, %v747_v37  ;;  %v760_v12 = vshrl.u32 %v5826_v57, %v748_v38  ;;  %v1351_v40 = vsel %vm1349_vm4, %v6592_v19, %v8778_v39  ;;  %v604_v4 = vor.u32 4788187, %v603_v52 }
  0xcd   : > { %v607_v41 = vcvt.s32.f32 %v600_v29  ;;  %v758_v36 = vor.u32 %v757_v50, %v756_v53  ;;  %v1355_v59 = vsel %vm1348_vm1, %v1351_v40, %v1354_v44  ;;  %v1003_v62 = vshrl.u32 %v1002_v63, 30 }
  0xce   : > { %v761_v17 = vor.u32 %v760_v12, %v759_v11  ;;  %v762_v16 = vshll.u32 %v5826_v57, %v747_v37  ;;  %v6619_v58 = vsel %vm1345_vm5, nan, %v1355_v59  ;;  %v605_v26 = vand.u32 2147483647, %v604_v4 }
  0xcf   : > { %v8829_v28 = vand.u32 2147483647, %v6016_v18  ;;  %v763_v50 = vshrl.u32 %v8779_v3, %v748_v38  ;;  %vm768_vm0 = vcmp.lt.s32.totalorder %v6585_v20, 4  ;;  %2228 = vst [vmem:[#allocation2 + $0x78] sm:$0xf] %v6619_v58  ;;  %v1004_v8 = vshll.u32 %v1003_v62, 30 }
  0xd0   : > { %v8832_v53 = vmov 683565275   ;;  %vm765_vm14 = vcmp.lt.s32.totalorder %v6585_v20, 1  ;;  %vm767_vm3 = vcmp.lt.s32.totalorder %v6585_v20, 3  ;;  %v608_v29 = vmul.f32 %v607_v41, %v605_v26 }
  0xd1   : > { %vm6623_vm15 = vcmp.le.f32.partialorder %v8829_v28, 0.7853982  ;;  %v749_v37 = vshrl.u32 %v8832_v53, %v748_v38  ;;  %v1027_v52 = vsub.s32 4, %v1003_v62  ;;  %v764_v44 = vor.u32 %v763_v50, %v762_v16 }
  0xd2   : > { %v770_v28 = vsel %vm768_vm0, %v758_v36, 2102212464  ;;  %v6635_v63 = vand.u32 3, %v618_v31  ;;  %v6637_v11 = vsub.s32 %v1001_v13, %v1004_v8  ;;  %vm766_vm1 = vcmp.lt.s32.totalorder %v6585_v20, 2 }
  0xd3   : > { %v774_v12 = vsel %vm768_vm0, %v761_v17, 920167782  ;;  %v609_v38 = vxor.u32 2147483648, %v608_v29  ;;  %v773_v40 = vsel %vm765_vm14, %v752_v6, %v755_v14  ;;  %v777_v41 = vsel %vm765_vm14, %v755_v14, %v758_v36 }
  0xd4   : > { %v775_v4 = vsel %vm767_vm3, %v758_v36, %v774_v12  ;;  %v1007_v59 = vsub.s32 0, %v6637_v11  ;;  %v769_v16 = vsel %vm765_vm14, %v749_v37, %v752_v6  ;;  %v771_v31 = vsel %vm767_vm3, %v755_v14, %v770_v28 }
  0xd5   : > { %v778_v13 = vsel %vm768_vm0, %v764_v44, 1326507024  ;;  %v610_v26 = vsel %vm527_vm10, %v609_v38, %v608_v29  ;;  %v1028_v50 = vsel %vm943_vm12, %v1027_v52, %v1003_v62  ;;  %v781_v12 = vshll.u32 %v741_v9, 8 }
  0xd6   : > { %v779_v8 = vsel %vm767_vm3, %v761_v17, %v778_v13  ;;  %v613_v6 = vsel %vm6552_vm11, %v6502_v47, %v610_v26  ;;  %v5045_v36 = vmin.u32 %v1007_v59, %v6637_v11  ;;  %v776_v14 = vsel %vm766_vm1, %v773_v40, %v775_v4  ;;  %v2740_v29 = vld [vmem:[#allocation2 + $0x78] sm:$0xff] }
  0xd7   : > { %v780_v37 = vsel %vm766_vm1, %v777_v41, %v779_v8  ;;  %5241 = vcosq.f32 %v613_v6  ;;  %v8777_v17 = vand.u32 2147483647, %v6029_v34  ;;  %v2796_v9 = vpack.c.bf16 %v2740_v29, %v6500_v32 }
  0xd8   : > { %v6663_v44 = vmul.u32.u64.low %v781_v12, %v780_v37  ;;  %v6664_v62 = vmul.u32.u64.high %v781_v12, %v780_v37, %v6663_v44  ;;  %5243 = vsinq.f32 %v613_v6  ;;  %v1009_v2 = vclz %v5045_v36 }
  0xd9   : > { %v6670_v52 = vsel %vm6623_vm15, 0, %v1028_v50  ;;  %v772_v28 = vsel %vm766_vm1, %v769_v16, %v771_v31  ;;  %v6674_v38 = vmul.u32.u64.low %v781_v12, %v776_v14  ;;  %v6675_v40 = vmul.u32.u64.high %v781_v12, %v776_v14, %v6674_v38  ;;  %3096 = vmatprep.subr.bf16.mxu1 %v2796_v9 }
  0xda   : > { %8833 = vst [vmem:[#allocation6_spill] sm:$0xff] %v6670_v52  ;;  %v5046_v4 = vadd.s32 4294967294, %v1009_v2  ;;  %vm620_vm10 = vcmp.lt.s32.totalorder %v6635_v63, 2  ;;  %v997_v41 = vadd.s32 %v6543_v60, %v6569_v30  ;;  %v1034_v59 = vadd.s32 3, %v6670_v52 }
  0xdb   : > { %v1156_v13 = vand.u32 8388607, %v8777_v17  ;;  %vm1160_vm11 = vcmp.gt.s32.totalorder %v6548_v56, 0  ;;  %vm617_vm4 = vweird.f32 %v6502_v47  ;;  %v788_v20 = vmul.u32 %v781_v12, %v772_v28 }
  0xdc   : > { %vm5047_vm7 = vcmp.lt.s32.totalorder %v5046_v4, 0  ;;  %vm790_vm8 = vc.u32 %v6664_v62, %v6674_v38  ;;  %v1161_v16 = vsel %vm1160_vm11, %v6548_v56, 0  ;;  %vm621_vm9 = vcmp.eq.s32.totalorder %v6635_v63, 0 }
  0xdd   : > { %v1012_v31 = vsel %vm5047_vm7, 0, %v5046_v4  ;;  %v791_v60 = vadd.s32 1, %v6675_v40  ;;  %v1163_v30 = vand.u32 31, %v1161_v16  ;;  %vm624_vm0 = vcmp.eq.s32.totalorder %v6635_v63, 2 }
  0xde   : > { %v1013_v26 = vsub.s32 32, %v1012_v31  ;;  %v1014_v50 = vshll.u32 %v6637_v11, %v1012_v31  ;;  %v1017_v8 = vsub.s32 4294967266, %v1012_v31  ;;  %v6693_v6 = vand.u32 3, %v1034_v59 }
  0xdf   : > { %v792_v12 = vsel %vm790_vm8, %v791_v60, %v6675_v40  ;;  %v1157_v36 = vor.u32 8388608, %v1156_v13  ;;  %v1164_v14 = vsub.s32 32, %v1163_v30  ;;  %v6697_v44 = vand.u32 3, %v6154_v35 }
  0xe0   : > { %v1015_v37 = vshrl.u32 %v997_v41, %v1013_v26  ;;  %v1018_v56 = vadd.s32 127, %v1017_v8  ;;  %v793_v29 = vadd.s32 %v792_v12, %v788_v20  ;;  %v6701_v2 = vshrl.u32 %v1161_v16, 5 }
  0xe1   : > { %v6699_v9 = vpop.eup %5241  ;;  %v1166_v28 = vshll.u32 %v8832_v53, %v1163_v30  ;;  %v8834_v11 = vmov 2475754826   ;;  %v1172_v59 = vshll.u32 %v8827_v49, %v1163_v30  ;;  %v1170_v16 = vshrl.u32 %v8827_v49, %v1164_v14 }
  0xe2   : > { %v1169_v4 = vshll.u32 %v8834_v11, %v1163_v30  ;;  %v6706_v31 = vpop.eup %5243  ;;  %v8781_v40 = vxor.u32 2147483648, %v6699_v9  ;;  %v1016_v41 = vor.u32 %v1015_v37, %v1014_v50  ;;  %v1019_v13 = vshll.u32 %v1018_v56, 23 }
  0xe3   : > { %v794_v20 = vadd.s32 536870912, %v793_v29  ;;  %v8783_v35 = vxor.u32 2147483648, %v6706_v31  ;;  %v1167_v60 = vshrl.u32 %v8834_v11, %v1164_v14  ;;  %v1173_v26 = vshrl.u32 %v8828_v42, %v1164_v14 }
  0xe4   : > { %v626_v8 = vsel %vm624_vm0, %v8781_v40, %v6706_v31  ;;  %v1020_v12 = vor.u32 4788187, %v1019_v13  ;;  %v1023_v17 = vcvt.s32.f32 %v1016_v41  ;;  %vm735_vm14 = vcmp.lt.s32.totalorder %v6517_v55, 0 }
  0xe5   : > { %v795_v39 = vshrl.u32 %v794_v20, 30  ;;  %v623_v50 = vsel %vm621_vm9, %v6699_v9, %v8783_v35  ;;  %v1175_v37 = vshll.u32 %v8828_v42, %v1163_v30  ;;  %v1176_v56 = vshrl.u32 %v5826_v57, %v1164_v14 }
  0xe6   : > { %v1178_v3 = vshll.u32 %v5826_v57, %v1163_v30  ;;  %v627_v40 = vsel %vm620_vm10, %v623_v50, %v626_v8  ;;  %v1021_v13 = vand.u32 2147483647, %v1020_v12  ;;  %v6729_v20 = vshll.u32 %v1157_v36, 8 }
  0xe7   : > { %v796_v41 = vshll.u32 %v795_v39, 30  ;;  %v6733_v49 = vsel %vm617_vm4, nan, %v627_v40  ;;  %v1165_v35 = vshrl.u32 %v8832_v53, %v1164_v14  ;;  %v1177_v11 = vor.u32 %v1176_v56, %v1175_v37 }
  0xe8   : > { %v8835_v54 = vmov 1326507024   ;;  %v1024_v7 = vmul.f32 %v1023_v17, %v1021_v13  ;;  %v8836_v52 = vand.u32 2147483647, %v6517_v55  ;;  %v1168_v36 = vor.u32 %v1167_v60, %v1166_v28 }
  0xe9   : > { %v1179_v42 = vshrl.u32 %v8835_v54, %v1164_v14  ;;  %v6743_v63 = vsub.s32 %v793_v29, %v796_v41  ;;  %v1171_v8 = vor.u32 %v1170_v16, %v1169_v4  ;;  %v1174_v12 = vor.u32 %v1173_v26, %v1172_v59 }
  0xea   : > { %vm6739_vm3 = vcmp.le.f32.partialorder %v8836_v52, 0.7853982  ;;  %vm1181_vm1 = vcmp.lt.s32.totalorder %v6701_v2, 1  ;;  %vm1184_vm10 = vcmp.lt.s32.totalorder %v6701_v2, 4  ;;  %v1025_v40 = vxor.u32 2147483648, %v1024_v7 }
  0xeb   : > { %v1180_v50 = vor.u32 %v1179_v42, %v1178_v3  ;;  %v799_v14 = vsub.s32 0, %v6743_v63  ;;  %v819_v17 = vsub.s32 4, %v795_v39  ;;  %vm1183_vm11 = vcmp.lt.s32.totalorder %v6701_v2, 3 }
  0xec   : > { %vm1182_vm7 = vcmp.lt.s32.totalorder %v6701_v2, 2  ;;  %v1185_v52 = vsel %vm1181_vm1, %v1165_v35, %v1168_v36  ;;  %v1186_v29 = vsel %vm1184_vm10, %v1174_v12, 2102212464  ;;  %v1190_v3 = vsel %vm1184_vm10, %v1177_v11, 920167782 }
  0xed   : > { %v1026_v42 = vsel %vm943_vm12, %v1025_v40, %v1024_v7  ;;  %v5037_v28 = vmin.u32 %v799_v14, %v6743_v63  ;;  %v1187_v4 = vsel %vm1183_vm11, %v1171_v8, %v1186_v29  ;;  %v1189_v59 = vsel %vm1181_vm1, %v1168_v36, %v1171_v8 }
  0xee   : > { %v1029_v35 = vsel %vm6623_vm15, %v6016_v18, %v1026_v42  ;;  %v1191_v60 = vsel %vm1183_vm11, %v1174_v12, %v1190_v3  ;;  %v1193_v16 = vsel %vm1181_vm1, %v1171_v8, %v1174_v12  ;;  %v1194_v7 = vsel %vm1184_vm10, %v1180_v50, 1326507024 }
  0xef   : > { %5245 = vcosq.f32 %v1029_v35  ;;  %v789_v26 = vadd.s32 %v6674_v38, %v6664_v62  ;;  %v801_v37 = vclz %v5037_v28  ;;  %v820_v56 = vsel %vm735_vm14, %v819_v17, %v795_v39 }
  0xf0   : > { %5247 = vsinq.f32 %v1029_v35  ;;  %v1188_v48 = vsel %vm1182_vm7, %v1185_v52, %v1187_v4  ;;  %v1192_v13 = vsel %vm1182_vm7, %v1189_v59, %v1191_v60  ;;  %v1195_v41 = vsel %vm1183_vm11, %v1177_v11, %v1194_v7 }
  0xf1   : > { %vm1040_vm12 = vcmp.eq.s32.totalorder %v6693_v6, 2  ;;  %v5038_v36 = vadd.s32 4294967294, %v801_v37  ;;  %v1196_v62 = vsel %vm1182_vm7, %v1193_v16, %v1195_v41  ;;  %vm1037_vm15 = vcmp.eq.s32.totalorder %v6693_v6, 0 }
  0xf2   : > { %v6786_v38 = vmul.u32.u64.low %v6729_v20, %v1192_v13  ;;  %v6787_v8 = vmul.u32.u64.high %v6729_v20, %v1192_v13, %v6786_v38  ;;  %v6793_v39 = vsel %vm6739_vm3, 0, %v820_v56  ;;  %vm1554_vm8 = vcmp.lt.s32.totalorder %v6697_v44, 2 }
  0xf3   : > { %v6796_v12 = vmul.u32.u64.low %v6729_v20, %v1196_v62  ;;  %v6797_v11 = vmul.u32.u64.high %v6729_v20, %v1196_v62, %v6796_v12  ;;  %vm1036_vm9 = vcmp.lt.s32.totalorder %v6693_v6, 2  ;;  %vm5039_vm0 = vcmp.lt.s32.totalorder %v5038_v36, 0 }
  0xf4   : > { %vm1555_vm1 = vcmp.eq.s32.totalorder %v6697_v44, 0  ;;  %vm1558_vm10 = vcmp.eq.s32.totalorder %v6697_v44, 2  ;;  %v1965_v2 = vand.u32 3, %v6233_v1  ;;  %vm1033_vm11 = vweird.f32 %v6016_v18 }
  0xf5   : > { %v804_v50 = vsel %vm5039_vm0, 0, %v5038_v36  ;;  %v1204_v40 = vmul.u32 %v6729_v20, %v1188_v48  ;;  %v8839_v14 = vxor.u32 2147483648, %v6286_v5  ;;  %v8840_v52 = vxor.u32 2147483648, %v6282_v43 }
  0xf6   : > { %v805_v3 = vsub.s32 32, %v804_v50  ;;  %v806_v42 = vshll.u32 %v6743_v63, %v804_v50  ;;  %v809_v28 = vsub.s32 4294967266, %v804_v50  ;;  %v1207_v4 = vadd.s32 1, %v6787_v8 }
  0xf7   : > { %v1557_v17 = vsel %vm1555_vm1, %v6282_v43, %v8839_v14  ;;  %v1560_v29 = vsel %vm1558_vm10, %v8840_v52, %v6286_v5  ;;  %vm1206_vm7 = vc.u32 %v6797_v11, %v6786_v38  ;;  %vm1966_vm0 = vcmp.lt.s32.totalorder %v1965_v2, 2 }
  0xf8   : > { %v1561_v1 = vsel %vm1554_vm8, %v1557_v17, %v1560_v29  ;;  %v6819_v20 = vmul.f32 2.0, %v6316_v22  ;;  %v807_v59 = vshrl.u32 %v789_v26, %v805_v3  ;;  %v810_v35 = vadd.s32 127, %v809_v28 }
  0xf9   : > { %v1208_v43 = vsel %vm1206_vm7, %v1207_v4, %v6787_v8  ;;  %v6824_v5 = vsel %vm721_vm13, nan, %v1561_v1  ;;  %vm1967_vm1 = vcmp.eq.s32.totalorder %v1965_v2, 0  ;;  %vm1970_vm10 = vcmp.eq.s32.totalorder %v1965_v2, 2  ;;  %v6829_v44 = vpop.eup %5245 }
  0xfa   : > { %v1209_v63 = vadd.s32 %v1208_v43, %v1204_v40  ;;  %v6827_v60 = vmul.f32 2.0, %v6405_v21  ;;  %v808_v16 = vor.u32 %v807_v59, %v806_v42  ;;  %v811_v7 = vshll.u32 %v810_v35, 23  ;;  %v6837_v56 = vpop.eup %5247 }
  0xfb   : > { %v8841_v22 = vxor.u32 2147483648, %v6374_v33  ;;  %v8842_v37 = vxor.u32 2147483648, %v6370_v25  ;;  %v1041_v48 = vxor.u32 2147483648, %v6829_v44  ;;  %v6843_v36 = vmul.f32 %v6819_v20, %v6824_v5 }
  0xfc   : > { %v1210_v13 = vadd.s32 536870912, %v1209_v63  ;;  %v1038_v62 = vxor.u32 2147483648, %v6837_v56  ;;  %v812_v8 = vor.u32 4788187, %v811_v7  ;;  %v815_v12 = vcvt.s32.f32 %v808_v16 }
  0xfd   : > { %v1969_v26 = vsel %vm1967_vm1, %v6370_v25, %v8841_v22  ;;  %v1972_v51 = vsel %vm1970_vm10, %v8842_v37, %v6374_v33  ;;  %v1042_v25 = vsel %vm1040_vm12, %v1041_v48, %v6837_v56  ;;  %v1759_v40 = vand.u32 3, %v6352_v27 }
  0xfe   : > { %v1973_v41 = vsel %vm1966_vm0, %v1969_v26, %v1972_v51  ;;  %v6853_v33 = vshrl.u32 %v1210_v13, 30  ;;  %v1039_v61 = vsel %vm1037_vm15, %v6829_v44, %v1038_v62  ;;  %v813_v14 = vand.u32 2147483647, %v812_v8 }
  0xff   : > { %v1974_v50 = vsel %vm1137_vm6, nan, %v1973_v41  ;;  %v826_v17 = vadd.s32 3, %v6793_v39  ;;  %v1043_v52 = vsel %vm1036_vm9, %v1039_v61, %v1042_v25  ;;  %vm1760_vm13 = vcmp.lt.s32.totalorder %v1759_v40, 2 }
 0x100   : > { %v2194_v2 = vmul.f32 %v6827_v60, %v1974_v50  ;;  %2242 = vst [vmem:[#allocation2 + $0xe8] sm:$0xf] %v1974_v50  ;;  %v1212_v29 = vshll.u32 %v6853_v33, 30  ;;  %v2171_v3 = vand.u32 3, %v6455_v24  ;;  %v6869_v27 = vsel %vm1033_vm11, nan, %v1043_v52 }
 0x101   : > { %v816_v42 = vmul.f32 %v815_v12, %v813_v14  ;;  %vm1761_vm6 = vcmp.eq.s32.totalorder %v1759_v40, 0  ;;  %vm1764_vm12 = vcmp.eq.s32.totalorder %v1759_v40, 2  ;;  %2225 = vst [vmem:[#allocation2 + $0x60] sm:$0xf] %v6869_v27  ;;  %v8843_v6 = vxor.u32 2147483648, %v6477_v23 }
 0x102   : > { %2234 = vst [vmem:[#allocation2 + $0xa8] sm:$0xf] %v2194_v2  ;;  %v6872_v28 = vsub.s32 %v1209_v63, %v1212_v29  ;;  %v8844_v1 = vxor.u32 2147483648, %v6470_v45  ;;  %v6881_v43 = vmul.f32 2.0, %v6500_v32  ;;  %vm2172_vm15 = vcmp.lt.s32.totalorder %v2171_v3, 2 }
 0x103   : > { %v1763_v4 = vsel %vm1761_vm6, %v6470_v45, %v8843_v6  ;;  %v817_v24 = vxor.u32 2147483648, %v816_v42  ;;  %vm2173_vm8 = vcmp.eq.s32.totalorder %v2171_v3, 0  ;;  %v6890_v22 = vand.u32 3, %v826_v17 }
 0x104   : > { %v1766_v59 = vsel %vm1764_vm12, %v8844_v1, %v6477_v23  ;;  %v1215_v16 = vsub.s32 0, %v6872_v28  ;;  %v8845_v45 = vxor.u32 2147483648, %v6596_v15  ;;  %vm2176_vm9 = vcmp.eq.s32.totalorder %v2171_v3, 2 }
 0x105   : > { %v1767_v35 = vsel %vm1760_vm13, %v1763_v4, %v1766_v59  ;;  %v818_v63 = vsel %vm735_vm14, %v817_v24, %v816_v42  ;;  %v8846_v37 = vxor.u32 2147483648, %v6592_v19  ;;  %v6903_v13 = vmul.f32 2.0, %v6619_v58 }
 0x106   : > { %v6886_v7 = vsel %vm929_vm2, nan, %v1767_v35  ;;  %v2175_v23 = vsel %vm2173_vm8, %v6592_v19, %v8845_v45  ;;  %v821_v26 = vsel %vm6739_vm3, %v6517_v55, %v818_v63  ;;  %v5053_v0 = vmin.u32 %v1215_v16, %v6872_v28 }
 0x107   : > { %v2178_v51 = vsel %vm2176_vm9, %v8846_v37, %v6596_v15  ;;  %5249 = vcosq.f32 %v821_v26  ;;  %v6907_v12 = vmul.f32 %v6881_v43, %v6886_v7  ;;  %v1450_v50 = vand.u32 3, %v6558_v46 }
 0x108   : > { %v2179_v8 = vsel %vm2172_vm15, %v2175_v23, %v2178_v51  ;;  %5251 = vsinq.f32 %v821_v26  ;;  %v1217_v30 = vclz %v5053_v0  ;;  %v2737_v25 = vld [vmem:[#allocation2 + $0x60] sm:$0xff]  ;;  %v1205_v2 = vadd.s32 %v6786_v38, %v6797_v11  ;;  %v8848_v11 = vld [vmem:[#allocation6_spill] sm:$0xff] }
 0x109   : > { %v2746_v41 = vld [vmem:[#allocation2 + $0xa8] sm:$0xff]  ;;  %v2180_v15 = vsel %vm1345_vm5, nan, %v2179_v8  ;;  %vm1451_vm2 = vcmp.lt.s32.totalorder %v1450_v50, 2  ;;  %v2793_v40 = vpack.c.bf16 %v2737_v25, %v6733_v49  ;;  %vm1151_vm14 = vcmp.lt.s32.totalorder %v6029_v34, 0 }
 0x10a   : > { %v2798_v19 = vpack.c.bf16 %v2746_v41, %v6843_v36  ;;  %v5054_v61 = vadd.s32 4294967294, %v1217_v30  ;;  %v2196_v14 = vmul.f32 %v6903_v13, %v2180_v15  ;;  %2244 = vst [vmem:[#allocation2 + $0xf8] sm:$0xf] %v2180_v15  ;;  %vm1452_vm3 = vcmp.eq.s32.totalorder %v1450_v50, 0 }
 0x10b   : > { %vm828_vm7 = vcmp.lt.s32.totalorder %v6890_v22, 2  ;;  %v8847_v46 = vxor.u32 2147483648, %v6706_v31  ;;  %vm1455_vm0 = vcmp.eq.s32.totalorder %v1450_v50, 2  ;;  %v1862_v10 = vand.u32 3, %v8848_v11  ;;  %2984 = vmatpush1.bf16.msra.mxu0 %v2793_v40 }
 0x10c   : > { %v6924_v36 = vmul.f32 2.0, %v6733_v49  ;;  %vm5055_vm5 = vcmp.lt.s32.totalorder %v5054_v61, 0  ;;  %v1235_v17 = vsub.s32 4, %v6853_v33  ;;  %2236 = vst [vmem:[#allocation2 + $0xb8] sm:$0xf] %v2196_v14  ;;  %v8849_v52 = vxor.u32 2147483648, %v6699_v9  ;;  %2985 = vmatprep.subr.bf16.mxu0 %v2798_v19 }
 0x10d   : > { %v1454_v38 = vsel %vm1452_vm3, %v6699_v9, %v8847_v46  ;;  %v1656_v3 = vand.u32 3, %v6793_v39  ;;  %v1220_v42 = vsel %vm5055_vm5, 0, %v5054_v61  ;;  %vm1863_vm1 = vcmp.lt.s32.totalorder %v1862_v10, 2  ;;  %v5795_v61 = vld [vmem:[#allocation2 + $0x48] sm:$0xff] }
 0x10e   : > { %v1457_v29 = vsel %vm1455_vm0, %v8849_v52, %v6706_v31  ;;  %vm1864_vm10 = vcmp.eq.s32.totalorder %v1862_v10, 0  ;;  %v1221_v4 = vsub.s32 32, %v1220_v42  ;;  %v1222_v1 = vshll.u32 %v6872_v28, %v1220_v42 }
 0x10f   : > { %v1458_v6 = vsel %vm1451_vm2, %v1454_v38, %v1457_v29  ;;  %v1225_v59 = vsub.s32 4294967266, %v1220_v42  ;;  %v1866_v9 = vsel %vm1864_vm10, %v6829_v44, %v1038_v62  ;;  %vm1867_vm13 = vcmp.eq.s32.totalorder %v1862_v10, 2 }
 0x110   : > { %v6935_v24 = vsel %vm617_vm4, nan, %v1458_v6  ;;  %v2185_v31 = vmul.f32 2.0, %v6869_v27  ;;  %vm829_vm6 = vcmp.eq.s32.totalorder %v6890_v22, 0  ;;  %v1223_v35 = vshrl.u32 %v1205_v2, %v1221_v4 }
 0x111   : > { %v6943_v39 = vmul.f32 %v6924_v36, %v6935_v24  ;;  %v1226_v28 = vadd.s32 127, %v1225_v59  ;;  %v1869_v47 = vsel %vm1867_vm13, %v1041_v48, %v6837_v56  ;;  %v5250_v16 = vpop.eup %5249  ;;  %vm832_vm4 = vcmp.eq.s32.totalorder %v6890_v22, 2 }
 0x112   : > { %v1870_v62 = vsel %vm1863_vm1, %v1866_v9, %v1869_v47  ;;  %vm1658_vm12 = vcmp.eq.s32.totalorder %v1656_v3, 0  ;;  %vm1661_vm15 = vcmp.eq.s32.totalorder %v1656_v3, 2  ;;  %v5252_v63 = vpop.eup %5251  ;;  %v833_v45 = vxor.u32 2147483648, %v5250_v16 }
 0x113   : > { %v1224_v23 = vor.u32 %v1223_v35, %v1222_v1  ;;  %v1227_v26 = vshll.u32 %v1226_v28, 23  ;;  %v1871_v0 = vsel %vm1033_vm11, nan, %v1870_v62  ;;  %v830_v37 = vxor.u32 2147483648, %v5252_v63  ;;  %v8853_v1 = vld [vmem:[#allocation4_spill] sm:$0xff] }
 0x114   : > { %v1236_v44 = vsel %vm1151_vm14, %v1235_v17, %v6853_v33  ;;  %v2193_v56 = vmul.f32 %v2185_v31, %v1871_v0  ;;  %2241 = vst [vmem:[#allocation2 + $0xe0] sm:$0xf] %v1871_v0  ;;  %vm1657_vm8 = vcmp.lt.s32.totalorder %v1656_v3, 2  ;;  %vm825_vm9 = vweird.f32 %v6517_v55  ;;  %v2754_v17 = vld [vmem:[#allocation2 + $0xe8] sm:$0xff] }
 0x115   : > { %v834_v48 = vsel %vm832_vm4, %v833_v45, %v5252_v63  ;;  %v1228_v51 = vor.u32 4788187, %v1227_v26  ;;  %v1231_v41 = vcvt.s32.f32 %v1224_v23  ;;  %v831_v8 = vsel %vm829_vm6, %v5250_v16, %v830_v37 }
 0x116   : > { %v8850_v50 = vand.u32 2147483647, %v6029_v34  ;;  %2233 = vst [vmem:[#allocation2 + $0xa0] sm:$0xf] %v2193_v56  ;;  %v1660_v33 = vsel %vm1658_vm12, %v5250_v16, %v830_v37  ;;  %v1663_v30 = vsel %vm1661_vm15, %v833_v45, %v5252_v63  ;;  %v835_v55 = vsel %vm828_vm7, %v831_v8, %v834_v48 }
 0x117   : > { %v1229_v25 = vand.u32 2147483647, %v1228_v51  ;;  %v1664_v19 = vsel %vm1657_vm8, %v1660_v33, %v1663_v30  ;;  %v6971_v15 = vsel %vm825_vm9, nan, %v835_v55  ;;  %v2198_v14 = vmul.f32 %v5795_v61, %v6819_v20 }
 0x118   : > { %vm6961_vm2 = vcmp.le.f32.partialorder %v8850_v50, 0.7853982  ;;  %v6973_v40 = vsel %vm825_vm9, nan, %v1664_v19  ;;  %v2202_v46 = vmul.f32 %v6827_v60, %v6405_v21  ;;  %v2183_v11 = vmul.f32 2.0, %v6971_v15 }
 0x119   : > { %v1238_v2 = vsel %vm6961_vm2, 0, %v1236_v44  ;;  %v1232_v38 = vmul.f32 %v1231_v41, %v1229_v25  ;;  %v6981_v22 = vmul.f32 %v6881_v43, %v6500_v32  ;;  %v2204_v10 = vmul.f32 %v6903_v13, %v6619_v58 }
 0x11a   : > { %v2206_v52 = vsub.f32 1.0, %v2198_v14  ;;  %v2210_v29 = vsub.f32 1.0, %v2202_v46  ;;  %v2197_v3 = vmul.f32 %v6924_v36, %v6733_v49  ;;  %v2201_v20 = vmul.f32 %v2185_v31, %v6869_v27 }
 0x11b   : > { %v1233_v42 = vxor.u32 2147483648, %v1232_v38  ;;  %v6989_v21 = vmul.f32 %v2183_v11, %v6973_v40  ;;  %v2208_v60 = vsub.f32 1.0, %v6981_v22  ;;  %v2212_v6 = vsub.f32 1.0, %v2204_v10  ;;  %v2753_v36 = vld [vmem:[#allocation2 + $0xe0] sm:$0xff]  ;;  %v2840_v22 = vld [vmem:[%s8754_s3 + $0x18] sm:$0xff] }
 0x11c   : > { %v1242_v32 = vadd.s32 3, %v1238_v2  ;;  %2250 = vst [vmem:[#allocation2 + $0x128] sm:$0xf] %v2210_v29  ;;  %v2205_v43 = vsub.f32 1.0, %v2197_v3  ;;  %v2209_v4 = vsub.f32 1.0, %v2201_v20  ;;  %v6993_v58 = vmul.f32 %v2183_v11, %v6971_v15 }
 0x11d   : > { %v1234_v13 = vsel %vm1151_vm14, %v1233_v42, %v1232_v38  ;;  %v2745_v49 = vld [vmem:[#allocation2 + $0xa0] sm:$0xff]  ;;  %v2802_v27 = vpack.c.bf16 %v2754_v17, %v6824_v5  ;;  %2252 = vst [vmem:[#allocation2 + $0x138] sm:$0xf] %v2212_v6  ;;  %v2253_v59 = vand.u32 2147483647, %v8853_v1  ;;  %v2256_v9 = vand.u32 2139095040, %v8853_v1 }
 0x11e   : > { %v1237_v31 = vsel %vm6961_vm2, %v6029_v34, %v1234_v13  ;;  %v2797_v35 = vpack.c.bf16 %v2745_v49, %v6943_v39  ;;  %2249 = vst [vmem:[#allocation2 + $0x120] sm:$0xf] %v2209_v4  ;;  %v2207_v28 = vsub.f32 1.0, %v6993_v58  ;;  %v2801_v5 = vpack.c.bf16 %v2753_v36, %v6935_v24  ;;  %v8854_v39 = vld [vmem:[#allocation5_spill] sm:$0xff]  ;;  %v2837_v4 = vld [vmem:[%s8754_s3] sm:$0xff] }
 0x11f   : > { %5253 = vcosq.f32 %v1237_v31  ;;  %v2257_v47 = vshrl.u32 %v2256_v9, 23  ;;  %v2260_v16 = vand.u32 8388607, %v2253_v59  ;;  %v2677_v62 = vcombine.high %v8853_v1, %v8853_v1  ;;  %v2849_v58 = vld [vmem:[%s8754_s3 + $0x60] sm:$0xff] }
 0x120   : > { %5255 = vsinq.f32 %v1237_v31  ;;  %2986 = vmatpush1.bf16.msra.mxu0 %v2797_v35  ;;  %v7010_v63 = vand.u32 3, %v1242_v32  ;;  %v2360_v23 = vand.u32 2139095040, %v8854_v39  ;;  %v2678_v26 = vcombine.high %v8854_v39, %v8854_v39 }
 0x121   : > { %2987 = vmatprep.subr.bf16.mxu0 %v2802_v27  ;;  %v5092_v45 = vadd.s32 4294967169, %v2257_v47  ;;  %2682 = vst [vmem:[#allocation2 + $0x148] sm:$0x7] %v2677_v62  ;;  %v2068_v0 = vand.u32 3, %v1238_v2  ;;  %v8791_v56 = vmov 0   ;;  %v2261_v51 = vor.u32 8388608, %v2260_v16 }
 0x122   : > { %v2361_v24 = vshrl.u32 %v2360_v23, 23  ;;  %3013 = vmatprep.mubr.bf16.mxu0 %v8791_v56  ;;  %3126 = vmatprep.mubr.bf16.mxu1 %v8791_v56  ;;  %2684 = vst [vmem:[#allocation2 + $0x158] sm:$0x7] %v2678_v26  ;;  %vm1241_vm11 = vweird.f32 %v6029_v34  ;;  %vm1244_vm14 = vcmp.lt.s32.totalorder %v7010_v63, 2  ;;  %vm1245_vm7 = vcmp.eq.s32.totalorder %v7010_v63, 0 }
 0x123   : > { %v2762_v37 = vld [vmem:[#allocation2 + $0x128] sm:$0xff]  ;;  %v2263_v44 = vadd.s32 1, %v5092_v45  ;;  %5205 = vset.pattern.permute.xlu0 %v8791_v56  ;;  %5206 = vset.pattern.permute.xlu1 %v8791_v56  ;;  %vm1248_vm0 = vcmp.eq.s32.totalorder %v7010_v63, 2  ;;  %vm2069_vm5 = vcmp.lt.s32.totalorder %v2068_v0, 2  ;;  %vm2070_vm1 = vcmp.eq.s32.totalorder %v2068_v0, 0 }
 0x124   : > { %2988 = vmatpush1.bf16.msra.mxu0 %v2801_v5  ;;  %v2806_v48 = vpack.c.bf16 %v2762_v37, %v2206_v52  ;;  %v5096_v8 = vadd.s32 4294967169, %v2361_v24  ;;  %vm2073_vm10 = vcmp.eq.s32.totalorder %v2068_v0, 2  ;;  %v7025_v55 = vshll.u32 %v2261_v51, 8  ;;  %2855 = vperm.xlu0 %5205, %v2837_v4   ;;  %v2838_v5 = vld [vmem:[%s8754_s3 + $0x8] sm:$0xff]  ;;  %v2843_v4 = vld [vmem:[%s8754_s3 + $0x30] sm:$0xff] }
 0x125   : > { %v2761_v41 = vld [vmem:[#allocation2 + $0x120] sm:$0xff]  ;;  %vm2264_vm3 = vcmp.gt.s32.totalorder %v2263_v44, 0  ;;  %v2357_v25 = vand.u32 2147483647, %v8854_v39  ;;  %v8855_v46 = vmov 2475754826  }
 0x126   : > { %2989 = vmatprep.subr.bf16.mxu0 %v2806_v48  ;;  %v2805_v50 = vpack.c.bf16 %v2761_v41, %v2205_v43  ;;  %v2265_v18 = vsel %vm2264_vm3, %v2263_v44, 0  ;;  %v7028_v2 = vadd.s32 1, %v5096_v8  ;;  %v8856_v11 = vmov 2131351028  }
 0x127   : > { %v7023_v33 = vshrl.u32 %v2265_v18, 5  ;;  %v2267_v30 = vand.u32 31, %v2265_v18  ;;  %v8857_v29 = vmov 2102212464  }
 0x128   : > { %2990 = vmatpush1.bf16.msra.mxu0 %v2805_v50  ;;  %2860 = vperm.xlu0 %5205, %v2838_v5   ;;  %vm2368_vm15 = vcmp.gt.s32.totalorder %v7028_v2, 0 }
 0x129   : > { %v5254_v19 = vpop.eup %5253  ;;  %v2268_v61 = vsub.s32 32, %v2267_v30  ;;  %v2270_v14 = vshll.u32 %v8832_v53, %v2267_v30  ;;  %v2273_v38 = vshll.u32 %v8855_v46, %v2267_v30  ;;  %v2276_v10 = vshll.u32 %v8856_v11, %v2267_v30 }
 0x12a   : > { %v5256_v17 = vpop.eup %5255  ;;  %v1249_v52 = vxor.u32 2147483648, %v5254_v19  ;;  %v2279_v3 = vshll.u32 %v8857_v29, %v2267_v30  ;;  %v2282_v20 = vshll.u32 %v5826_v57, %v2267_v30  ;;  %vm2285_vm13 = vcmp.lt.s32.totalorder %v7023_v33, 1 }
 0x12b   : > { %v1246_v42 = vxor.u32 2147483648, %v5256_v17  ;;  %v2269_v6 = vshrl.u32 %v8832_v53, %v2268_v61  ;;  %v2271_v32 = vshrl.u32 %v8855_v46, %v2268_v61  ;;  %v2274_v43 = vshrl.u32 %v8856_v11, %v2268_v61 }
 0x12c   : > { %v1250_v13 = vsel %vm1248_vm0, %v1249_v52, %v5256_v17  ;;  %v2075_v49 = vsel %vm2073_vm10, %v1249_v52, %v5256_v17  ;;  %v2277_v27 = vshrl.u32 %v8857_v29, %v2268_v61  ;;  %v2280_v36 = vshrl.u32 %v5826_v57, %v2268_v61  ;;  %v2748_v17 = vld [vmem:[#allocation2 + $0xb8] sm:$0xff] }
 0x12d   : > { %v1247_v9 = vsel %vm1245_vm7, %v5254_v19, %v1246_v42  ;;  %v2072_v31 = vsel %vm2070_vm1, %v5254_v19, %v1246_v42  ;;  %v2272_v35 = vor.u32 %v2271_v32, %v2270_v14  ;;  %v2275_v47 = vor.u32 %v2274_v43, %v2273_v38  ;;  %v2841_v38 = vld [vmem:[%s8754_s3 + $0x20] sm:$0xff]  ;;  %v2756_v52 = vld [vmem:[#allocation2 + $0xf8] sm:$0xff] }
 0x12e   : > { %v1251_v16 = vsel %vm1244_vm14, %v1247_v9, %v1250_v13  ;;  %v2076_v62 = vsel %vm2069_vm5, %v2072_v31, %v2075_v49  ;;  %v2278_v45 = vor.u32 %v2277_v27, %v2276_v10  ;;  %v2281_v23 = vor.u32 %v2280_v36, %v2279_v3  ;;  %v2839_v10 = vld [vmem:[%s8754_s3 + $0x10] sm:$0xff]  ;;  %2875 = vperm.xlu0 %5205, %v2841_v38  }
 0x12f   : > { %v1252_v26 = vsel %vm1241_vm11, nan, %v1251_v16  ;;  %v2077_v37 = vsel %vm1241_vm11, nan, %v2076_v62  ;;  %v2283_v44 = vshrl.u32 %v8835_v54, %v2268_v61  ;;  %vm2286_vm6 = vcmp.lt.s32.totalorder %v7023_v33, 2  ;;  %2865 = vperm.xlu1 %5206, %v2839_v10  }
 0x130   : > { %2227 = vst [vmem:[#allocation2 + $0x70] sm:$0xf] %v1252_v26  ;;  %v2187_v24 = vmul.f32 2.0, %v1252_v26  ;;  %2243 = vst [vmem:[#allocation2 + $0xf0] sm:$0xf] %v2077_v37  ;;  %vm2287_vm4 = vcmp.lt.s32.totalorder %v7023_v33, 3  ;;  %v2289_v63 = vsel %vm2285_vm13, %v2269_v6, %v2272_v35  ;;  %v2293_v34 = vsel %vm2285_vm13, %v2272_v35, %v2275_v47 }
 0x131   : > { %vm2288_vm12 = vcmp.lt.s32.totalorder %v7023_v33, 4  ;;  %v2284_v0 = vor.u32 %v2283_v44, %v2282_v20  ;;  %v2297_v19 = vsel %vm2285_vm13, %v2275_v47, %v2278_v45  ;;  %v7078_v14 = vand.u32 8388607, %v2357_v25  ;;  %v2764_v33 = vld [vmem:[#allocation2 + $0x138] sm:$0xff] }
 0x132   : > { %v2290_v48 = vsel %vm2288_vm12, %v2278_v45, 2102212464  ;;  %v2294_v51 = vsel %vm2288_vm12, %v2281_v23, 920167782  ;;  %v2195_v41 = vmul.f32 %v2187_v24, %v2077_v37  ;;  %v2203_v8 = vmul.f32 %v2187_v24, %v1252_v26  ;;  %2885 = vperm.xlu0 %5205, %v2843_v4   ;;  %v2844_v4 = vld [vmem:[%s8754_s3 + $0x38] sm:$0xff] }
 0x133   : > { %v2291_v50 = vsel %vm2287_vm4, %v2275_v47, %v2290_v48  ;;  %v2295_v18 = vsel %vm2287_vm4, %v2278_v45, %v2294_v51  ;;  %v2298_v61 = vsel %vm2288_vm12, %v2284_v0, 1326507024  ;;  %v2369_v27 = vsel %vm2368_vm15, %v7028_v2, 0  ;;  %2870 = vperm.xlu1 %5206, %v2840_v22  }
 0x134   : > { %v2296_v30 = vsel %vm2286_vm6, %v2293_v34, %v2295_v18  ;;  %2235 = vst [vmem:[#allocation2 + $0xb0] sm:$0xf] %v2195_v41  ;;  %v2211_v3 = vsub.f32 1.0, %v2203_v8  ;;  %v2299_v20 = vsel %vm2287_vm4, %v2281_v23, %v2298_v61  ;;  %v2292_v32 = vsel %vm2286_vm6, %v2289_v63, %v2291_v50  ;;  %v2842_v50 = vld [vmem:[%s8754_s3 + $0x28] sm:$0xff] }
 0x135   : > { %v7089_v42 = vmul.u32.u64.low %v7025_v55, %v2296_v30  ;;  %v7090_v6 = vmul.u32.u64.high %v7025_v55, %v2296_v30, %v7089_v42  ;;  %v2300_v43 = vsel %vm2286_vm6, %v2297_v19, %v2299_v20  ;;  %v2800_v9 = vpack.c.bf16 %v2748_v17, %v6907_v12 }
 0x136   : > { %2251 = vst [vmem:[#allocation2 + $0x130] sm:$0xf] %v2211_v3  ;;  %v7102_v13 = vmul.u32.u64.low %v7025_v55, %v2300_v43  ;;  %v7103_v49 = vmul.u32.u64.high %v7025_v55, %v2300_v43, %v7102_v13  ;;  %v2804_v31 = vpack.c.bf16 %v2756_v52, %v6886_v7  ;;  %v2371_v35 = vand.u32 31, %v2369_v27 }
 0x137   : > { %v2739_v36 = vld [vmem:[#allocation2 + $0x70] sm:$0xff]  ;;  %v2308_v5 = vmul.u32 %v7025_v55, %v2292_v32  ;;  %v2311_v16 = vadd.s32 1, %v7090_v6  ;;  %v2365_v62 = vor.u32 8388608, %v7078_v14  ;;  %v7112_v45 = vshrl.u32 %v2369_v27, 5  ;;  %2880 = vperm.xlu1 %5206, %v2842_v50  }
 0x138   : > { %v2795_v47 = vpack.c.bf16 %v2739_v36, %v6971_v15  ;;  %v2372_v23 = vsub.s32 32, %v2371_v35  ;;  %v2374_v2 = vshll.u32 %v8832_v53, %v2371_v35  ;;  %v2377_v12 = vshll.u32 %v8855_v46, %v2371_v35  ;;  %v2755_v7 = vld [vmem:[#allocation2 + $0xf0] sm:$0xff] }
 0x139   : > { %v2808_v26 = vpack.c.bf16 %v2764_v33, %v2208_v60  ;;  %vm2310_vm8 = vc.u32 %v7103_v49, %v7089_v42  ;;  %v2380_v15 = vshll.u32 %v8856_v11, %v2371_v35  ;;  %v2383_v55 = vshll.u32 %v8857_v29, %v2371_v35  ;;  %v2845_v60 = vld [vmem:[%s8754_s3 + $0x40] sm:$0xff]  ;;  %v2846_v33 = vld [vmem:[%s8754_s3 + $0x48] sm:$0xff] }
 0x13a   : > { %3097 = vmatpush1.bf16.msra.mxu1 %v2795_v47  ;;  %v2312_v44 = vsel %vm2310_vm8, %v2311_v16, %v7090_v6  ;;  %v2375_v24 = vshrl.u32 %v8855_v46, %v2372_v23  ;;  %v2378_v63 = vshrl.u32 %v8856_v11, %v2372_v23  ;;  %v2386_v0 = vshll.u32 %v5826_v57, %v2371_v35  ;;  %v2851_v16 = vld [vmem:[%s8754_s3 + $0x70] sm:$0xff] }
 0x13b   : > { %3098 = vmatprep.subr.bf16.mxu1 %v2800_v9  ;;  %v2747_v37 = vld [vmem:[#allocation2 + $0xb0] sm:$0xff]  ;;  %v2313_v34 = vadd.s32 %v2312_v44, %v2308_v5  ;;  %v2381_v51 = vshrl.u32 %v8857_v29, %v2372_v23  ;;  %v2384_v41 = vshrl.u32 %v5826_v57, %v2372_v23  ;;  %v2387_v8 = vshrl.u32 %v8835_v54, %v2372_v23 }
 0x13c   : > { %v2799_v48 = vpack.c.bf16 %v2747_v37, %v6989_v21  ;;  %v2376_v46 = vor.u32 %v2375_v24, %v2374_v2  ;;  %v2379_v11 = vor.u32 %v2378_v63, %v2377_v12  ;;  %vm2389_vm9 = vcmp.lt.s32.totalorder %v7112_v45, 1  ;;  %2895 = vperm.xlu0 %5205, %v2845_v60   ;;  %v2847_v57 = vld [vmem:[%s8754_s3 + $0x50] sm:$0xff]  ;;  %2890 = vperm.xlu1 %5206, %v2844_v4   ;;  %v2850_v37 = vld [vmem:[%s8754_s3 + $0x68] sm:$0xff] }
 0x13d   : > { %v2803_v21 = vpack.c.bf16 %v2755_v7, %v6973_v40  ;;  %v2314_v18 = vadd.s32 536870912, %v2313_v34  ;;  %v2382_v30 = vor.u32 %v2381_v51, %v2380_v15  ;;  %v2385_v29 = vor.u32 %v2384_v41, %v2383_v55  ;;  %v2763_v19 = vld [vmem:[#allocation2 + $0x130] sm:$0xff]  ;;  %v3831_v15 = vld [vmem:[%s8756_s5] sm:$0xff] }
 0x13e   : > { %3099 = vmatpush1.bf16.msra.mxu1 %v2799_v48  ;;  %v2388_v54 = vor.u32 %v2387_v8, %v2386_v0  ;;  %vm2391_vm2 = vcmp.lt.s32.totalorder %v7112_v45, 3  ;;  %vm2392_vm11 = vcmp.lt.s32.totalorder %v7112_v45, 4  ;;  %v2405_v61 = vshll.u32 %v2365_v62, 8  ;;  %v3833_v63 = vld [vmem:[%s8756_s5 + $0x10] sm:$0xff] }
 0x13f   : > { %3100 = vmatprep.subr.bf16.mxu1 %v2804_v31  ;;  %v7146_v14 = vshrl.u32 %v2314_v18, 30  ;;  %v2373_v38 = vshrl.u32 %v8832_v53, %v2372_v23  ;;  %vm2390_vm14 = vcmp.lt.s32.totalorder %v7112_v45, 2  ;;  %v2397_v40 = vsel %vm2389_vm9, %v2376_v46, %v2379_v11 }
 0x140   : > { %v2394_v10 = vsel %vm2392_vm11, %v2382_v30, 2102212464  ;;  %v2398_v17 = vsel %vm2392_vm11, %v2385_v29, 920167782  ;;  %v2401_v52 = vsel %vm2389_vm9, %v2379_v11, %v2382_v30  ;;  %v2402_v3 = vsel %vm2392_vm11, %v2388_v54, 1326507024  ;;  %2905 = vperm.xlu0 %5205, %v2847_v57   ;;  %2900 = vperm.xlu1 %5206, %v2846_v33  }
 0x141   : > { %v2807_v20 = vpack.c.bf16 %v2763_v19, %v2207_v28  ;;  %v2316_v6 = vshll.u32 %v7146_v14, 30  ;;  %v2399_v53 = vsel %vm2391_vm2, %v2382_v30, %v2398_v17  ;;  %v2403_v43 = vsel %vm2391_vm2, %v2385_v29, %v2402_v3  ;;  %v3837_v57 = vld [vmem:[%s8756_s5 + $0x30] sm:$0xff]  ;;  %v3839_v17 = vld [vmem:[%s8756_s5 + $0x40] sm:$0xff] }
 0x142   : > { %3101 = vmatpush1.bf16.msra.mxu1 %v2803_v21  ;;  %v2400_v32 = vsel %vm2390_vm14, %v2397_v40, %v2399_v53  ;;  %v2393_v13 = vsel %vm2389_vm9, %v2373_v38, %v2376_v46  ;;  %v2395_v27 = vsel %vm2391_vm2, %v2379_v11, %v2394_v10  ;;  %v2404_v36 = vsel %vm2390_vm14, %v2401_v52, %v2403_v43  ;;  %v3832_v21 = vld [vmem:[%s8756_s5 + $0x8] sm:$0xff]  ;;  %v3834_v38 = vld [vmem:[%s8756_s5 + $0x18] sm:$0xff]  ;;  %v3841_v43 = vld [vmem:[%s8756_s5 + $0x50] sm:$0xff] }
 0x143   : > { %3102 = vmatprep.subr.bf16.mxu1 %v2808_v26  ;;  %v2317_v28 = vsub.s32 %v2313_v34, %v2316_v6  ;;  %v7175_v9 = vmul.u32.u64.low %v2405_v61, %v2404_v36  ;;  %v7176_v31 = vmul.u32.u64.high %v2405_v61, %v2404_v36, %v7175_v9  ;;  %v2396_v62 = vsel %vm2390_vm14, %v2393_v13, %v2395_v27  ;;  %v2848_v26 = vld [vmem:[%s8754_s3 + $0x58] sm:$0xff]  ;;  %v3836_v6 = vld [vmem:[%s8756_s5 + $0x28] sm:$0xff]  ;;  %v3843_v33 = vld [vmem:[%s8756_s5 + $0x60] sm:$0xff] }
 0x144   : > { %2915 = vperm.xlu0 %5205, %v2849_v58   ;;  %v7181_v47 = vmul.u32.u64.low %v2405_v61, %v2400_v32  ;;  %v7182_v5 = vmul.u32.u64.high %v2405_v61, %v2400_v32, %v7181_v47  ;;  %v2412_v12 = vmul.u32 %v2405_v61, %v2396_v62  ;;  %2910 = vperm.xlu1 %5206, %v2848_v26   ;;  %v2309_v44 = vadd.s32 %v7089_v42, %v7103_v49  ;;  %v2852_v42 = vld [vmem:[%s8754_s3 + $0x78] sm:$0xff]  ;;  %v3835_v49 = vld [vmem:[%s8756_s5 + $0x20] sm:$0xff] }
 0x145   : > { %v2319_v35 = vsub.s32 0, %v2317_v28  ;;  %v2339_v54 = vsub.s32 4, %v7146_v14  ;;  %vm2255_vm0 = vcmp.lt.s32.totalorder %v8853_v1, 0  ;;  %vm2254_vm5 = vcmp.le.f32.partialorder %v2253_v59, 0.7853982 }
 0x146   : > { %3103 = vmatpush1.bf16.msra.mxu1 %v2807_v20  ;;  %vm2414_vm3 = vc.u32 %v7176_v31, %v7181_v47  ;;  %v2415_v7 = vadd.s32 1, %v7182_v5  ;;  %v2413_v59 = vadd.s32 %v7181_v47, %v7176_v31  ;;  %v3840_v31 = vld [vmem:[%s8756_s5 + $0x48] sm:$0xff]  ;;  %vm2359_vm4 = vcmp.lt.s32.totalorder %v8854_v39, 0 }
 0x147   : > { %v5093_v23 = vmin.u32 %v2319_v35, %v2317_v28  ;;  %v2340_v3 = vsel %vm2255_vm0, %v2339_v54, %v7146_v14  ;;  %vm2345_vm9 = vweird.f32 %v8853_v1  ;;  %vm2358_vm2 = vcmp.le.f32.partialorder %v2357_v25, 0.7853982  ;;  %v3846_v25 = vld [vmem:[%s8756_s5 + $0x78] sm:$0xff] }
 0x148   : > { %2925 = vperm.xlu0 %5205, %v2851_v16   ;;  %v2416_v55 = vsel %vm2414_vm3, %v2415_v7, %v7182_v5  ;;  %2920 = vperm.xlu1 %5206, %v2850_v37   ;;  %v2342_v58 = vsel %vm2254_vm5, 0, %v2340_v3  ;;  %v4810_v37 = vld [vmem:[%s8758_s7] sm:$0xff] }
 0x149   : > { %v2321_v2 = vclz %v5093_v23  ;;  %v2417_v24 = vadd.s32 %v2416_v55, %v2412_v12  ;;  %v2346_v13 = vadd.s32 3, %v2342_v58  ;;  %v2554_v23 = vand.u32 3, %v2342_v58 }
 0x14b   : > { %v5094_v45 = vadd.s32 4294967294, %v2321_v2  ;;  %v2418_v34 = vadd.s32 536870912, %v2417_v24  ;;  %v2347_v47 = vand.u32 3, %v2346_v13  ;;  %v3845_v2 = vld [vmem:[%s8756_s5 + $0x70] sm:$0xff]  ;;  %vm2559_vm13 = vcmp.eq.s32.totalorder %v2554_v23, 2 }
 0x14c   : > { %3849 = vperm.xlu0 %5205, %v3831_v15   ;;  %2930 = vperm.xlu1 %5206, %v2852_v42   ;;  %v3842_v15 = vld [vmem:[%s8756_s5 + $0x58] sm:$0xff]  ;;  %vm2556_vm12 = vcmp.eq.s32.totalorder %v2554_v23, 0  ;;  %vm2555_vm8 = vcmp.lt.s32.totalorder %v2554_v23, 2 }
 0x14d   : > { %vm5095_vm7 = vcmp.lt.s32.totalorder %v5094_v45, 0  ;;  %v7208_v46 = vshrl.u32 %v2418_v34, 30  ;;  %vm2352_vm10 = vcmp.eq.s32.totalorder %v2347_v47, 2  ;;  %vm2349_vm6 = vcmp.eq.s32.totalorder %v2347_v47, 0  ;;  %v3844_v34 = vld [vmem:[%s8756_s5 + $0x68] sm:$0xff] }
 0x14e   : > { %v2324_v0 = vsel %vm5095_vm7, 0, %v5094_v45  ;;  %vm2348_vm15 = vcmp.lt.s32.totalorder %v2347_v47, 2 }
 0x14f   : > { %v2325_v22 = vsub.s32 32, %v2324_v0  ;;  %v2326_v60 = vshll.u32 %v2317_v28, %v2324_v0  ;;  %v2329_v48 = vsub.s32 4294967266, %v2324_v0  ;;  %v2420_v50 = vshll.u32 %v7208_v46, 30  ;;  %v3838_v28 = vld [vmem:[%s8756_s5 + $0x38] sm:$0xff] }
 0x150   : > { %3859 = vperm.xlu0 %5205, %v3833_v63   ;;  %3854 = vperm.xlu1 %5206, %v3832_v21   ;;  %v2443_v26 = vsub.s32 4, %v7208_v46 }
 0x151   : > { %v2327_v51 = vshrl.u32 %v2309_v44, %v2325_v22  ;;  %v2330_v41 = vadd.s32 127, %v2329_v48  ;;  %v2421_v29 = vsub.s32 %v2417_v24, %v2420_v50 }
 0x153   : > { %v2328_v11 = vor.u32 %v2327_v51, %v2326_v60  ;;  %v2331_v8 = vshll.u32 %v2330_v41, 23  ;;  %v2423_v61 = vsub.s32 0, %v2421_v29  ;;  %v2444_v60 = vsel %vm2359_vm4, %v2443_v26, %v7208_v46 }
 0x154   : > { %3869 = vperm.xlu0 %5205, %v3835_v49   ;;  %3864 = vperm.xlu1 %5206, %v3834_v38   ;;  %v2446_v50 = vsel %vm2358_vm2, 0, %v2444_v60 }
 0x155   : > { %v2332_v18 = vor.u32 4788187, %v2331_v8  ;;  %v2335_v30 = vcvt.s32.f32 %v2328_v11  ;;  %v5097_v10 = vmin.u32 %v2423_v61, %v2421_v29  ;;  %v2450_v54 = vadd.s32 3, %v2446_v50 }
 0x157   : > { %v2333_v19 = vand.u32 2147483647, %v2332_v18  ;;  %v2425_v20 = vclz %v5097_v10 }
 0x158   : > { %3879 = vperm.xlu0 %5205, %v3837_v57   ;;  %3874 = vperm.xlu1 %5206, %v3836_v6  }
 0x159   : > { %v2336_v40 = vmul.f32 %v2335_v30, %v2333_v19  ;;  %v5098_v32 = vadd.s32 4294967294, %v2425_v20  ;;  %v2657_v20 = vand.u32 3, %v2446_v50 }
 0x15b   : > { %v2337_v52 = vxor.u32 2147483648, %v2336_v40  ;;  %vm5099_vm1 = vcmp.lt.s32.totalorder %v5098_v32, 0  ;;  %vm2662_vm14 = vcmp.eq.s32.totalorder %v2657_v20, 2  ;;  %vm2659_vm7 = vcmp.eq.s32.totalorder %v2657_v20, 0 }
 0x15c   : > { %3889 = vperm.xlu0 %5205, %v3839_v17   ;;  %v2428_v14 = vsel %vm5099_vm1, 0, %v5098_v32  ;;  %3884 = vperm.xlu1 %5206, %v3838_v28   ;;  %v2766_v17 = vld [vmem:[#allocation2 + $0x148] sm:$0xff]  ;;  %vm2449_vm1 = vweird.f32 %v8854_v39 }
 0x15d   : > { %v2338_v53 = vsel %vm2255_vm0, %v2337_v52, %v2336_v40  ;;  %v2429_v27 = vsub.s32 32, %v2428_v14  ;;  %v2430_v36 = vshll.u32 %v2421_v29, %v2428_v14  ;;  %v2433_v9 = vsub.s32 4294967266, %v2428_v14  ;;  %v2765_v40 = vld [vmem:[#allocation2 + $0x140] sm:$0xff] }
 0x15e   : > { %v2341_v4 = vsel %vm2254_vm5, %v8853_v1, %v2338_v53  ;;  %v2451_v52 = vand.u32 3, %v2450_v54  ;;  %vm2658_vm5 = vcmp.lt.s32.totalorder %v2657_v20, 2  ;;  %v5213_v54 = vld [vmem:[%s8753_s2 + $0x20] sm:$0xff]  }
 0x15f   : > { %5257 = vcosq.f32 %v2341_v4  ;;  %v2431_v35 = vshrl.u32 %v2413_v59, %v2429_v27  ;;  %v2434_v5 = vadd.s32 127, %v2433_v9 }
 0x160   : > { %5259 = vsinq.f32 %v2341_v4  ;;  %3899 = vperm.xlu0 %5205, %v3841_v43   ;;  %3894 = vperm.xlu1 %5206, %v3840_v31   ;;  %vm2456_vm11 = vcmp.eq.s32.totalorder %v2451_v52, 2  ;;  %vm2453_vm3 = vcmp.eq.s32.totalorder %v2451_v52, 0  ;;  %vm2452_vm0 = vcmp.lt.s32.totalorder %v2451_v52, 2 }
 0x161   : > { %v2432_v16 = vor.u32 %v2431_v35, %v2430_v36  ;;  %v2435_v62 = vshll.u32 %v2434_v5, 23 }
 0x163   : > { %v2436_v12 = vor.u32 4788187, %v2435_v62  ;;  %v2439_v7 = vcvt.s32.f32 %v2432_v16 }
 0x164   : > { %3909 = vperm.xlu0 %5205, %v3843_v33   ;;  %3904 = vperm.xlu1 %5206, %v3842_v15  }
 0x165   : > { %v2437_v55 = vand.u32 2147483647, %v2436_v12 }
 0x167   : > { %v2440_v0 = vmul.f32 %v2439_v7, %v2437_v55 }
 0x168   : > { %3919 = vperm.xlu0 %5205, %v3845_v2   ;;  %3914 = vperm.xlu1 %5206, %v3844_v34   ;;  %v5796_v2 = vld [vmem:[#allocation2 + $0x170] sm:$0xff] }
 0x169   : > { %v5258_v45 = vpop.eup %5257  ;;  %v2441_v41 = vxor.u32 2147483648, %v2440_v0 }
 0x16a   : > { %v5260_v44 = vpop.eup %5259  ;;  %v2353_v24 = vxor.u32 2147483648, %v5258_v45 }
 0x16b   : > { %v2350_v63 = vxor.u32 2147483648, %v5260_v44  ;;  %v2442_v8 = vsel %vm2359_vm4, %v2441_v41, %v2440_v0 }
 0x16c   : > { %v2354_v22 = vsel %vm2352_vm10, %v2353_v24, %v5260_v44  ;;  %v2561_v48 = vsel %vm2559_vm13, %v2353_v24, %v5260_v44  ;;  %4813 = vperm.xlu0 %5205, %v4810_v37   ;;  %v2445_v18 = vsel %vm2358_vm2, %v8854_v39, %v2442_v8  ;;  %3924 = vperm.xlu1 %5206, %v3846_v25   ;;  %v5209_v24 = vld [vmem:[%s8753_s2] sm:$0xff]  }
 0x16d   : > { %v2351_v51 = vsel %vm2349_vm6, %v5258_v45, %v2350_v63  ;;  %v2558_v42 = vsel %vm2556_vm12, %v5258_v45, %v2350_v63  ;;  %5261 = vcosq.f32 %v2445_v18 }
 0x16e   : > { %v2355_v49 = vsel %vm2348_vm15, %v2351_v51, %v2354_v22  ;;  %v2562_v11 = vsel %vm2555_vm8, %v2558_v42, %v2561_v48  ;;  %5263 = vsinq.f32 %v2445_v18  ;;  %v2767_v22 = vld [vmem:[#allocation2 + $0x150] sm:$0xff]  ;;  %v2768_v48 = vld [vmem:[#allocation2 + $0x158] sm:$0xff] }
 0x16f   : > { %v2356_v1 = vsel %vm2345_vm9, nan, %v2355_v49  ;;  %v2563_v46 = vsel %vm2345_vm9, nan, %v2562_v11  ;;  %v5210_v11 = vld [vmem:[%s8753_s2 + $0x8] sm:$0xff]  }
 0x170   : > { %v2687_v21 = vcombine.high %v2356_v1, %v2356_v1  ;;  %2691 = vst [vmem:[#allocation2 + $0x160] sm:$0x7] %v2356_v1  ;;  %v2667_v30 = vmul.f32 2.0, %v2356_v1  ;;  %v2707_v29 = vcombine.high %v2563_v46, %v2563_v46  ;;  %2711 = vst [vmem:[#allocation2 + $0x1a0] sm:$0x7] %v2563_v46 }
 0x172   : > { %2692 = vst [vmem:[#allocation2 + $0x168] sm:$0x7] %v2687_v21  ;;  %v2669_v57 = vmul.f32 %v2667_v30, %v2563_v46  ;;  %2712 = vst [vmem:[#allocation2 + $0x1a8] sm:$0x7] %v2707_v29  ;;  %v2671_v19 = vmul.f32 %v2667_v30, %v2356_v1 }
 0x174   : > { %v2697_v61 = vcombine.high %v2669_v57, %v2669_v57  ;;  %2701 = vst [vmem:[#allocation2 + $0x180] sm:$0x7] %v2669_v57  ;;  %v2673_v38 = vsub.f32 1.0, %v2671_v19  ;;  %v5211_v57 = vld [vmem:[%s8753_s2 + $0x10] sm:$0xff]   ;;  %v5212_v19 = vld [vmem:[%s8753_s2 + $0x18] sm:$0xff]  }
 0x176   : > { %2702 = vst [vmem:[#allocation2 + $0x188] sm:$0x7] %v2697_v61  ;;  %v2717_v10 = vcombine.high %v2673_v38, %v2673_v38  ;;  %2721 = vst [vmem:[#allocation2 + $0x1c0] sm:$0x7] %v2673_v38  ;;  %v5214_v61 = vld [vmem:[%s8753_s2 + $0x28] sm:$0xff]   ;;  %v5215_v38 = vld [vmem:[%s8753_s2 + $0x30] sm:$0xff]  }
 0x177   : > { %v2769_v3 = vld [vmem:[#allocation2 + $0x160] sm:$0xff]  ;;  %v5262_v4 = vpop.eup %5261 }
 0x178   : > { %2722 = vst [vmem:[#allocation2 + $0x1c8] sm:$0x7] %v2717_v10  ;;  %v2809_v53 = vpack.c.bf16 %v2769_v3, %v2765_v40  ;;  %v2777_v43 = vld [vmem:[#allocation2 + $0x1a0] sm:$0xff]  ;;  %v5264_v14 = vpop.eup %5263  ;;  %v2457_v28 = vxor.u32 2147483648, %v5262_v4  ;;  %v5216_v40 = vld [vmem:[%s8753_s2 + $0x38] sm:$0xff]  }
 0x179   : > { %v2770_v6 = vld [vmem:[#allocation2 + $0x168] sm:$0xff]  ;;  %v2454_v13 = vxor.u32 2147483648, %v5264_v14 }
 0x17a   : > { %v2810_v32 = vpack.c.bf16 %v2770_v6, %v2766_v17  ;;  %v2778_v58 = vld [vmem:[#allocation2 + $0x1a8] sm:$0xff]  ;;  %v2458_v9 = vsel %vm2456_vm11, %v2457_v28, %v5264_v14  ;;  %v2664_v35 = vsel %vm2662_vm14, %v2457_v28, %v5264_v14 }
 0x17b   : > { %v2773_v59 = vld [vmem:[#allocation2 + $0x180] sm:$0xff]  ;;  %v2455_v31 = vsel %vm2453_vm3, %v5262_v4, %v2454_v13  ;;  %v2661_v47 = vsel %vm2659_vm7, %v5262_v4, %v2454_v13 }
 0x17c   : > { %2991 = vmatprep.subr.bf16.mxu0 %v2810_v32  ;;  %v2813_v36 = vpack.c.bf16 %v2777_v43, %v2773_v59  ;;  %v2459_v62 = vsel %vm2452_vm0, %v2455_v31, %v2458_v9  ;;  %v2665_v23 = vsel %vm2658_vm5, %v2661_v47, %v2664_v35 }
 0x17d   : > { %2992 = vmatpush1.bf16.msra.mxu0 %v2809_v53  ;;  %v2774_v27 = vld [vmem:[#allocation2 + $0x188] sm:$0xff]  ;;  %v2781_v5 = vld [vmem:[#allocation2 + $0x1c0] sm:$0xff]  ;;  %v2460_v7 = vsel %vm2449_vm1, nan, %v2459_v62  ;;  %v2666_v26 = vsel %vm2449_vm1, nan, %v2665_v23 }
 0x17e   : > { %v2814_v33 = vpack.c.bf16 %v2778_v58, %v2774_v27  ;;  %v2817_v15 = vpack.c.bf16 %v5796_v2, %v2781_v5  ;;  %v2688_v45 = vcombine.high %v2460_v7, %v2460_v7  ;;  %2693 = vst [vmem:[#allocation2 + $0x170] sm:$0x7] %v2460_v7  ;;  %v2668_v39 = vmul.f32 2.0, %v2460_v7  ;;  %2713 = vst [vmem:[#allocation2 + $0x1b0] sm:$0x7] %v2666_v26 }
 0x17f   : > { %v2782_v16 = vld [vmem:[#allocation2 + $0x1c8] sm:$0xff]  ;;  %v2708_v55 = vcombine.high %v2666_v26, %v2666_v26 }
 0x180   : > { %2993 = vmatprep.subr.bf16.mxu0 %v2814_v33  ;;  %v2818_v12 = vpack.c.bf16 %v5796_v2, %v2782_v16  ;;  %2694 = vst [vmem:[#allocation2 + $0x178] sm:$0x7] %v2688_v45  ;;  %v2670_v37 = vmul.f32 %v2668_v39, %v2666_v26  ;;  %v2672_v44 = vmul.f32 %v2668_v39, %v2460_v7 }
 0x181   : > { %2994 = vmatpush1.bf16.msra.mxu0 %v2813_v36  ;;  %2714 = vst [vmem:[#allocation2 + $0x1b8] sm:$0x7] %v2708_v55 }
 0x182   : > { %2995 = vmatprep.subr.bf16.mxu0 %v2818_v12  ;;  %v2698_v63 = vcombine.high %v2670_v37, %v2670_v37  ;;  %2703 = vst [vmem:[#allocation2 + $0x190] sm:$0x7] %v2670_v37  ;;  %v2674_v0 = vsub.f32 1.0, %v2672_v44 }
 0x184   : > { %2704 = vst [vmem:[#allocation2 + $0x198] sm:$0x7] %v2698_v63  ;;  %v2718_v60 = vcombine.high %v2674_v0, %v2674_v0  ;;  %2723 = vst [vmem:[#allocation2 + $0x1d0] sm:$0x7] %v2674_v0 }
 0x185   : > { %2996 = vmatpush1.bf16.msra.mxu0 %v2817_v15  ;;  %v2771_v34 = vld [vmem:[#allocation2 + $0x170] sm:$0xff] }
 0x186   : > { %2724 = vst [vmem:[#allocation2 + $0x1d8] sm:$0x7] %v2718_v60  ;;  %v2811_v41 = vpack.c.bf16 %v2771_v34, %v2767_v22  ;;  %v2779_v49 = vld [vmem:[#allocation2 + $0x1b0] sm:$0xff] }
 0x187   : > { %v2772_v51 = vld [vmem:[#allocation2 + $0x178] sm:$0xff] }
 0x188   : > { %3014 = vmatmul.mubr.bf16.vlgmr.msra.gmra.mrb[0].mxu0 %v5209_v24  ;;  %v2812_v42 = vpack.c.bf16 %v2772_v51, %v2768_v48  ;;  %v2780_v1 = vld [vmem:[#allocation2 + $0x1b8] sm:$0xff] }
 0x189   : > { %3023 = vmatprep.mubr.bf16.mxu0 %v8791_v56  ;;  %v2775_v8 = vld [vmem:[#allocation2 + $0x190] sm:$0xff] }
 0x18a   : > { %3104 = vmatprep.subr.bf16.mxu1 %v2812_v42  ;;  %v2815_v46 = vpack.c.bf16 %v2779_v49, %v2775_v8 }
 0x18b   : > { %3105 = vmatpush1.bf16.msra.mxu1 %v2811_v41  ;;  %v2776_v50 = vld [vmem:[#allocation2 + $0x198] sm:$0xff]  ;;  %v2783_v18 = vld [vmem:[#allocation2 + $0x1d0] sm:$0xff] }
 0x18c   : > { %v2816_v21 = vpack.c.bf16 %v2780_v1, %v2776_v50  ;;  %v2819_v25 = vpack.c.bf16 %v5796_v2, %v2783_v18 }
 0x18d   : > { %v2784_v30 = vld [vmem:[#allocation2 + $0x1d8] sm:$0xff] }
 0x18e   : > { %3106 = vmatprep.subr.bf16.mxu1 %v2816_v21  ;;  %v2820_v29 = vpack.c.bf16 %v5796_v2, %v2784_v30 }
 0x18f   : > { %3107 = vmatpush1.bf16.msra.mxu1 %v2815_v46 }
 0x190   : > { %3024 = vmatmul.mubr.bf16.gmra.mrb[4].mxu0 %v5210_v11  ;;  %3108 = vmatprep.subr.bf16.mxu1 %v2820_v29 }
 0x191   : > { %3033 = vmatprep.mubr.bf16.mxu0 %v8791_v56 }
 0x193   : > { %3109 = vmatpush1.bf16.msra.mxu1 %v2819_v25 }
 0x196   : > { %3127 = vmatmul.mubr.bf16.vlgmr.msra.gmra.mrb[0].mxu1 %v5209_v24 }
 0x197   : > { %3136 = vmatprep.mubr.bf16.mxu1 %v8791_v56 }
 0x198   : > { %3034 = vmatmul.mubr.bf16.gmra.mrb[8].mxu0 %v5211_v57 }
 0x199   : > { %3043 = vmatprep.mubr.bf16.mxu0 %v8791_v56 }
 0x19e   : > { %3137 = vmatmul.mubr.bf16.gmra.mrb[4].mxu1 %v5210_v11 }
 0x19f   : > { %3146 = vmatprep.mubr.bf16.mxu1 %v8791_v56 }
 0x1a0   : > { %3044 = vmatmul.mubr.bf16.gmra.mrb[12].mxu0 %v5212_v19 }
 0x1a1   : > { %3053 = vmatprep.mubr.bf16.mxu0 %v8791_v56 }
 0x1a3   : > { %v2856_v10 = vpop.permute.xlu0 %2855 }
 0x1a6   : > { %3147 = vmatmul.mubr.bf16.gmra.mrb[8].mxu1 %v5211_v57 }
 0x1a7   : > { %3156 = vmatprep.mubr.bf16.mxu1 %v8791_v56  ;;  %v7323_v20 = vpop.permute.xlu0 %2860 }
 0x1a8   : > { %3054 = vmatmul.mubr.bf16.gmra.mrb[16].mxu0 %v5213_v54 }
 0x1a9   : > { %3063 = vmatprep.mubr.bf16.mxu0 %v8791_v56 }
 0x1ad   : > { %v7363_v46 = vpop.permute.xlu0 %2875 }
 0x1ae   : > { %3157 = vmatmul.mubr.bf16.gmra.mrb[12].mxu1 %v5212_v19  ;;  %v7331_v58 = vpop.permute.xlu1 %2865 }
 0x1af   : > { %3166 = vmatprep.mubr.bf16.mxu1 %v8791_v56 }
 0x1b0   : > { %3064 = vmatmul.mubr.bf16.gmra.mrb[20].mxu0 %v5214_v61 }
 0x1b1   : > { %3073 = vmatprep.mubr.bf16.mxu0 %v8791_v56 }
 0x1b2   : > { %v7342_v16 = vpop.permute.xlu1 %2870 }
 0x1b6   : > { %3167 = vmatmul.mubr.bf16.gmra.mrb[16].mxu1 %v5213_v54 }
 0x1b7   : > { %3176 = vmatprep.mubr.bf16.mxu1 %v8791_v56 }
 0x1b8   : > { %3074 = vmatmul.mubr.bf16.gmra.mrb[24].mxu0 %v5215_v38 }
 0x1b9   : > { %3083 = vmatprep.mubr.bf16.mxu0 %v8791_v56 }
 0x1be   : > { %3177 = vmatmul.mubr.bf16.gmra.mrb[20].mxu1 %v5214_v61 }
 0x1bf   : > { %3186 = vmatprep.mubr.bf16.mxu1 %v8791_v56 }
 0x1c0   : > { %3084 = vmatmul.mubr.bf16.gmra.mrb[28].mxu0 %v5216_v40 }
 0x1c1   : > { %4007 = vmatprep.mubr.bf16.mxu0 %v8791_v56 }
 0x1c6   : > { %3187 = vmatmul.mubr.bf16.gmra.mrb[24].mxu1 %v5215_v38 }
 0x1c7   : > { %3196 = vmatprep.mubr.bf16.mxu1 %v8791_v56 }
 0x1ce   : > { %3197 = vmatmul.mubr.bf16.gmra.mrb[28].mxu1 %v5216_v40 }
 0x1cf   : > { %4120 = vmatprep.mubr.bf16.mxu1 %v8791_v56 }
 0x25b   : > { %v3015_v17 = vpop.f32.mrb[0].mxu0 }
 0x25c   : > { %v7321_v52 = vadd.f32 %v3015_v17, %v2856_v10  ;;  %v3017_v3 = vpop.f32.mrb[1].mxu0 }
 0x25d   : > { %v7325_v6 = vadd.f32 %v3017_v3, %v2856_v10  ;;  %v3019_v53 = vpop.f32.mrb[2].mxu0 }
 0x25e   : > { %v3271_v32 = vand.u32 2147483647, %v7321_v52  ;;  %v7329_v43 = vadd.f32 %v3019_v53, %v7323_v20  ;;  %v3021_v4 = vpop.f32.mrb[3].mxu0 }
 0x25f   : > { %v3272_v59 = vand.u32 2147483647, %v7325_v6  ;;  %v7335_v14 = vadd.f32 %v3021_v4, %v7323_v20 }
 0x260   : > { %v3335_v28 = vsub.f32 0.0, %v3271_v32  ;;  %v3275_v13 = vand.u32 2147483647, %v7329_v43 }
 0x261   : > { %v3336_v9 = vsub.f32 0.0, %v3272_v59  ;;  %v3276_v33 = vand.u32 2147483647, %v7335_v14 }
 0x262   : > { %v3399_v27 = vmul.f32 1.442695, %v3335_v28  ;;  %v3339_v36 = vsub.f32 0.0, %v3275_v13  ;;  %v3207_v13 = vmax.f32 %v7321_v52, 0.0 }
 0x263   : > { %v3025_v35 = vpop.f32.mrb[4].mxu0  ;;  %v3401_v26 = vmul.f32 1.442695, %v3336_v9  ;;  %v3340_v15 = vsub.f32 0.0, %v3276_v33 }
 0x264   : > { %5265 = vpow2.f32 %v3399_v27  ;;  %v3407_v5 = vmul.f32 1.442695, %v3339_v36  ;;  %v7340_v31 = vadd.f32 %v3025_v35, %v7331_v58  ;;  %v3027_v47 = vpop.f32.mrb[5].mxu0 }
 0x265   : > { %v7345_v62 = vadd.f32 %v3027_v47, %v7331_v58  ;;  %v3029_v23 = vpop.f32.mrb[6].mxu0  ;;  %v3409_v22 = vmul.f32 1.442695, %v3340_v15 }
 0x266   : > { %5267 = vpow2.f32 %v3407_v5  ;;  %v3279_v2 = vand.u32 2147483647, %v7340_v31  ;;  %v7349_v12 = vadd.f32 %v3029_v23, %v7342_v16  ;;  %v3031_v7 = vpop.f32.mrb[7].mxu0 }
 0x267   : > { %v3280_v45 = vand.u32 2147483647, %v7345_v62  ;;  %v7353_v39 = vadd.f32 %v3031_v7, %v7342_v16  ;;  %5269 = vpow2.f32 %v3401_v26 }
 0x268   : > { %v3343_v55 = vsub.f32 0.0, %v3279_v2  ;;  %v3283_v37 = vand.u32 2147483647, %v7349_v12 }
 0x269   : > { %v3344_v44 = vsub.f32 0.0, %v3280_v45  ;;  %v3284_v24 = vand.u32 2147483647, %v7353_v39  ;;  %v3128_v41 = vpop.f32.mrb[0].mxu1 }
 0x26a   : > { %v3415_v63 = vmul.f32 1.442695, %v3343_v55  ;;  %v3347_v0 = vsub.f32 0.0, %v3283_v37  ;;  %v7359_v1 = vadd.f32 %v3128_v41, %v2856_v10  ;;  %v3130_v8 = vpop.f32.mrb[1].mxu1 }
 0x26b   : > { %v3035_v60 = vpop.f32.mrb[8].mxu0  ;;  %v3417_v48 = vmul.f32 1.442695, %v3344_v44  ;;  %v3348_v42 = vsub.f32 0.0, %v3284_v24  ;;  %v7365_v18 = vadd.f32 %v3130_v8, %v2856_v10  ;;  %v3132_v30 = vpop.f32.mrb[2].mxu1  ;;  %v3211_v24 = vmax.f32 %v7329_v43, 0.0 }
 0x26c   : > { %5271 = vpow2.f32 %v3415_v63  ;;  %v3423_v34 = vmul.f32 1.442695, %v3347_v0  ;;  %v3037_v51 = vpop.f32.mrb[9].mxu0  ;;  %v3273_v25 = vand.u32 2147483647, %v7359_v1  ;;  %v7369_v57 = vadd.f32 %v3132_v30, %v7323_v20  ;;  %v3134_v19 = vpop.f32.mrb[3].mxu1 }
 0x26d   : > { %v7357_v49 = vpop.f32.mrb[10].mxu0  ;;  %v7372_v54 = vadd.f32 %v3035_v60, %v7363_v46  ;;  %v3274_v61 = vand.u32 2147483647, %v7365_v18  ;;  %v3425_v40 = vmul.f32 1.442695, %v3348_v42  ;;  %v7377_v53 = vadd.f32 %v3134_v19, %v7323_v20 }
 0x26e   : > { %v5266_v11 = vpop.eup %5265  ;;  %5273 = vpow2.f32 %v3423_v34  ;;  %v7361_v50 = vpop.f32.mrb[11].mxu0  ;;  %v3337_v10 = vsub.f32 0.0, %v3273_v25  ;;  %v3277_v17 = vand.u32 2147483647, %v7369_v57  ;;  %v7393_v45 = vadd.f32 %v3037_v51, %v7363_v46 }
 0x26f   : > { %v3527_v21 = vadd.f32 1.0, %v5266_v11  ;;  %5275 = vpow2.f32 %v3409_v22  ;;  %v3338_v3 = vsub.f32 0.0, %v3274_v61  ;;  %v3278_v27 = vand.u32 2147483647, %v7377_v53 }
 0x270   : > { %v5268_v29 = vpop.eup %5267  ;;  %5277 = vpow2.f32 %v3417_v48  ;;  %v3403_v4 = vmul.f32 1.442695, %v3337_v10  ;;  %v3341_v59 = vsub.f32 0.0, %v3277_v17  ;;  %v3287_v9 = vand.u32 2147483647, %v7372_v54 }
 0x271   : > { %5279 = vlog2.f32 %v3527_v21  ;;  %v3531_v38 = vadd.f32 1.0, %v5268_v29  ;;  %v5270_v28 = vpop.eup %5269  ;;  %v3138_v36 = vpop.f32.mrb[4].mxu1  ;;  %v3405_v35 = vmul.f32 1.442695, %v3338_v3  ;;  %v3342_v2 = vsub.f32 0.0, %v3278_v27 }
 0x272   : > { %v3411_v5 = vmul.f32 1.442695, %v3341_v59  ;;  %v7385_v20 = vadd.f32 %v3138_v36, %v7331_v58  ;;  %v3140_v47 = vpop.f32.mrb[5].mxu1  ;;  %v3351_v34 = vsub.f32 0.0, %v3287_v9  ;;  %v3288_v29 = vand.u32 2147483647, %v7393_v45 }
 0x273   : > { %5281 = vlog2.f32 %v3531_v38  ;;  %v7379_v32 = vpop.f32.mrb[12].mxu0  ;;  %v7390_v26 = vadd.f32 %v3140_v47, %v7331_v58  ;;  %v3142_v15 = vpop.f32.mrb[6].mxu1  ;;  %v3528_v58 = vadd.f32 1.0, %v5270_v28  ;;  %v3413_v8 = vmul.f32 1.442695, %v3342_v2 }
 0x274   : > { %5283 = vpow2.f32 %v3425_v40  ;;  %v7387_v23 = vpop.f32.mrb[13].mxu0  ;;  %v3281_v63 = vand.u32 2147483647, %v7385_v20  ;;  %v3144_v0 = vpop.f32.mrb[7].mxu1  ;;  %v7404_v11 = vadd.f32 %v3142_v15, %v7342_v16 }
 0x275   : > { %5285 = vpow2.f32 %v3403_v4  ;;  %v7395_v55 = vpop.f32.mrb[14].mxu0  ;;  %v3282_v48 = vand.u32 2147483647, %v7390_v26  ;;  %v7407_v30 = vadd.f32 %v3144_v0, %v7342_v16  ;;  %v3431_v4 = vmul.f32 1.442695, %v3351_v34 }
 0x276   : > { %v5272_v33 = vpop.eup %5271  ;;  %5287 = vpow2.f32 %v3411_v5  ;;  %v7400_v22 = vpop.f32.mrb[15].mxu0  ;;  %v3345_v41 = vsub.f32 0.0, %v3281_v63  ;;  %v3285_v3 = vand.u32 2147483647, %v7404_v11 }
 0x277   : > { %v3535_v7 = vadd.f32 1.0, %v5272_v33  ;;  %v3346_v21 = vsub.f32 0.0, %v3282_v48  ;;  %v3215_v33 = vmax.f32 %v7340_v31, 0.0  ;;  %v3286_v5 = vand.u32 2147483647, %v7407_v30 }
 0x278   : > { %v5274_v37 = vpop.eup %5273  ;;  %v3419_v38 = vmul.f32 1.442695, %v3345_v41 }
 0x279   : > { %v5276_v60 = vpop.eup %5275  ;;  %5289 = vlog2.f32 %v3535_v7  ;;  %v3539_v42 = vadd.f32 1.0, %v5274_v37  ;;  %v3421_v17 = vmul.f32 1.442695, %v3346_v21  ;;  %v3148_v27 = vpop.f32.mrb[8].mxu1 }
 0x27a   : > { %v5278_v51 = vpop.eup %5277  ;;  %5291 = vpow2.f32 %v3405_v35  ;;  %v3532_v61 = vadd.f32 1.0, %v5276_v60  ;;  %v3349_v35 = vsub.f32 0.0, %v3285_v3  ;;  %v3150_v47 = vpop.f32.mrb[9].mxu1  ;;  %v7429_v63 = vadd.f32 %v3148_v27, %v7363_v46 }
 0x27b   : > { %v5280_v43 = vpop.eup %5279  ;;  %v7410_v25 = vpop.f32.mrb[16].mxu0  ;;  %5293 = vlog2.f32 %v3539_v42  ;;  %v3536_v28 = vadd.f32 1.0, %v5278_v51 }
 0x27c   : > { %v3592_v19 = vmul.f32 0.6931472, %v5280_v43  ;;  %v7412_v40 = vpop.f32.mrb[17].mxu0  ;;  %5295 = vlog2.f32 %v3528_v58  ;;  %v7431_v0 = vpop.f32.mrb[10].mxu1  ;;  %v3350_v58 = vsub.f32 0.0, %v3286_v5 }
 0x27d   : > { %v5282_v10 = vpop.eup %5281  ;;  %5297 = vpow2.f32 %v3419_v38  ;;  %v7416_v36 = vpop.f32.mrb[18].mxu0  ;;  %v3289_v43 = vand.u32 2147483647, %v7429_v63  ;;  %v3352_v38 = vsub.f32 0.0, %v3288_v29 }
 0x27e   : > { %v3600_v59 = vmul.f32 0.6931472, %v5282_v10  ;;  %v5284_v9 = vpop.eup %5283  ;;  %5299 = vpow2.f32 %v3413_v8  ;;  %v7420_v2 = vpop.f32.mrb[19].mxu0  ;;  %v7424_v15 = vadd.f32 %v3592_v19, %v3207_v13  ;;  %v3219_v13 = vmax.f32 %v7349_v12, 0.0 }
 0x27f   : > { %v5286_v7 = vpop.eup %5285  ;;  %5301 = vpow2.f32 %v3421_v17  ;;  %v7434_v48 = vpop.f32.mrb[11].mxu1  ;;  %v3540_v42 = vadd.f32 1.0, %v5284_v9  ;;  %v7443_v10 = vadd.f32 %v3150_v47, %v7363_v46  ;;  %v3353_v3 = vsub.f32 0.0, %v3289_v43 }
 0x280   : > { %8858 = vst [vmem:[#allocation6_spill] sm:$0xff] %v7424_v15  ;;  %v7426_v37 = vadd.f32 %v3600_v59, %v3211_v24  ;;  %v3529_v31 = vadd.f32 1.0, %v5286_v7  ;;  %5303 = vlog2.f32 %v3532_v61  ;;  %v5288_v34 = vpop.eup %5287  ;;  %v3427_v24 = vmul.f32 1.442695, %v3349_v35  ;;  %v2881_v19 = vpop.permute.xlu1 %2880 }
 0x281   : > { %5305 = vlog2.f32 %v3536_v28  ;;  %v3533_v41 = vadd.f32 1.0, %v5288_v34  ;;  %v3429_v61 = vmul.f32 1.442695, %v3350_v58  ;;  %v7448_v59 = vadd.f32 %v7357_v49, %v2881_v19  ;;  %v7450_v28 = vpop.f32.mrb[12].mxu1 }
 0x282   : > { %8859 = vst [vmem:[#allocation4_spill] sm:$0xff] %v7426_v37  ;;  %5307 = vlog2.f32 %v3529_v31  ;;  %v7457_v35 = vpop.f32.mrb[13].mxu1  ;;  %v3433_v29 = vmul.f32 1.442695, %v3352_v38  ;;  %v7483_v16 = vadd.f32 %v7431_v0, %v2881_v19 }
 0x283   : > { %v5290_v51 = vpop.eup %5289  ;;  %v7440_v8 = vpop.f32.mrb[20].mxu0  ;;  %5309 = vpow2.f32 %v3431_v4 }
 0x284   : > { %v5292_v21 = vpop.eup %5291  ;;  %v7445_v17 = vpop.f32.mrb[21].mxu0  ;;  %5311 = vlog2.f32 %v3533_v41  ;;  %v3608_v12 = vmul.f32 0.6931472, %v5290_v51  ;;  %v3435_v51 = vmul.f32 1.442695, %v3353_v3 }
 0x285   : > { %v7452_v27 = vpop.f32.mrb[22].mxu0  ;;  %v5294_v9 = vpop.eup %5293  ;;  %5313 = vpow2.f32 %v3427_v24  ;;  %v3530_v7 = vadd.f32 1.0, %v5292_v21  ;;  %v3290_v41 = vand.u32 2147483647, %v7443_v10  ;;  %v3291_v21 = vand.u32 2147483647, %v7448_v59 }
 0x286   : > { %8860 = vst [vmem:[#allocation5_spill] sm:$0xff] %v7452_v27  ;;  %v7459_v5 = vpop.f32.mrb[23].mxu0  ;;  %v7461_v47 = vpop.eup %5295  ;;  %v3616_v31 = vmul.f32 0.6931472, %v5294_v9  ;;  %5315 = vlog2.f32 %v3540_v42  ;;  %v7470_v52 = vadd.f32 %v3608_v12, %v3215_v33  ;;  %v3213_v9 = vmax.f32 %v7369_v57, 0.0 }
 0x287   : > { %8861 = vst [vmem:[#allocation7_spill] sm:$0xff] %v7459_v5  ;;  %v7464_v58 = vpop.f32.mrb[14].mxu1  ;;  %v5298_v34 = vpop.eup %5297  ;;  %5317 = vpow2.f32 %v3429_v61  ;;  %v3354_v33 = vsub.f32 0.0, %v3290_v41  ;;  %v3355_v12 = vsub.f32 0.0, %v3291_v21  ;;  %v7486_v57 = vadd.f32 %v7361_v50, %v2881_v19 }
 0x288   : > { %v7468_v43 = vpop.f32.mrb[15].mxu1  ;;  %v5300_v56 = vpop.eup %5299  ;;  %8862 = vst [vmem:[#allocation8_spill] sm:$0xff] %v7470_v52  ;;  %v7472_v46 = vadd.f32 %v3616_v31, %v3219_v13  ;;  %v3537_v3 = vadd.f32 1.0, %v5298_v34  ;;  %5319 = vlog2.f32 %v3530_v7  ;;  %v7491_v41 = vadd.f32 %v7434_v48, %v2881_v19 }
 0x289   : > { %v5302_v42 = vpop.eup %5301  ;;  %v3534_v31 = vadd.f32 1.0, %v5300_v56  ;;  %5321 = vpow2.f32 %v3435_v51  ;;  %v3439_v61 = vmul.f32 1.442695, %v3355_v12  ;;  %v7493_v21 = vpop.f32.mrb[16].mxu1  ;;  %v3293_v50 = vand.u32 2147483647, %v7483_v16 }
 0x28a   : > { %8863 = vst [vmem:[#allocation9_spill] sm:$0xff] %v7472_v46  ;;  %v5304_v24 = vpop.eup %5303  ;;  %v3538_v7 = vadd.f32 1.0, %v5302_v42  ;;  %5323 = vpow2.f32 %v3433_v29  ;;  %v7499_v44 = vpop.f32.mrb[17].mxu1  ;;  %v3437_v12 = vmul.f32 1.442695, %v3354_v33  ;;  %v8868_v5 = vmax.f32 %v7359_v1, 0.0 }
 0x28b   : > { %v7480_v13 = vpop.f32.mrb[24].mxu0  ;;  %v5306_v38 = vpop.eup %5305  ;;  %5325 = vlog2.f32 %v3537_v3  ;;  %v3292_v48 = vand.u32 2147483647, %v7486_v57  ;;  %v3357_v3 = vsub.f32 0.0, %v3293_v50  ;;  %v3594_v50 = vmul.f32 0.6931472, %v7461_v47 }
 0x28c   : > { %8864 = vst [vmem:[#allocation10_spill] sm:$0xff] %v7480_v13  ;;  %v7488_v4 = vpop.f32.mrb[25].mxu0  ;;  %v5308_v34 = vpop.eup %5307  ;;  %5327 = vpow2.f32 %v3439_v61  ;;  %v3294_v61 = vand.u32 2147483647, %v7491_v41  ;;  %v3602_v37 = vmul.f32 0.6931472, %v5304_v24 }
 0x28d   : > { %8865 = vst [vmem:[#allocation11_spill] sm:$0xff] %v7488_v4  ;;  %v7495_v60 = vpop.f32.mrb[26].mxu0  ;;  %v5310_v56 = vpop.eup %5309  ;;  %v3596_v51 = vmul.f32 0.6931472, %v5308_v34  ;;  %5329 = vlog2.f32 %v3534_v31  ;;  %v3443_v31 = vmul.f32 1.442695, %v3357_v3 }
 0x28e   : > { %8866 = vst [vmem:[#allocation12_spill] sm:$0xff] %v7495_v60  ;;  %v5312_v49 = vpop.eup %5311  ;;  %v2886_v42 = vpop.permute.xlu0 %2885  ;;  %5331 = vlog2.f32 %v3538_v7  ;;  %v3543_v33 = vadd.f32 1.0, %v5310_v56  ;;  %v3610_v7 = vmul.f32 0.6931472, %v5306_v38 }
 0x28f   : > { %v7503_v19 = vpop.f32.mrb[18].mxu1  ;;  %v5314_v52 = vpop.eup %5313  ;;  %v3604_v46 = vmul.f32 0.6931472, %v5312_v49  ;;  %v7506_v34 = vadd.f32 %v7379_v32, %v2886_v42  ;;  %v7515_v15 = vadd.f32 %v3596_v51, %v8868_v5  ;;  %v3356_v32 = vsub.f32 0.0, %v3292_v48 }
 0x290   : > { %v7508_v0 = vpop.f32.mrb[19].mxu1  ;;  %v7510_v60 = vpop.f32.mrb[27].mxu0  ;;  %v3541_v29 = vadd.f32 1.0, %v5314_v52  ;;  %v7533_v38 = vadd.f32 %v7450_v28, %v2886_v42  ;;  %v8874_v52 = vmax.f32 %v7325_v6, 0.0 }
 0x291   : > { %8867 = vst [vmem:[#allocation13_spill] sm:$0xff] %v7510_v60  ;;  %v5316_v4 = vpop.eup %5315  ;;  %8869 = vst [vmem:[#allocation14_spill] sm:$0xff] %v7515_v15  ;;  %v7517_v49 = vadd.f32 %v3604_v46, %v3213_v9  ;;  %v3358_v60 = vsub.f32 0.0, %v3294_v61  ;;  %v3295_v1 = vand.u32 2147483647, %v7506_v34  ;;  %v7528_v47 = vpop.f32.mrb[20].mxu1 }
 0x292   : > { %v5318_v13 = vpop.eup %5317  ;;  %5333 = vlog2.f32 %v3541_v29  ;;  %v3618_v9 = vmul.f32 0.6931472, %v5316_v4  ;;  %v3441_v48 = vmul.f32 1.442695, %v3356_v32  ;;  %v3297_v6 = vand.u32 2147483647, %v7533_v38 }
 0x293   : > { %v7520_v27 = vpop.f32.mrb[28].mxu0  ;;  %5335 = vpow2.f32 %v3437_v12  ;;  %v5320_v46 = vpop.eup %5319  ;;  %v3542_v51 = vadd.f32 1.0, %v5318_v13  ;;  %v3359_v3 = vsub.f32 0.0, %v3295_v1  ;;  %v7541_v13 = vadd.f32 %v3594_v50, %v8874_v52 }
 0x294   : > { %8870 = vst [vmem:[#allocation15_spill] sm:$0xff] %v7520_v27  ;;  %v7525_v5 = vpop.f32.mrb[29].mxu0  ;;  %5337 = vpow2.f32 %v3443_v31  ;;  %v5322_v29 = vpop.eup %5321  ;;  %v8875_v31 = vmax.f32 %v7335_v14, 0.0  ;;  %v8876_v1 = vmax.f32 %v7345_v62, 0.0  ;;  %v7559_v50 = vadd.f32 %v7457_v35, %v2886_v42 }
 0x295   : > { %8871 = vst [vmem:[#allocation16_spill] sm:$0xff] %v7525_v5  ;;  %v7530_v24 = vpop.f32.mrb[30].mxu0  ;;  %5339 = vlog2.f32 %v3543_v33  ;;  %v7535_v12 = vpop.f32.mrb[21].mxu1  ;;  %v7548_v33 = vadd.f32 %v7387_v23, %v2886_v42  ;;  %v8878_v23 = vmax.f32 %v7353_v39, 0.0  ;;  %v3447_v62 = vmul.f32 1.442695, %v3359_v3 }
 0x296   : > { %8872 = vst [vmem:[#allocation17_spill] sm:$0xff] %v7530_v24  ;;  %v7537_v61 = vpop.f32.mrb[31].mxu0  ;;  %v5324_v4 = vpop.eup %5323  ;;  %v7545_v56 = vadd.f32 %v3602_v37, %v8875_v31  ;;  %v3445_v24 = vmul.f32 1.442695, %v3358_v60  ;;  %v7554_v5 = vadd.f32 %v3610_v7, %v8876_v1  ;;  %5341 = vlog2.f32 %v3542_v51 }
 0x297   : > { %8873 = vst [vmem:[#allocation18_spill] sm:$0xff] %v7537_v61  ;;  %v7550_v32 = vpop.f32.mrb[22].mxu1  ;;  %v5326_v28 = vpop.eup %5325  ;;  %v7565_v60 = vadd.f32 %v3618_v9, %v8878_v23  ;;  %v3545_v31 = vadd.f32 1.0, %v5322_v29  ;;  %5343 = vpow2.f32 %v3441_v48  ;;  %v3544_v27 = vadd.f32 1.0, %v5324_v4 }
 0x298   : > { %8877 = vst [vmem:[#allocation19_spill] sm:$0xff] %v7554_v5  ;;  %v7561_v14 = vpop.f32.mrb[23].mxu1  ;;  %v5328_v37 = vpop.eup %5327  ;;  %v3612_v42 = vmul.f32 0.6931472, %v5326_v28  ;;  %5345 = vpow2.f32 %v3445_v24  ;;  %v3296_v5 = vand.u32 2147483647, %v7548_v33 }
 0x299   : > { %8879 = vst [vmem:[#allocation20_spill] sm:$0xff] %v7565_v60  ;;  %v5330_v7 = vpop.eup %5329  ;;  %v3547_v1 = vadd.f32 1.0, %v5328_v37  ;;  %v2891_v35 = vpop.permute.xlu1 %2890  ;;  %v3361_v39 = vsub.f32 0.0, %v3297_v6  ;;  %v3298_v9 = vand.u32 2147483647, %v7559_v50 }
 0x29a   : > { %v5332_v61 = vpop.eup %5331  ;;  %v7572_v51 = vadd.f32 %v7395_v55, %v2891_v35  ;;  %v3598_v29 = vmul.f32 0.6931472, %v5320_v46  ;;  %v3606_v37 = vmul.f32 0.6931472, %v5330_v7  ;;  %v7575_v23 = vpop.f32.mrb[24].mxu1  ;;  %v3360_v52 = vsub.f32 0.0, %v3296_v5 }
 0x29b   : > { %5347 = vlog2.f32 %v3547_v1  ;;  %8880 = vst [vmem:[#allocation21_spill] sm:$0xff] %v7575_v23  ;;  %v3451_v24 = vmul.f32 1.442695, %v3361_v39  ;;  %v3614_v6 = vmul.f32 0.6931472, %v5332_v61  ;;  %v3362_v60 = vsub.f32 0.0, %v3298_v9 }
 0x29c   : > { %v5334_v3 = vpop.eup %5333  ;;  %5349 = vpow2.f32 %v3447_v62  ;;  %v3299_v55 = vand.u32 2147483647, %v7572_v51  ;;  %v8881_v46 = vmax.f32 %v7385_v20, 0.0  ;;  %v8883_v62 = vmax.f32 %v7404_v11, 0.0  ;;  %v7589_v5 = vpop.f32.mrb[25].mxu1 }
 0x29d   : > { %v5336_v28 = vpop.eup %5335  ;;  %v3620_v4 = vmul.f32 0.6931472, %v5334_v3  ;;  %5351 = vlog2.f32 %v3545_v31  ;;  %v7587_v31 = vadd.f32 %v7464_v58, %v2891_v35  ;;  %v7592_v39 = vadd.f32 %v7400_v22, %v2891_v35  ;;  %v7594_v9 = vpop.f32.mrb[26].mxu1 }
 0x29e   : > { %v5338_v1 = vpop.eup %5337  ;;  %5353 = vlog2.f32 %v3544_v27  ;;  %v7580_v7 = vadd.f32 %v3612_v42, %v8881_v46  ;;  %v3546_v61 = vadd.f32 1.0, %v5336_v28  ;;  %v3363_v27 = vsub.f32 0.0, %v3299_v55  ;;  %v7601_v58 = vpop.f32.mrb[27].mxu1 }
 0x29f   : > { %v5340_v15 = vpop.eup %5339  ;;  %v7584_v48 = vadd.f32 %v3620_v4, %v8883_v62  ;;  %v3549_v23 = vadd.f32 1.0, %v5338_v1  ;;  %5355 = vpow2.f32 %v3451_v24  ;;  %v3449_v11 = vmul.f32 1.442695, %v3360_v52  ;;  %8885 = vst [vmem:[#allocation24_spill] sm:$0xff] %v7601_v58  ;;  %v2896_v55 = vpop.permute.xlu0 %2895 }
 0x2a0   : > { %8882 = vst [vmem:[#allocation22_spill] sm:$0xff] %v7580_v7  ;;  %v7599_v42 = vadd.f32 %v7468_v43, %v2891_v35  ;;  %v5342_v3 = vpop.eup %5341  ;;  %v3624_v4 = vmul.f32 0.6931472, %v5340_v15  ;;  %v3453_v22 = vmul.f32 1.442695, %v3362_v60  ;;  %v8886_v46 = vmax.f32 %v7365_v18, 0.0 }
 0x2a1   : > { %8884 = vst [vmem:[#allocation23_spill] sm:$0xff] %v7584_v48  ;;  %5357 = vlog2.f32 %v3549_v23  ;;  %v5344_v1 = vpop.eup %5343  ;;  %v3455_v23 = vmul.f32 1.442695, %v3363_v27  ;;  %v3301_v43 = vand.u32 2147483647, %v7587_v31  ;;  %v8887_v20 = vmax.f32 %v7377_v53, 0.0 }
 0x2a2   : > { %v7607_v62 = vadd.f32 %v3598_v29, %v8886_v46  ;;  %v5346_v35 = vpop.eup %5345  ;;  %5359 = vlog2.f32 %v3546_v61  ;;  %v3300_v24 = vand.u32 2147483647, %v7592_v39  ;;  %v7617_v60 = vadd.f32 %v7410_v25, %v2896_v55  ;;  %v7619_v28 = vpop.f32.mrb[28].mxu1 }
 0x2a3   : > { %v7613_v15 = vadd.f32 %v3606_v37, %v8887_v20  ;;  %8888 = vst [vmem:[#allocation25_spill] sm:$0xff] %v7619_v28  ;;  %v8889_v29 = vmax.f32 %v7390_v26, 0.0  ;;  %5361 = vpow2.f32 %v3449_v11  ;;  %v3365_v27 = vsub.f32 0.0, %v3301_v43  ;;  %v7626_v53 = vpop.f32.mrb[29].mxu1 }
 0x2a4   : > { %v3302_v52 = vand.u32 2147483647, %v7599_v42  ;;  %8890 = vst [vmem:[#allocation26_spill] sm:$0xff] %v7626_v53  ;;  %v8891_v61 = vmax.f32 %v7372_v54, 0.0  ;;  %v3548_v7 = vadd.f32 1.0, %v5344_v1  ;;  %5363 = vpow2.f32 %v3453_v22  ;;  %v7632_v28 = vpop.f32.mrb[30].mxu1 }
 0x2a5   : > { %v5348_v18 = vpop.eup %5347  ;;  %v7623_v46 = vadd.f32 %v3614_v6, %v8889_v29  ;;  %v3550_v26 = vadd.f32 1.0, %v5346_v35  ;;  %5365 = vpow2.f32 %v3455_v23  ;;  %v3459_v6 = vmul.f32 1.442695, %v3365_v27  ;;  %v7634_v43 = vpop.f32.mrb[31].mxu1 }
 0x2a6   : > { %v5350_v37 = vpop.eup %5349  ;;  %v7630_v20 = vadd.f32 %v3624_v4, %v8891_v61  ;;  %v3632_v25 = vmul.f32 0.6931472, %v5348_v18  ;;  %v3364_v11 = vsub.f32 0.0, %v3300_v24  ;;  %8892 = vst [vmem:[#allocation27_spill] sm:$0xff] %v7634_v43  ;;  %v8893_v53 = vmax.f32 %v7448_v59, 0.0 }
 0x2a7   : > { %v5352_v48 = vpop.eup %5351  ;;  %v3366_v54 = vsub.f32 0.0, %v3302_v52  ;;  %v3303_v4 = vand.u32 2147483647, %v7617_v60  ;;  %v7642_v1 = vadd.f32 %v7493_v21, %v2896_v55  ;;  %v3551_v22 = vadd.f32 1.0, %v5350_v37 }
 0x2a8   : > { %v5354_v29 = vpop.eup %5353  ;;  %v7638_v58 = vadd.f32 %v3632_v25, %v8893_v53  ;;  %5367 = vpow2.f32 %v3459_v6  ;;  %v3622_v35 = vmul.f32 0.6931472, %v5342_v3  ;;  %v3628_v27 = vmul.f32 0.6931472, %v5352_v48 }
 0x2a9   : > { %v5356_v24 = vpop.eup %5355  ;;  %v3367_v53 = vsub.f32 0.0, %v3303_v4  ;;  %5369 = vlog2.f32 %v3548_v7  ;;  %v3457_v52 = vmul.f32 1.442695, %v3364_v11  ;;  %v3305_v25 = vand.u32 2147483647, %v7642_v1 }
 0x2aa   : > { %v7650_v21 = vadd.f32 %v7412_v40, %v2896_v55  ;;  %5371 = vlog2.f32 %v3550_v26  ;;  %v3461_v18 = vmul.f32 1.442695, %v3366_v54  ;;  %v3553_v6 = vadd.f32 1.0, %v5356_v24  ;;  %v2901_v54 = vpop.permute.xlu1 %2900 }
 0x2ab   : > { %v5358_v61 = vpop.eup %5357  ;;  %v3463_v23 = vmul.f32 1.442695, %v3367_v53  ;;  %5373 = vlog2.f32 %v3551_v22  ;;  %v3369_v3 = vsub.f32 0.0, %v3305_v25  ;;  %v7653_v48 = vadd.f32 %v7499_v44, %v2896_v55  ;;  %v2906_v53 = vpop.permute.xlu0 %2905 }
 0x2ac   : > { %v3636_v37 = vmul.f32 0.6931472, %v5358_v61  ;;  %v5360_v59 = vpop.eup %5359  ;;  %v8894_v4 = vmax.f32 %v7429_v63, 0.0  ;;  %v3626_v11 = vmul.f32 0.6931472, %v5354_v29  ;;  %v8896_v43 = vmax.f32 %v7483_v16, 0.0 }
 0x2ad   : > { %5375 = vpow2.f32 %v3463_v23  ;;  %v5362_v26 = vpop.eup %5361  ;;  %v3467_v24 = vmul.f32 1.442695, %v3369_v3  ;;  %v3304_v44 = vand.u32 2147483647, %v7650_v21  ;;  %v7669_v16 = vadd.f32 %v7416_v36, %v2901_v54 }
 0x2ae   : > { %v7657_v7 = vadd.f32 %v3628_v27, %v8894_v4  ;;  %v7661_v40 = vadd.f32 %v3636_v37, %v8896_v43  ;;  %5377 = vpow2.f32 %v3457_v52  ;;  %v5364_v55 = vpop.eup %5363  ;;  %v8897_v29 = vmax.f32 %v7407_v30, 0.0 }
 0x2af   : > { %5379 = vpow2.f32 %v3461_v18  ;;  %v5366_v43 = vpop.eup %5365  ;;  %v3306_v61 = vand.u32 2147483647, %v7653_v48  ;;  %v8898_v52 = vmax.f32 %v7393_v45, 0.0  ;;  %v3630_v37 = vmul.f32 0.6931472, %v5360_v59 }
 0x2b0   : > { %8895 = vst [vmem:[#allocation28_spill] sm:$0xff] %v7657_v7  ;;  %v7673_v23 = vadd.f32 %v3622_v35, %v8897_v29  ;;  %5381 = vlog2.f32 %v3553_v6  ;;  %v3552_v3 = vadd.f32 1.0, %v5362_v26  ;;  %v3555_v18 = vadd.f32 1.0, %v5366_v43 }
 0x2b1   : > { %v7679_v25 = vadd.f32 %v3626_v11, %v8898_v52  ;;  %5383 = vpow2.f32 %v3467_v24  ;;  %v3368_v36 = vsub.f32 0.0, %v3304_v44  ;;  %v3307_v63 = vand.u32 2147483647, %v7669_v16 }
 0x2b2   : > { %v5368_v4 = vpop.eup %5367  ;;  %v7683_v30 = vadd.f32 %v7503_v19, %v2901_v54  ;;  %v3554_v35 = vadd.f32 1.0, %v5364_v55  ;;  %5385 = vlog2.f32 %v3555_v18  ;;  %v7686_v29 = vadd.f32 %v7420_v2, %v2901_v54 }
 0x2b3   : > { %v3557_v6 = vadd.f32 1.0, %v5368_v4  ;;  %v5370_v45 = vpop.eup %5369  ;;  %v3370_v26 = vsub.f32 0.0, %v3306_v61  ;;  %v3371_v43 = vsub.f32 0.0, %v3307_v63  ;;  %v8899_v44 = vmax.f32 %v7443_v10, 0.0 }
 0x2b4   : > { %v5372_v24 = vpop.eup %5371  ;;  %v3309_v55 = vand.u32 2147483647, %v7683_v30  ;;  %v3465_v2 = vmul.f32 1.442695, %v3368_v36  ;;  %v3308_v11 = vand.u32 2147483647, %v7686_v29  ;;  %v7703_v63 = vadd.f32 %v7440_v8, %v2906_v53 }
 0x2b5   : > { %v7692_v52 = vadd.f32 %v3630_v37, %v8899_v44  ;;  %5387 = vlog2.f32 %v3557_v6  ;;  %v5374_v18 = vpop.eup %5373  ;;  %v3471_v4 = vmul.f32 1.442695, %v3371_v43  ;;  %v3634_v44 = vmul.f32 0.6931472, %v5370_v45 }
 0x2b6   : > { %5389 = vlog2.f32 %v3552_v3  ;;  %v3373_v10 = vsub.f32 0.0, %v3309_v55  ;;  %v3469_v6 = vmul.f32 1.442695, %v3370_v26  ;;  %v3372_v59 = vsub.f32 0.0, %v3308_v11 }
 0x2b7   : > { %v5376_v22 = vpop.eup %5375  ;;  %5391 = vlog2.f32 %v3554_v35  ;;  %v3638_v27 = vmul.f32 0.6931472, %v5372_v24  ;;  %v7700_v43 = vadd.f32 %v7508_v0, %v2901_v54  ;;  %v7706_v55 = vadd.f32 %v7528_v47, %v2906_v53 }
 0x2b8   : > { %v5378_v37 = vpop.eup %5377  ;;  %5393 = vpow2.f32 %v3471_v4  ;;  %v3559_v3 = vadd.f32 1.0, %v5376_v22  ;;  %v3475_v36 = vmul.f32 1.442695, %v3373_v10  ;;  %v3473_v35 = vmul.f32 1.442695, %v3372_v59 }
 0x2b9   : > { %v5380_v19 = vpop.eup %5379  ;;  %5395 = vpow2.f32 %v3465_v2  ;;  %v3640_v45 = vmul.f32 0.6931472, %v5374_v18  ;;  %v3556_v26 = vadd.f32 1.0, %v5378_v37  ;;  %v8900_v22 = vmax.f32 %v7486_v57, 0.0 }
 0x2ba   : > { %v5382_v7 = vpop.eup %5381  ;;  %5397 = vpow2.f32 %v3475_v36  ;;  %v3558_v0 = vadd.f32 1.0, %v5380_v19  ;;  %v3311_v54 = vand.u32 2147483647, %v7703_v63  ;;  %v3310_v47 = vand.u32 2147483647, %v7700_v43 }
 0x2bb   : > { %v5384_v24 = vpop.eup %5383  ;;  %v7711_v4 = vadd.f32 %v3634_v44, %v8900_v22  ;;  %5399 = vpow2.f32 %v3469_v6  ;;  %v3644_v8 = vmul.f32 0.6931472, %v5382_v7  ;;  %v3313_v18 = vand.u32 2147483647, %v7706_v55 }
 0x2bc   : > { %v5386_v59 = vpop.eup %5385  ;;  %5401 = vlog2.f32 %v3559_v3  ;;  %v8901_v2 = vmax.f32 %v7491_v41, 0.0  ;;  %v3375_v57 = vsub.f32 0.0, %v3311_v54  ;;  %v8902_v19 = vmax.f32 %v7506_v34, 0.0  ;;  %v2911_v54 = vpop.permute.xlu1 %2910 }
 0x2bd   : > { %v3648_v37 = vmul.f32 0.6931472, %v5386_v59  ;;  %5403 = vpow2.f32 %v3473_v35  ;;  %v3561_v36 = vadd.f32 1.0, %v5384_v24  ;;  %v3377_v7 = vsub.f32 0.0, %v3313_v18 }
 0x2be   : > { %v7718_v10 = vadd.f32 %v3638_v27, %v8901_v2  ;;  %v7722_v6 = vadd.f32 %v3640_v45, %v8902_v19  ;;  %5405 = vlog2.f32 %v3556_v26  ;;  %v8903_v22 = vmax.f32 %v7572_v51, 0.0 }
 0x2bf   : > { %v5388_v44 = vpop.eup %5387  ;;  %v3479_v41 = vmul.f32 1.442695, %v3375_v57  ;;  %v7729_v27 = vadd.f32 %v7445_v17, %v2906_v53  ;;  %v8904_v59 = vmax.f32 %v7533_v38, 0.0  ;;  %5407 = vlog2.f32 %v3558_v0 }
 0x2c0   : > { %v5390_v3 = vpop.eup %5389  ;;  %v7726_v11 = vadd.f32 %v3648_v37, %v8903_v22  ;;  %v3652_v61 = vmul.f32 0.6931472, %v5388_v44  ;;  %v3243_v45 = vmax.f32 %v7669_v16, 0.0  ;;  %v3374_v26 = vsub.f32 0.0, %v3310_v47  ;;  %v8906_v37 = vld [vmem:[#allocation5_spill] sm:$0xff] }
 0x2c1   : > { %v5392_v35 = vpop.eup %5391  ;;  %v7733_v34 = vadd.f32 %v3644_v8, %v8904_v59  ;;  %v8905_v18 = vmax.f32 %v7587_v31, 0.0  ;;  %v7743_v17 = vadd.f32 %v7535_v12, %v2906_v53  ;;  %v7746_v57 = vadd.f32 %v8906_v37, %v2911_v54 }
 0x2c2   : > { %v5394_v24 = vpop.eup %5393  ;;  %5409 = vpow2.f32 %v3479_v41  ;;  %v3483_v8 = vmul.f32 1.442695, %v3377_v7  ;;  %v3642_v44 = vmul.f32 0.6931472, %v5390_v3  ;;  %v3312_v31 = vand.u32 2147483647, %v7729_v27 }
 0x2c3   : > { %v7740_v2 = vadd.f32 %v3652_v61, %v8905_v18  ;;  %v3563_v38 = vadd.f32 1.0, %v5394_v24  ;;  %v5396_v47 = vpop.eup %5395  ;;  %5411 = vlog2.f32 %v3561_v36  ;;  %v3646_v22 = vmul.f32 0.6931472, %v5392_v35 }
 0x2c4   : > { %v5398_v61 = vpop.eup %5397  ;;  %v3477_v53 = vmul.f32 1.442695, %v3374_v26  ;;  %v3314_v18 = vand.u32 2147483647, %v7743_v17  ;;  %v3315_v7 = vand.u32 2147483647, %v7746_v57  ;;  %v7756_v3 = vadd.f32 %v7550_v32, %v2911_v54 }
 0x2c5   : > { %5413 = vlog2.f32 %v3563_v38  ;;  %v5400_v59 = vpop.eup %5399  ;;  %v3565_v24 = vadd.f32 1.0, %v5398_v61  ;;  %v3560_v37 = vadd.f32 1.0, %v5396_v47  ;;  %v3800_v35 = vpack.c.bf16 %v7545_v56, %v7541_v13 }
 0x2c6   : > { %v5402_v41 = vpop.eup %5401  ;;  %5415 = vpow2.f32 %v3483_v8  ;;  %v8907_v26 = vmax.f32 %v7548_v33, 0.0  ;;  %v3376_v61 = vsub.f32 0.0, %v3312_v31  ;;  %v3379_v51 = vsub.f32 0.0, %v3315_v7 }
 0x2c7   : > { %v5404_v38 = vpop.eup %5403  ;;  %5417 = vlog2.f32 %v3565_v24  ;;  %v3562_v0 = vadd.f32 1.0, %v5400_v59  ;;  %v3317_v32 = vand.u32 2147483647, %v7756_v3  ;;  %3975 = vmatprep.subr.bf16.mxu0 %v3800_v35  ;;  %v3802_v8 = vpack.c.bf16 %v7613_v15, %v7607_v62  ;;  %v8910_v24 = vld [vmem:[#allocation6_spill] sm:$0xff]  ;;  %v8912_v35 = vld [vmem:[#allocation7_spill] sm:$0xff] }
 0x2c8   : > { %v7763_v19 = vadd.f32 %v3642_v44, %v8907_v26  ;;  %v5406_v12 = vpop.eup %5405  ;;  %5419 = vpow2.f32 %v3477_v53  ;;  %v8908_v47 = vmax.f32 %v7559_v50, 0.0  ;;  %v3656_v13 = vmul.f32 0.6931472, %v5402_v41  ;;  %v8909_v26 = vld [vmem:[#allocation4_spill] sm:$0xff] }
 0x2c9   : > { %v3378_v33 = vsub.f32 0.0, %v3314_v18  ;;  %v3487_v44 = vmul.f32 1.442695, %v3379_v51  ;;  %v8911_v31 = vpack.c.bf16 %v8909_v26, %v8910_v24  ;;  %v5408_v7 = vpop.eup %5407  ;;  %5421 = vlog2.f32 %v3560_v37  ;;  %4088 = vmatprep.subr.bf16.mxu1 %v3802_v8  ;;  %v8913_v51 = vld [vmem:[#allocation14_spill] sm:$0xff]  ;;  %v2916_v8 = vpop.permute.xlu0 %2915  ;;  %v8917_v24 = vld [vmem:[#allocation21_spill] sm:$0xff] }
 0x2ca   : > { %v7770_v56 = vadd.f32 %v3646_v22, %v8908_v47  ;;  %v3564_v53 = vadd.f32 1.0, %v5404_v38  ;;  %v3381_v59 = vsub.f32 0.0, %v3317_v32  ;;  %v7776_v36 = vadd.f32 %v8912_v35, %v2911_v54 }
 0x2cb   : > { %3976 = vmatpush1.bf16.msra.mxu0 %v8911_v31  ;;  %v3481_v50 = vmul.f32 1.442695, %v3376_v61  ;;  %5423 = vpow2.f32 %v3487_v44  ;;  %v7780_v15 = vadd.f32 %v7561_v14, %v2911_v54  ;;  %v8914_v22 = vpack.c.bf16 %v7517_v49, %v8913_v51 }
 0x2cc   : > { %v5410_v18 = vpop.eup %5409  ;;  %v3650_v41 = vmul.f32 0.6931472, %v5406_v12  ;;  %5425 = vlog2.f32 %v3562_v0  ;;  %v3491_v38 = vmul.f32 1.442695, %v3381_v59  ;;  %v8915_v47 = vmax.f32 %v7617_v60, 0.0  ;;  %v8916_v12 = vld [vmem:[#allocation10_spill] sm:$0xff] }
 0x2cd   : > { %4089 = vmatpush1.bf16.msra.mxu1 %v8914_v22  ;;  %v5412_v32 = vpop.eup %5411  ;;  %v3485_v14 = vmul.f32 1.442695, %v3378_v33  ;;  %v3316_v54 = vand.u32 2147483647, %v7776_v36  ;;  %5427 = vlog2.f32 %v3564_v53  ;;  %v3318_v49 = vand.u32 2147483647, %v7780_v15 }
 0x2ce   : > { %v7788_v26 = vadd.f32 %v3656_v13, %v8915_v47  ;;  %v7794_v0 = vadd.f32 %v8916_v12, %v2916_v8  ;;  %v7797_v31 = vadd.f32 %v8917_v24, %v2916_v8  ;;  %v3567_v35 = vadd.f32 1.0, %v5410_v18  ;;  %v8918_v24 = vld [vmem:[#allocation11_spill] sm:$0xff] }
 0x2cf   : > { %v5414_v44 = vpop.eup %5413  ;;  %5429 = vpow2.f32 %v3481_v50  ;;  %v3380_v60 = vsub.f32 0.0, %v3316_v54  ;;  %v3660_v51 = vmul.f32 0.6931472, %v5412_v32  ;;  %v3382_v33 = vsub.f32 0.0, %v3318_v49 }
 0x2d0   : > { %v3664_v59 = vmul.f32 0.6931472, %v5414_v44  ;;  %v5416_v13 = vpop.eup %5415  ;;  %5431 = vpow2.f32 %v3491_v38  ;;  %v3319_v22 = vand.u32 2147483647, %v7794_v0  ;;  %v3321_v61 = vand.u32 2147483647, %v7797_v31 }
 0x2d1   : > { %v5418_v47 = vpop.eup %5417  ;;  %v3489_v12 = vmul.f32 1.442695, %v3380_v60  ;;  %v7806_v37 = vadd.f32 %v8918_v24, %v2916_v8  ;;  %5433 = vpow2.f32 %v3485_v14  ;;  %v3493_v54 = vmul.f32 1.442695, %v3382_v33 }
 0x2d2   : > { %v7802_v53 = vadd.f32 %v3664_v59, %v3243_v45  ;;  %v5420_v18 = vpop.eup %5419  ;;  %v3668_v50 = vmul.f32 0.6931472, %v5418_v47  ;;  %v3383_v32 = vsub.f32 0.0, %v3319_v22  ;;  %5435 = vlog2.f32 %v3567_v35 }
 0x2d3   : > { %v3569_v44 = vadd.f32 1.0, %v5416_v13  ;;  %v3385_v49 = vsub.f32 0.0, %v3321_v61  ;;  %v5422_v16 = vpop.eup %5421  ;;  %v3654_v45 = vmul.f32 0.6931472, %v5408_v7  ;;  %v8919_v59 = vmax.f32 %v7642_v1, 0.0  ;;  %v2921_v7 = vpop.permute.xlu1 %2920 }
 0x2d4   : > { %v8920_v24 = vmax.f32 %v7683_v30, 0.0  ;;  %5437 = vpow2.f32 %v3489_v12  ;;  %v8921_v33 = vmax.f32 %v7592_v39, 0.0  ;;  %v3566_v47 = vadd.f32 1.0, %v5420_v18  ;;  %v8923_v39 = vld [vmem:[#allocation12_spill] sm:$0xff] }
 0x2d5   : > { %v7812_v60 = vadd.f32 %v3660_v51, %v8919_v59  ;;  %v5424_v14 = vpop.eup %5423  ;;  %5439 = vpow2.f32 %v3493_v54  ;;  %v3320_v61 = vand.u32 2147483647, %v7806_v37  ;;  %v3495_v51 = vmul.f32 1.442695, %v3383_v32 }
 0x2d6   : > { %v7816_v62 = vadd.f32 %v3668_v50, %v8920_v24  ;;  %v7820_v22 = vadd.f32 %v3650_v41, %v8921_v33  ;;  %v5426_v35 = vpop.eup %5425  ;;  %v3571_v13 = vadd.f32 1.0, %v5424_v14  ;;  %v7826_v30 = vadd.f32 %v7589_v5, %v2916_v8  ;;  %v8926_v8 = vld [vmem:[#allocation19_spill] sm:$0xff] }
 0x2d7   : > { %5441 = vlog2.f32 %v3569_v44  ;;  %v3499_v12 = vmul.f32 1.442695, %v3385_v49  ;;  %v3384_v50 = vsub.f32 0.0, %v3320_v61  ;;  %v7829_v41 = vadd.f32 %v8923_v39, %v2921_v7  ;;  %v7831_v18 = vpop.eup %5427 }
 0x2d8   : > { %8922 = vst [vmem:[#allocation5_spill] sm:$0xff] %v7826_v30  ;;  %v3658_v54 = vmul.f32 0.6931472, %v5422_v16  ;;  %5443 = vlog2.f32 %v3571_v13  ;;  %v3322_v59 = vand.u32 2147483647, %v7826_v30  ;;  %v7835_v24 = vadd.f32 %v7594_v9, %v2921_v7 }
 0x2d9   : > { %v5430_v14 = vpop.eup %5429  ;;  %v8924_v32 = vmax.f32 %v7599_v42, 0.0  ;;  %5445 = vlog2.f32 %v3566_v47  ;;  %v3251_v44 = vmax.f32 %v7746_v57, 0.0  ;;  %v3662_v33 = vmul.f32 0.6931472, %v5426_v35 }
 0x2da   : > { %v5432_v49 = vpop.eup %5431  ;;  %5447 = vpow2.f32 %v3495_v51  ;;  %v3386_v61 = vsub.f32 0.0, %v3322_v59  ;;  %v3497_v9 = vmul.f32 1.442695, %v3384_v50  ;;  %v3323_v39 = vand.u32 2147483647, %v7829_v41  ;;  %v8927_v51 = vld [vmem:[#allocation20_spill] sm:$0xff] }
 0x2db   : > { %v7839_v5 = vadd.f32 %v3654_v45, %v8924_v32  ;;  %v3573_v13 = vadd.f32 1.0, %v5432_v49  ;;  %5449 = vpow2.f32 %v3499_v12  ;;  %v5434_v1 = vpop.eup %5433  ;;  %v8925_v42 = vmax.f32 %v7650_v21, 0.0 }
 0x2dc   : > { %v3568_v47 = vadd.f32 1.0, %v5430_v14  ;;  %v3501_v32 = vmul.f32 1.442695, %v3386_v61  ;;  %v3325_v57 = vand.u32 2147483647, %v7835_v24  ;;  %v5436_v38 = vpop.eup %5435  ;;  %v3387_v35 = vsub.f32 0.0, %v3323_v39 }
 0x2dd   : > { %v7847_v45 = vadd.f32 %v3658_v54, %v8925_v42  ;;  %5451 = vlog2.f32 %v3573_v13  ;;  %v3804_v59 = vpack.c.bf16 %v8927_v51, %v8926_v8  ;;  %v3806_v12 = vpack.c.bf16 %v7673_v23, %v7623_v46  ;;  %v8929_v14 = vld [vmem:[#allocation13_spill] sm:$0xff]  ;;  %v2926_v13 = vpop.permute.xlu0 %2925  ;;  %v8931_v8 = vld [vmem:[#allocation24_spill] sm:$0xff] }
 0x2de   : > { %v5438_v50 = vpop.eup %5437  ;;  %v8928_v49 = vmax.f32 %v7653_v48, 0.0  ;;  %v3389_v54 = vsub.f32 0.0, %v3325_v57  ;;  %v7860_v61 = vadd.f32 %v8929_v14, %v2921_v7  ;;  %v3570_v39 = vadd.f32 1.0, %v5434_v1  ;;  %v8934_v51 = vld [vmem:[#allocation8_spill] sm:$0xff]  ;;  %v8937_v14 = vld [vmem:[#allocation22_spill] sm:$0xff]  ;;  %v8939_v1 = vld [vmem:[#allocation15_spill] sm:$0xff] }
 0x2df   : > { %v5440_v42 = vpop.eup %5439  ;;  %5453 = vpow2.f32 %v3497_v9  ;;  %v3503_v30 = vmul.f32 1.442695, %v3387_v35  ;;  %3977 = vmatprep.subr.bf16.mxu0 %v3804_v59  ;;  %4090 = vmatprep.subr.bf16.mxu1 %v3806_v12  ;;  %v7863_v46 = vadd.f32 %v8931_v8, %v2921_v7  ;;  %v7873_v9 = vadd.f32 %v8939_v1, %v2926_v13 }
 0x2e0   : > { %v7856_v16 = vadd.f32 %v3662_v33, %v8928_v49  ;;  %8930 = vst [vmem:[#allocation4_spill] sm:$0xff] %v7860_v61  ;;  %5455 = vpow2.f32 %v3501_v32  ;;  %v3507_v48 = vmul.f32 1.442695, %v3389_v54  ;;  %v3324_v23 = vand.u32 2147483647, %v7860_v61  ;;  %v8933_v33 = vld [vmem:[#allocation9_spill] sm:$0xff] }
 0x2e1   : > { %8932 = vst [vmem:[#allocation6_spill] sm:$0xff] %v7863_v46  ;;  %v8935_v57 = vpack.c.bf16 %v8933_v33, %v8934_v51  ;;  %v8936_v49 = vld [vmem:[#allocation23_spill] sm:$0xff]  ;;  %8940 = vst [vmem:[#allocation7_spill] sm:$0xff] %v7873_v9  ;;  %v5442_v35 = vpop.eup %5441  ;;  %v3672_v59 = vmul.f32 0.6931472, %v5436_v38  ;;  %5457 = vlog2.f32 %v3568_v47  ;;  %v3572_v54 = vadd.f32 1.0, %v5438_v50 }
 0x2e2   : > { %v8938_v21 = vpack.c.bf16 %v8936_v49, %v8937_v14  ;;  %v3326_v32 = vand.u32 2147483647, %v7863_v46  ;;  %v5444_v12 = vpop.eup %5443  ;;  %5459 = vpow2.f32 %v3503_v30  ;;  %v3388_v33 = vsub.f32 0.0, %v3324_v23  ;;  %v8942_v23 = vld [vmem:[#allocation25_spill] sm:$0xff] }
 0x2e3   : > { %3978 = vmatpush1.bf16.msra.mxu0 %v8935_v57  ;;  %v5446_v51 = vpop.eup %5445  ;;  %v3680_v57 = vmul.f32 0.6931472, %v5444_v12  ;;  %v3574_v49 = vadd.f32 1.0, %v5440_v42  ;;  %5461 = vpow2.f32 %v3507_v48  ;;  %v3666_v1 = vmul.f32 0.6931472, %v7831_v18 }
 0x2e4   : > { %4091 = vmatpush1.bf16.msra.mxu1 %v8938_v21  ;;  %v3390_v21 = vsub.f32 0.0, %v3326_v32  ;;  %v5448_v14 = vpop.eup %5447  ;;  %v3676_v38 = vmul.f32 0.6931472, %v5442_v35  ;;  %5463 = vlog2.f32 %v3570_v39  ;;  %v3327_v47 = vand.u32 2147483647, %v7873_v9  ;;  %v8943_v32 = vld [vmem:[#allocation16_spill] sm:$0xff]  ;;  %v2931_v9 = vpop.permute.xlu1 %2930 }
 0x2e5   : > { %v5450_v7 = vpop.eup %5449  ;;  %v8941_v46 = vmax.f32 %v7703_v63, 0.0  ;;  %v7884_v8 = vadd.f32 %v3680_v57, %v3251_v44  ;;  %v3505_v30 = vmul.f32 1.442695, %v3388_v33  ;;  %v7887_v12 = vadd.f32 %v8942_v23, %v2926_v13 }
 0x2e6   : > { %5465 = vlog2.f32 %v3572_v54  ;;  %v3509_v42 = vmul.f32 1.442695, %v3390_v21  ;;  %v3391_v48 = vsub.f32 0.0, %v3327_v47  ;;  %v7890_v18 = vadd.f32 %v8943_v32, %v2926_v13 }
 0x2e7   : > { %v7882_v50 = vadd.f32 %v3672_v59, %v8941_v46  ;;  %v5452_v39 = vpop.eup %5451  ;;  %5467 = vlog2.f32 %v3574_v49  ;;  %v3575_v63 = vadd.f32 1.0, %v5448_v14  ;;  %v3329_v46 = vand.u32 2147483647, %v7887_v12 }
 0x2e8   : > { %8944 = vst [vmem:[#allocation14_spill] sm:$0xff] %v7890_v18  ;;  %v3670_v44 = vmul.f32 0.6931472, %v5446_v51  ;;  %v3684_v59 = vmul.f32 0.6931472, %v5452_v39  ;;  %v3577_v57 = vadd.f32 1.0, %v5450_v7  ;;  %5469 = vpow2.f32 %v3505_v30 }
 0x2e9   : > { %v5454_v23 = vpop.eup %5453  ;;  %v3511_v54 = vmul.f32 1.442695, %v3391_v48  ;;  %v3393_v21 = vsub.f32 0.0, %v3329_v46  ;;  %v3328_v47 = vand.u32 2147483647, %v7890_v18  ;;  %v8945_v61 = vmax.f32 %v7706_v55, 0.0 }
 0x2ea   : > { %v5456_v32 = vpop.eup %5455  ;;  %v8946_v49 = vmax.f32 %v7756_v3, 0.0  ;;  %5471 = vpow2.f32 %v3509_v42  ;;  %v8947_v51 = vld [vmem:[#allocation26_spill] sm:$0xff]  ;;  %v8948_v46 = vld [vmem:[#allocation17_spill] sm:$0xff]  ;;  %v8949_v55 = vmax.f32 %v7686_v29, 0.0  ;;  %v8950_v3 = vmax.f32 %v7700_v43, 0.0 }
 0x2eb   : > { %v7899_v35 = vadd.f32 %v3676_v38, %v8945_v61  ;;  %v7906_v39 = vadd.f32 %v8947_v51, %v2926_v13  ;;  %v5458_v7 = vpop.eup %5457  ;;  %5473 = vlog2.f32 %v3575_v63  ;;  %v3515_v30 = vmul.f32 1.442695, %v3393_v21 }
 0x2ec   : > { %v7903_v14 = vadd.f32 %v3684_v59, %v8946_v49  ;;  %v3392_v48 = vsub.f32 0.0, %v3328_v47  ;;  %v7909_v33 = vadd.f32 %v8948_v46, %v2931_v9  ;;  %v5460_v18 = vpop.eup %5459  ;;  %v7913_v61 = vadd.f32 %v3666_v1, %v8949_v55  ;;  %v8951_v46 = vld [vmem:[#allocation18_spill] sm:$0xff] }
 0x2ed   : > { %v7917_v38 = vadd.f32 %v3670_v44, %v8950_v3  ;;  %5475 = vlog2.f32 %v3577_v57  ;;  %v5462_v42 = vpop.eup %5461  ;;  %v3576_v63 = vadd.f32 1.0, %v5454_v23  ;;  %v3578_v59 = vadd.f32 1.0, %v5456_v32 }
 0x2ee   : > { %v3821_v13 = vpack.c.bf16 %v7903_v14, %v7899_v35  ;;  %v3579_v21 = vadd.f32 1.0, %v5460_v18  ;;  %5477 = vpow2.f32 %v3511_v54  ;;  %v5464_v47 = vpop.eup %5463  ;;  %v3581_v49 = vadd.f32 1.0, %v5462_v42  ;;  %v8970_v35 = vld [vmem:[#allocation7_spill] sm:$0xff] }
 0x2ef   : > { %5479 = vpow2.f32 %v3515_v30  ;;  %v3513_v51 = vmul.f32 1.442695, %v3392_v48  ;;  %v3330_v29 = vand.u32 2147483647, %v7906_v39  ;;  %v3331_v43 = vand.u32 2147483647, %v7909_v33 }
 0x2f0   : > { %5481 = vlog2.f32 %v3579_v21  ;;  %v7924_v1 = vadd.f32 %v7632_v28, %v2931_v9  ;;  %v3808_v44 = vpack.c.bf16 %v7711_v4, %v7679_v25  ;;  %v5466_v57 = vpop.eup %5465  ;;  %v3259_v23 = vmax.f32 %v7829_v41, 0.0  ;;  %v8954_v21 = vld [vmem:[#allocation28_spill] sm:$0xff] }
 0x2f1   : > { %5483 = vlog2.f32 %v3581_v49  ;;  %v3394_v18 = vsub.f32 0.0, %v3330_v29  ;;  %v3810_v54 = vpack.c.bf16 %v7718_v10, %v7692_v52  ;;  %v5468_v32 = vpop.eup %5467  ;;  %v3674_v30 = vmul.f32 0.6931472, %v5458_v7  ;;  %v8953_v7 = vld [vmem:[#allocation27_spill] sm:$0xff] }
 0x2f2   : > { %5485 = vlog2.f32 %v3576_v63  ;;  %v3395_v48 = vsub.f32 0.0, %v3331_v43  ;;  %3979 = vmatprep.subr.bf16.mxu0 %v3808_v44  ;;  %v7932_v55 = vadd.f32 %v8951_v46, %v2931_v9  ;;  %v3678_v28 = vmul.f32 0.6931472, %v5464_v47  ;;  %v5470_v42 = vpop.eup %5469 }
 0x2f3   : > { %5487 = vlog2.f32 %v3578_v59  ;;  %v3517_v3 = vmul.f32 1.442695, %v3394_v18  ;;  %v3333_v25 = vand.u32 2147483647, %v7924_v1  ;;  %4092 = vmatprep.subr.bf16.mxu1 %v3810_v54  ;;  %v8952_v4 = vpack.c.bf16 %v7638_v58, %v7630_v20 }
 0x2f4   : > { %v3682_v52 = vmul.f32 0.6931472, %v5466_v57  ;;  %5489 = vpow2.f32 %v3513_v51  ;;  %v3519_v10 = vmul.f32 1.442695, %v3395_v48  ;;  %v7939_v63 = vadd.f32 %v8953_v7, %v2931_v9  ;;  %v5472_v59 = vpop.eup %5471 }
 0x2f5   : > { %3980 = vmatpush1.bf16.msra.mxu0 %v8952_v4  ;;  %v8955_v49 = vpack.c.bf16 %v7661_v40, %v8954_v21  ;;  %v3686_v47 = vmul.f32 0.6931472, %v5468_v32  ;;  %v3580_v29 = vadd.f32 1.0, %v5470_v42  ;;  %5491 = vpow2.f32 %v3517_v3  ;;  %v5474_v44 = vpop.eup %5473 }
 0x2f6   : > { %v3397_v43 = vsub.f32 0.0, %v3333_v25  ;;  %v3261_v58 = vmax.f32 %v7835_v24, 0.0  ;;  %v3582_v20 = vadd.f32 1.0, %v5472_v59  ;;  %5493 = vpow2.f32 %v3519_v10 }
 0x2f7   : > { %4093 = vmatpush1.bf16.msra.mxu1 %v8955_v49  ;;  %v3332_v51 = vand.u32 2147483647, %v7932_v55  ;;  %v5476_v57 = vpop.eup %5475  ;;  %v8956_v9 = vmax.f32 %v7729_v27, 0.0  ;;  %v8957_v54 = vmax.f32 %v7743_v17, 0.0  ;;  %5495 = vlog2.f32 %v3580_v29 }
 0x2f8   : > { %v3523_v48 = vmul.f32 1.442695, %v3397_v43  ;;  %v5478_v32 = vpop.eup %5477  ;;  %v8958_v46 = vmax.f32 %v7776_v36, 0.0  ;;  %5497 = vlog2.f32 %v3582_v20  ;;  %v3334_v24 = vand.u32 2147483647, %v7939_v63 }
 0x2f9   : > { %v3760_v18 = vadd.f32 %v3674_v30, %v8956_v9  ;;  %v3762_v40 = vadd.f32 %v3678_v28, %v8957_v54  ;;  %v3396_v25 = vsub.f32 0.0, %v3332_v51  ;;  %v5480_v4 = vpop.eup %5479  ;;  %v8959_v42 = vmax.f32 %v7780_v15, 0.0 }
 0x2fa   : > { %v3764_v3 = vadd.f32 %v3682_v52, %v8958_v46  ;;  %v3688_v7 = vmul.f32 0.6931472, %v5474_v44  ;;  %5499 = vpow2.f32 %v3523_v48  ;;  %v3812_v27 = vpack.c.bf16 %v7820_v22, %v7763_v19  ;;  %v5482_v17 = vpop.eup %5481  ;;  %v8966_v46 = vld [vmem:[#allocation5_spill] sm:$0xff] }
 0x2fb   : > { %v3766_v10 = vadd.f32 %v3686_v47, %v8959_v42  ;;  %v3692_v30 = vmul.f32 0.6931472, %v5476_v57  ;;  %v3521_v28 = vmul.f32 1.442695, %v3396_v25  ;;  %v3398_v21 = vsub.f32 0.0, %v3334_v24  ;;  %v5484_v52 = vpop.eup %5483  ;;  %v8967_v25 = vld [vmem:[#allocation4_spill] sm:$0xff] }
 0x2fc   : > { %v3814_v36 = vpack.c.bf16 %v7839_v5, %v7770_v56  ;;  %v3696_v49 = vmul.f32 0.6931472, %v5482_v17  ;;  %v3583_v59 = vadd.f32 1.0, %v5478_v32  ;;  %3981 = vmatprep.subr.bf16.mxu0 %v3812_v27  ;;  %v3816_v15 = vpack.c.bf16 %v7913_v61, %v7847_v45  ;;  %v5486_v29 = vpop.eup %5485 }
 0x2fd   : > { %v3818_v47 = vpack.c.bf16 %v7917_v38, %v7856_v16  ;;  %v3700_v43 = vmul.f32 0.6931472, %v5484_v52  ;;  %5501 = vpow2.f32 %v3521_v28  ;;  %v3525_v19 = vmul.f32 1.442695, %v3398_v21  ;;  %v5488_v5 = vpop.eup %5487 }
 0x2fe   : > { %4094 = vmatprep.subr.bf16.mxu1 %v3814_v36  ;;  %v8960_v22 = vpack.c.bf16 %v7726_v11, %v7722_v6  ;;  %v3820_v56 = vpack.c.bf16 %v3764_v3, %v3760_v18  ;;  %v8961_v44 = vmax.f32 %v7794_v0, 0.0  ;;  %v3771_v45 = vadd.f32 %v3696_v49, %v3259_v23  ;;  %v5490_v38 = vpop.eup %5489 }
 0x2ff   : > { %v8962_v16 = vpack.c.bf16 %v7740_v2, %v7733_v34  ;;  %v3822_v61 = vpack.c.bf16 %v3766_v10, %v3762_v40  ;;  %v8963_v51 = vmax.f32 %v7797_v31, 0.0  ;;  %v3773_v11 = vadd.f32 %v3700_v43, %v3261_v58  ;;  %v5492_v9 = vpop.eup %5491 }
 0x300   : > { %3982 = vmatpush1.bf16.msra.mxu0 %v8960_v22  ;;  %v3767_v20 = vadd.f32 %v3688_v7, %v8961_v44  ;;  %v3585_v6 = vadd.f32 1.0, %v5480_v4  ;;  %5503 = vpow2.f32 %v3525_v19  ;;  %v5494_v18 = vpop.eup %5493  ;;  %v3690_v41 = vmul.f32 0.6931472, %v5486_v29 }
 0x301   : > { %4095 = vmatpush1.bf16.msra.mxu1 %v8962_v16  ;;  %3983 = vmatprep.subr.bf16.mxu0 %v3816_v15  ;;  %v3769_v57 = vadd.f32 %v3692_v30, %v8963_v51  ;;  %5505 = vlog2.f32 %v3583_v59  ;;  %v8964_v34 = vpack.c.bf16 %v7802_v53, %v7788_v26  ;;  %v5496_v2 = vpop.eup %5495  ;;  %v3256_v54 = vmax.f32 %v7806_v37, 0.0  ;;  %v8968_v53 = vld [vmem:[#allocation6_spill] sm:$0xff] }
 0x302   : > { %4096 = vmatprep.subr.bf16.mxu1 %v3818_v47  ;;  %v3823_v0 = vpack.c.bf16 %v3771_v45, %v3767_v20  ;;  %v3694_v40 = vmul.f32 0.6931472, %v5488_v5  ;;  %v3584_v31 = vadd.f32 1.0, %v5490_v38  ;;  %v3587_v48 = vadd.f32 1.0, %v5494_v18  ;;  %v5498_v32 = vpop.eup %5497 }
 0x303   : > { %v3825_v23 = vpack.c.bf16 %v3773_v11, %v3769_v57  ;;  %v8965_v58 = vpack.c.bf16 %v7816_v62, %v7812_v60  ;;  %v3258_v3 = vmax.f32 %v8966_v46, 0.0  ;;  %v3260_v24 = vmax.f32 %v8967_v25, 0.0  ;;  %v5220_v46 = vld [vmem:[%s8755_s4 + $0x18] sm:$0xff]   ;;  %v5222_v25 = vld [vmem:[%s8755_s4 + $0x28] sm:$0xff]  }
 0x304   : > { %3984 = vmatpush1.bf16.msra.mxu0 %v8964_v34  ;;  %v3698_v4 = vmul.f32 0.6931472, %v5496_v2  ;;  %5507 = vlog2.f32 %v3585_v6  ;;  %v5500_v26 = vpop.eup %5499  ;;  %v3262_v42 = vmax.f32 %v8968_v53, 0.0  ;;  %v3702_v37 = vmul.f32 0.6931472, %v5498_v32  ;;  %v8971_v6 = vld [vmem:[#allocation14_spill] sm:$0xff] }
 0x305   : > { %4097 = vmatpush1.bf16.msra.mxu1 %v8965_v58  ;;  %3985 = vmatprep.subr.bf16.mxu0 %v3820_v56  ;;  %v3586_v10 = vadd.f32 1.0, %v5492_v9  ;;  %5509 = vlog2.f32 %v3587_v48  ;;  %v3768_v7 = vadd.f32 %v3690_v41, %v3256_v54  ;;  %v3589_v17 = vadd.f32 1.0, %v5500_v26  ;;  %v5217_v32 = vld [vmem:[%s8755_s4] sm:$0xff]   ;;  %v3850_v26 = vpop.permute.xlu0 %3849 }
 0x306   : > { %4098 = vmatprep.subr.bf16.mxu1 %v3822_v61  ;;  %v3772_v27 = vadd.f32 %v3698_v4, %v3260_v24  ;;  %v8969_v62 = vpack.c.bf16 %v7884_v8, %v7882_v50  ;;  %v3770_v60 = vadd.f32 %v3694_v40, %v3258_v3  ;;  %v3774_v30 = vadd.f32 %v3702_v37, %v3262_v42  ;;  %v5221_v3 = vld [vmem:[%s8755_s4 + $0x20] sm:$0xff]   ;;  %v5223_v24 = vld [vmem:[%s8755_s4 + $0x30] sm:$0xff]   ;;  %v5224_v4 = vld [vmem:[%s8755_s4 + $0x38] sm:$0xff]   ;;  %v3855_v42 = vpop.permute.xlu1 %3854 }
 0x307   : > { %5511 = vlog2.f32 %v3584_v31  ;;  %v5502_v28 = vpop.eup %5501  ;;  %v3263_v14 = vmax.f32 %v8970_v35, 0.0  ;;  %v3265_v20 = vmax.f32 %v7887_v12, 0.0  ;;  %v3269_v45 = vmax.f32 %v7924_v1, 0.0 }
 0x308   : > { %3986 = vmatpush1.bf16.msra.mxu0 %v8969_v62  ;;  %5513 = vlog2.f32 %v3589_v17  ;;  %v3824_v21 = vpack.c.bf16 %v3772_v27, %v3768_v7  ;;  %v3588_v36 = vadd.f32 1.0, %v5502_v28  ;;  %v3826_v52 = vpack.c.bf16 %v3774_v30, %v3770_v60 }
 0x309   : > { %4099 = vmatpush1.bf16.msra.mxu1 %v3821_v13  ;;  %5515 = vlog2.f32 %v3586_v10  ;;  %v3267_v13 = vmax.f32 %v7909_v33, 0.0  ;;  %v3264_v9 = vmax.f32 %v8971_v6, 0.0  ;;  %v3270_v1 = vmax.f32 %v7939_v63, 0.0  ;;  %v5219_v63 = vld [vmem:[%s8755_s4 + $0x10] sm:$0xff]  }
 0x30a   : > { %v5504_v49 = vpop.eup %5503  ;;  %3987 = vmatprep.subr.bf16.mxu0 %v3824_v21  ;;  %5517 = vlog2.f32 %v3588_v36  ;;  %4100 = vmatprep.subr.bf16.mxu1 %v3826_v52 }
 0x30b   : > { %v5506_v59 = vpop.eup %5505  ;;  %v3590_v15 = vadd.f32 1.0, %v5504_v49 }
 0x30c   : > { %3988 = vmatpush1.bf16.msra.mxu0 %v3823_v0  ;;  %v3704_v50 = vmul.f32 0.6931472, %v5506_v59  ;;  %v3268_v0 = vmax.f32 %v7932_v55, 0.0  ;;  %v5218_v55 = vld [vmem:[%s8755_s4 + $0x8] sm:$0xff]  }
 0x30d   : > { %4101 = vmatpush1.bf16.msra.mxu1 %v3825_v23  ;;  %5519 = vlog2.f32 %v3590_v15  ;;  %v3266_v23 = vmax.f32 %v7906_v39, 0.0  ;;  %v8972_v39 = vmov 0  }
 0x30e   : > { %v5508_v8 = vpop.eup %5507  ;;  %v3775_v56 = vadd.f32 %v3704_v50, %v3263_v14 }
 0x30f   : > { %v5510_v47 = vpop.eup %5509  ;;  %v3708_v19 = vmul.f32 0.6931472, %v5508_v8 }
 0x310   : > { %v3712_v29 = vmul.f32 0.6931472, %v5510_v47 }
 0x311   : > { %v5512_v43 = vpop.eup %5511  ;;  %v3777_v57 = vadd.f32 %v3708_v19, %v3265_v20 }
 0x312   : > { %v5514_v22 = vpop.eup %5513  ;;  %v3779_v5 = vadd.f32 %v3712_v29, %v3267_v13  ;;  %v3706_v61 = vmul.f32 0.6931472, %v5512_v43 }
 0x313   : > { %v5516_v44 = vpop.eup %5515  ;;  %v3716_v16 = vmul.f32 0.6931472, %v5514_v22 }
 0x314   : > { %v3827_v38 = vpack.c.bf16 %v3779_v5, %v3775_v56  ;;  %v5518_v51 = vpop.eup %5517  ;;  %v3710_v33 = vmul.f32 0.6931472, %v5516_v44  ;;  %v3776_v2 = vadd.f32 %v3706_v61, %v3264_v9 }
 0x315   : > { %v3781_v11 = vadd.f32 %v3716_v16, %v3269_v45  ;;  %v3714_v18 = vmul.f32 0.6931472, %v5518_v51  ;;  %v3860_v16 = vpop.permute.xlu0 %3859 }
 0x316   : > { %v3778_v40 = vadd.f32 %v3710_v33, %v3266_v23 }
 0x317   : > { %v5520_v41 = vpop.eup %5519  ;;  %v3829_v34 = vpack.c.bf16 %v3781_v11, %v3777_v57  ;;  %v3780_v12 = vadd.f32 %v3714_v18, %v3268_v0 }
 0x318   : > { %v3718_v54 = vmul.f32 0.6931472, %v5520_v41 }
 0x319   : > { %v3828_v48 = vpack.c.bf16 %v3780_v12, %v3776_v2 }
 0x31a   : > { %v3782_v31 = vadd.f32 %v3718_v54, %v3270_v1 }
 0x31b   : > { %3989 = vmatprep.subr.bf16.mxu0 %v3828_v48 }
 0x31c   : > { %v3830_v58 = vpack.c.bf16 %v3782_v31, %v3778_v40  ;;  %3990 = vmatpush1.bf16.msra.mxu0 %v3827_v38  ;;  %v3865_v31 = vpop.permute.xlu1 %3864 }
 0x31e   : > { %4102 = vmatprep.subr.bf16.mxu1 %v3830_v58 }
 0x31f   : > { %4103 = vmatpush1.bf16.msra.mxu1 %v3829_v34  ;;  %4008 = vmatmul.mubr.bf16.vlgmr.msra.gmra.mrb[32].mxu0 %v5217_v32 }
 0x320   : > { %4017 = vmatprep.mubr.bf16.mxu0 %v8972_v39 }
 0x322   : > { %4121 = vmatmul.mubr.bf16.vlgmr.msra.gmra.mrb[32].mxu1 %v5217_v32 }
 0x323   : > { %4130 = vmatprep.mubr.bf16.mxu1 %v8972_v39 }
 0x327   : > { %4018 = vmatmul.mubr.bf16.gmra.mrb[36].mxu0 %v5218_v55 }
 0x328   : > { %4027 = vmatprep.mubr.bf16.mxu0 %v8972_v39 }
 0x32a   : > { %4131 = vmatmul.mubr.bf16.gmra.mrb[36].mxu1 %v5218_v55 }
 0x32b   : > { %4140 = vmatprep.mubr.bf16.mxu1 %v8972_v39 }
 0x32f   : > { %4028 = vmatmul.mubr.bf16.gmra.mrb[40].mxu0 %v5219_v63 }
 0x330   : > { %4037 = vmatprep.mubr.bf16.mxu0 %v8972_v39 }
 0x332   : > { %4141 = vmatmul.mubr.bf16.gmra.mrb[40].mxu1 %v5219_v63 }
 0x333   : > { %4150 = vmatprep.mubr.bf16.mxu1 %v8972_v39 }
 0x337   : > { %4038 = vmatmul.mubr.bf16.gmra.mrb[44].mxu0 %v5220_v46 }
 0x338   : > { %4047 = vmatprep.mubr.bf16.mxu0 %v8972_v39 }
 0x33a   : > { %4151 = vmatmul.mubr.bf16.gmra.mrb[44].mxu1 %v5220_v46 }
 0x33b   : > { %4160 = vmatprep.mubr.bf16.mxu1 %v8972_v39 }
 0x33f   : > { %4048 = vmatmul.mubr.bf16.gmra.mrb[48].mxu0 %v5221_v3 }
 0x340   : > { %4057 = vmatprep.mubr.bf16.mxu0 %v8972_v39 }
 0x342   : > { %4161 = vmatmul.mubr.bf16.gmra.mrb[48].mxu1 %v5221_v3 }
 0x343   : > { %4170 = vmatprep.mubr.bf16.mxu1 %v8972_v39 }
 0x347   : > { %4058 = vmatmul.mubr.bf16.gmra.mrb[52].mxu0 %v5222_v25 }
 0x348   : > { %4067 = vmatprep.mubr.bf16.mxu0 %v8972_v39 }
 0x34a   : > { %4171 = vmatmul.mubr.bf16.gmra.mrb[52].mxu1 %v5222_v25 }
 0x34b   : > { %4180 = vmatprep.mubr.bf16.mxu1 %v8972_v39 }
 0x34f   : > { %4068 = vmatmul.mubr.bf16.gmra.mrb[56].mxu0 %v5223_v24 }
 0x350   : > { %4077 = vmatprep.mubr.bf16.mxu0 %v8972_v39 }
 0x352   : > { %4181 = vmatmul.mubr.bf16.gmra.mrb[56].mxu1 %v5223_v24 }
 0x353   : > { %4190 = vmatprep.mubr.bf16.mxu1 %v8972_v39 }
 0x357   : > { %4078 = vmatmul.mubr.bf16.gmra.mrb[60].mxu0 %v5224_v4 }
 0x358   : > { %4848 = vmatprep.mubr.bf16.mxu0 %v8972_v39 }
 0x35a   : > { %4191 = vmatmul.mubr.bf16.gmra.mrb[60].mxu1 %v5224_v4 }
 0x35b   : > { %4889 = vmatprep.mubr.bf16.mxu1 %v8972_v39 }
 0x3f2   : > { %v4009_v53 = vpop.f32.mrb[32].mxu0 }
 0x3f3   : > { %v8039_v37 = vadd.f32 %v4009_v53, %v3850_v26  ;;  %v4011_v10 = vpop.f32.mrb[33].mxu0 }
 0x3f4   : > { %v8041_v27 = vadd.f32 %v4011_v10, %v3850_v26  ;;  %v4013_v17 = vpop.f32.mrb[34].mxu0 }
 0x3f5   : > { %v4122_v7 = vpop.f32.mrb[32].mxu1  ;;  %v4265_v62 = vand.u32 2147483647, %v8039_v37  ;;  %v8046_v28 = vadd.f32 %v4013_v17, %v3855_v42  ;;  %v4015_v21 = vpop.f32.mrb[35].mxu0 }
 0x3f6   : > { %v8044_v60 = vadd.f32 %v4122_v7, %v3850_v26  ;;  %v4124_v30 = vpop.f32.mrb[33].mxu1  ;;  %v4266_v36 = vand.u32 2147483647, %v8041_v27  ;;  %v8051_v59 = vadd.f32 %v4015_v21, %v3855_v42 }
 0x3f7   : > { %v8049_v52 = vadd.f32 %v4124_v30, %v3850_v26  ;;  %v4126_v49 = vpop.f32.mrb[34].mxu1  ;;  %v4329_v15 = vsub.f32 0.0, %v4265_v62  ;;  %v4269_v14 = vand.u32 2147483647, %v8046_v28 }
 0x3f8   : > { %v4267_v8 = vand.u32 2147483647, %v8044_v60  ;;  %v4128_v50 = vpop.f32.mrb[35].mxu1  ;;  %v4330_v47 = vsub.f32 0.0, %v4266_v36  ;;  %v8056_v43 = vadd.f32 %v4126_v49, %v3855_v42  ;;  %v4270_v5 = vand.u32 2147483647, %v8051_v59 }
 0x3f9   : > { %v4268_v35 = vand.u32 2147483647, %v8049_v52  ;;  %v4393_v13 = vmul.f32 1.442695, %v4329_v15  ;;  %v4333_v56 = vsub.f32 0.0, %v4269_v14  ;;  %v8060_v6 = vadd.f32 %v4128_v50, %v3855_v42 }
 0x3fa   : > { %v4331_v29 = vsub.f32 0.0, %v4267_v8  ;;  %v4395_v19 = vmul.f32 1.442695, %v4330_v47  ;;  %v4271_v20 = vand.u32 2147483647, %v8056_v43  ;;  %v4019_v45 = vpop.f32.mrb[36].mxu0 }
 0x3fb   : > { %v4332_v22 = vsub.f32 0.0, %v4268_v35  ;;  %5521 = vpow2.f32 %v4393_v13  ;;  %v4401_v38 = vmul.f32 1.442695, %v4333_v56  ;;  %v4334_v51 = vsub.f32 0.0, %v4270_v5  ;;  %v4021_v33 = vpop.f32.mrb[37].mxu0 }
 0x3fc   : > { %v4397_v44 = vmul.f32 1.442695, %v4331_v29  ;;  %5523 = vpow2.f32 %v4395_v19  ;;  %v4335_v11 = vsub.f32 0.0, %v4271_v20  ;;  %v8062_v9 = vadd.f32 %v4019_v45, %v3860_v16  ;;  %v4023_v23 = vpop.f32.mrb[38].mxu0 }
 0x3fd   : > { %v4399_v61 = vmul.f32 1.442695, %v4332_v22  ;;  %v4132_v57 = vpop.f32.mrb[36].mxu1  ;;  %v4403_v18 = vmul.f32 1.442695, %v4334_v51  ;;  %v4025_v1 = vpop.f32.mrb[39].mxu0  ;;  %v8069_v39 = vadd.f32 %v4021_v33, %v3860_v16  ;;  %v8071_v55 = vadd.f32 %v4023_v23, %v3865_v31 }
 0x3fe   : > { %5525 = vpow2.f32 %v4397_v44  ;;  %v4134_v0 = vpop.f32.mrb[37].mxu1  ;;  %v8064_v41 = vadd.f32 %v4132_v57, %v3860_v16  ;;  %v4405_v2 = vmul.f32 1.442695, %v4335_v11  ;;  %v4272_v12 = vand.u32 2147483647, %v8060_v6  ;;  %v3870_v51 = vpop.permute.xlu0 %3869 }
 0x3ff   : > { %5527 = vpow2.f32 %v4399_v61  ;;  %v4136_v34 = vpop.f32.mrb[38].mxu1  ;;  %v4273_v54 = vand.u32 2147483647, %v8062_v9  ;;  %v8073_v25 = vadd.f32 %v4134_v0, %v3860_v16  ;;  %v4277_v42 = vand.u32 2147483647, %v8071_v55 }
 0x400   : > { %5529 = vpow2.f32 %v4401_v38  ;;  %v4138_v40 = vpop.f32.mrb[39].mxu1  ;;  %v4336_v48 = vsub.f32 0.0, %v4272_v12  ;;  %v4275_v58 = vand.u32 2147483647, %v8064_v41  ;;  %v8078_v10 = vadd.f32 %v4136_v34, %v3865_v31 }
 0x401   : > { %5531 = vpow2.f32 %v4403_v18  ;;  %v4337_v32 = vsub.f32 0.0, %v4273_v54  ;;  %v4274_v30 = vand.u32 2147483647, %v8069_v39  ;;  %v8081_v21 = vadd.f32 %v4025_v1, %v3865_v31 }
 0x402   : > { %5533 = vpow2.f32 %v4405_v2  ;;  %v4029_v63 = vpop.f32.mrb[40].mxu0  ;;  %v4407_v46 = vmul.f32 1.442695, %v4336_v48  ;;  %v4339_v3 = vsub.f32 0.0, %v4275_v58  ;;  %v4276_v8 = vand.u32 2147483647, %v8073_v25 }
 0x403   : > { %v8075_v24 = vpop.f32.mrb[41].mxu0  ;;  %v4409_v4 = vmul.f32 1.442695, %v4337_v32  ;;  %v4341_v50 = vsub.f32 0.0, %v4277_v42  ;;  %v4201_v22 = vmax.f32 %v8039_v37, 0.0  ;;  %v4338_v45 = vsub.f32 0.0, %v4274_v30 }
 0x404   : > { %5535 = vpow2.f32 %v4407_v46  ;;  %v4413_v53 = vmul.f32 1.442695, %v4339_v3  ;;  %v8083_v49 = vpop.f32.mrb[42].mxu0  ;;  %v4279_v5 = vand.u32 2147483647, %v8078_v10  ;;  %v4340_v11 = vsub.f32 0.0, %v4276_v8 }
 0x405   : > { %v5522_v26 = vpop.eup %5521  ;;  %v4142_v7 = vpop.f32.mrb[40].mxu1  ;;  %5537 = vpow2.f32 %v4409_v4  ;;  %v4278_v16 = vand.u32 2147483647, %v8081_v21  ;;  %v4417_v33 = vmul.f32 1.442695, %v4341_v50  ;;  %v8097_v0 = vadd.f32 %v4138_v40, %v3865_v31 }
 0x406   : > { %v5524_v17 = vpop.eup %5523  ;;  %v4521_v62 = vadd.f32 1.0, %v5522_v26  ;;  %v4144_v36 = vpop.f32.mrb[41].mxu1  ;;  %v8101_v2 = vadd.f32 %v4029_v63, %v3870_v51  ;;  %v4343_v48 = vsub.f32 0.0, %v4279_v5  ;;  %v4203_v31 = vmax.f32 %v8044_v60, 0.0 }
 0x407   : > { %v8086_v47 = vpop.f32.mrb[42].mxu1  ;;  %v8088_v35 = vpop.f32.mrb[43].mxu0  ;;  %v4522_v56 = vadd.f32 1.0, %v5524_v17  ;;  %v4280_v58 = vand.u32 2147483647, %v8097_v0  ;;  %v4342_v63 = vsub.f32 0.0, %v4278_v16  ;;  %v8116_v42 = vadd.f32 %v4142_v7, %v3870_v51 }
 0x408   : > { %v5526_v15 = vpop.eup %5525  ;;  %5539 = vlog2.f32 %v4521_v62  ;;  %v8090_v29 = vpop.f32.mrb[43].mxu1  ;;  %v4411_v46 = vmul.f32 1.442695, %v4338_v45  ;;  %v4415_v26 = vmul.f32 1.442695, %v4340_v11  ;;  %v4205_v50 = vmax.f32 %v8046_v28, 0.0 }
 0x409   : > { %v5528_v14 = vpop.eup %5527  ;;  %v4523_v13 = vadd.f32 1.0, %v5526_v15  ;;  %5541 = vpow2.f32 %v4413_v53  ;;  %v4344_v53 = vsub.f32 0.0, %v4280_v58  ;;  %v4281_v30 = vand.u32 2147483647, %v8101_v2 }
 0x40a   : > { %v5530_v19 = vpop.eup %5529  ;;  %v8095_v61 = vpop.f32.mrb[44].mxu0  ;;  %v4524_v57 = vadd.f32 1.0, %v5528_v14  ;;  %v8122_v15 = vadd.f32 %v8075_v24, %v3870_v51  ;;  %v4421_v14 = vmul.f32 1.442695, %v4343_v48  ;;  %v4419_v5 = vmul.f32 1.442695, %v4342_v63 }
 0x40b   : > { %v5532_v44 = vpop.eup %5531  ;;  %5543 = vlog2.f32 %v4523_v13  ;;  %v4525_v20 = vadd.f32 1.0, %v5530_v19  ;;  %v8099_v18 = vpop.f32.mrb[45].mxu0  ;;  %v8125_v13 = vadd.f32 %v4144_v36, %v3870_v51  ;;  %v4207_v24 = vmax.f32 %v8056_v43, 0.0 }
 0x40c   : > { %v5534_v38 = vpop.eup %5533  ;;  %v4526_v34 = vadd.f32 1.0, %v5532_v44  ;;  %v8105_v1 = vpop.f32.mrb[46].mxu0  ;;  %v4423_v45 = vmul.f32 1.442695, %v4344_v53  ;;  %v4283_v28 = vand.u32 2147483647, %v8116_v42 }
 0x40d   : > { %5545 = vlog2.f32 %v4525_v20  ;;  %v4527_v23 = vadd.f32 1.0, %v5534_v38  ;;  %v8103_v12 = vpop.f32.mrb[44].mxu1  ;;  %v8111_v40 = vpop.f32.mrb[47].mxu0  ;;  %v4345_v51 = vsub.f32 0.0, %v4281_v30 }
 0x40e   : > { %5547 = vlog2.f32 %v4522_v56  ;;  %v8109_v32 = vpop.f32.mrb[45].mxu1  ;;  %v5536_v4 = vpop.eup %5535 }
 0x40f   : > { %5549 = vlog2.f32 %v4527_v23  ;;  %v8114_v3 = vpop.f32.mrb[46].mxu1  ;;  %v4528_v62 = vadd.f32 1.0, %v5536_v4  ;;  %v5538_v8 = vpop.eup %5537  ;;  %v4284_v23 = vand.u32 2147483647, %v8125_v13  ;;  %v4425_v56 = vmul.f32 1.442695, %v4345_v51 }
 0x410   : > { %5551 = vlog2.f32 %v4524_v57  ;;  %v8118_v17 = vpop.f32.mrb[47].mxu1  ;;  %v4529_v38 = vadd.f32 1.0, %v5538_v8  ;;  %v4282_v57 = vand.u32 2147483647, %v8122_v15  ;;  %v4347_v8 = vsub.f32 0.0, %v4283_v28 }
 0x411   : > { %5553 = vlog2.f32 %v4526_v34 }
 0x412   : > { %5555 = vpow2.f32 %v4417_v33  ;;  %v5540_v19 = vpop.eup %5539  ;;  %v8129_v44 = vpop.f32.mrb[48].mxu0  ;;  %v4346_v7 = vsub.f32 0.0, %v4282_v57 }
 0x413   : > { %5557 = vpow2.f32 %v4411_v46  ;;  %v5542_v20 = vpop.eup %5541  ;;  %v8133_v16 = vpop.f32.mrb[49].mxu0  ;;  %v4586_v33 = vmul.f32 0.6931472, %v5540_v19 }
 0x414   : > { %5559 = vpow2.f32 %v4415_v26  ;;  %v8141_v43 = vpop.f32.mrb[50].mxu0  ;;  %v4531_v63 = vadd.f32 1.0, %v5542_v20 }
 0x415   : > { %v5544_v36 = vpop.eup %5543  ;;  %5561 = vlog2.f32 %v4528_v62  ;;  %v8136_v11 = vpop.f32.mrb[48].mxu1  ;;  %v8158_v46 = vadd.f32 %v4586_v33, %v4201_v22  ;;  %v4429_v33 = vmul.f32 1.442695, %v4347_v8 }
 0x416   : > { %5563 = vpow2.f32 %v4421_v14  ;;  %v8139_v34 = vpop.f32.mrb[49].mxu1  ;;  %v8147_v26 = vpop.f32.mrb[51].mxu0  ;;  %v4590_v62 = vmul.f32 0.6931472, %v5544_v36 }
 0x417   : > { %v5546_v48 = vpop.eup %5545  ;;  %5565 = vpow2.f32 %v4419_v5  ;;  %v8145_v4 = vpop.f32.mrb[50].mxu1  ;;  %8973 = vst [vmem:[#allocation10_spill] sm:$0xff] %v8158_v46 }
 0x418   : > { %v8149_v53 = vpop.eup %5547  ;;  %v4594_v30 = vmul.f32 0.6931472, %v5546_v48  ;;  %5567 = vpow2.f32 %v4423_v45  ;;  %v8151_v14 = vpop.f32.mrb[51].mxu1  ;;  %v4348_v45 = vsub.f32 0.0, %v4284_v23  ;;  %v8173_v37 = vadd.f32 %v4590_v62, %v4203_v31 }
 0x419   : > { %v5550_v19 = vpop.eup %5549  ;;  %5569 = vlog2.f32 %v4529_v38  ;;  %v3875_v5 = vpop.permute.xlu1 %3874 }
 0x41a   : > { %v8154_v20 = vpop.eup %5551  ;;  %v8160_v54 = vadd.f32 %v4594_v30, %v4205_v50  ;;  %v4598_v36 = vmul.f32 0.6931472, %v5550_v19  ;;  %5571 = vlog2.f32 %v4531_v63  ;;  %v8167_v51 = vadd.f32 %v8083_v49, %v3875_v5  ;;  %v8169_v57 = vpop.f32.mrb[52].mxu0  ;;  %8975 = vst [vmem:[#allocation11_spill] sm:$0xff] %v8173_v37 }
 0x41b   : > { %v8162_v28 = vpop.eup %5553  ;;  %v8179_v23 = vpop.f32.mrb[53].mxu0  ;;  %5573 = vpow2.f32 %v4425_v56  ;;  %v4427_v19 = vmul.f32 1.442695, %v4346_v7  ;;  %v4431_v62 = vmul.f32 1.442695, %v4348_v45  ;;  %v8190_v8 = vadd.f32 %v8086_v47, %v3875_v5 }
 0x41c   : > { %8974 = vst [vmem:[#allocation21_spill] sm:$0xff] %v8160_v54  ;;  %v5556_v58 = vpop.eup %5555  ;;  %v8177_v50 = vadd.f32 %v4598_v36, %v4207_v24  ;;  %8977 = vst [vmem:[#allocation19_spill] sm:$0xff] %v8179_v23  ;;  %v8184_v38 = vpop.f32.mrb[54].mxu0  ;;  %v4285_v24 = vand.u32 2147483647, %v8167_v51  ;;  %v8201_v30 = vadd.f32 %v8088_v35, %v3875_v5 }
 0x41d   : > { %v5558_v63 = vpop.eup %5557  ;;  %v4533_v49 = vadd.f32 1.0, %v5556_v58  ;;  %v8182_v48 = vpop.f32.mrb[52].mxu1  ;;  %8979 = vst [vmem:[#allocation13_spill] sm:$0xff] %v8184_v38 }
 0x41e   : > { %8976 = vst [vmem:[#allocation12_spill] sm:$0xff] %v8177_v50  ;;  %8978 = vst [vmem:[#allocation20_spill] sm:$0xff] %v8182_v48  ;;  %v5560_v60 = vpop.eup %5559  ;;  %v8192_v36 = vpop.f32.mrb[53].mxu1  ;;  %v4287_v50 = vand.u32 2147483647, %v8190_v8  ;;  %v4530_v54 = vadd.f32 1.0, %v5558_v63 }
 0x41f   : > { %8980 = vst [vmem:[#allocation24_spill] sm:$0xff] %v8192_v36  ;;  %v8194_v22 = vpop.f32.mrb[55].mxu0  ;;  %v8196_v56 = vpop.eup %5561  ;;  %5575 = vlog2.f32 %v4533_v49  ;;  %v4349_v38 = vsub.f32 0.0, %v4285_v24  ;;  %v4286_v47 = vand.u32 2147483647, %v8201_v30  ;;  %v8215_v36 = vadd.f32 %v8090_v29, %v3875_v5 }
 0x420   : > { %8981 = vst [vmem:[#allocation9_spill] sm:$0xff] %v8194_v22  ;;  %v8203_v45 = vpop.f32.mrb[54].mxu1  ;;  %v5564_v31 = vpop.eup %5563  ;;  %5577 = vpow2.f32 %v4429_v33  ;;  %v4351_v33 = vsub.f32 0.0, %v4287_v50 }
 0x421   : > { %8982 = vst [vmem:[#allocation8_spill] sm:$0xff] %v8203_v45  ;;  %v8208_v46 = vpop.f32.mrb[55].mxu1  ;;  %v5566_v49 = vpop.eup %5565  ;;  %v4535_v7 = vadd.f32 1.0, %v5564_v31  ;;  %5579 = vpow2.f32 %v4427_v19  ;;  %v4532_v45 = vadd.f32 1.0, %v5560_v60  ;;  %v4588_v19 = vmul.f32 0.6931472, %v8149_v53 }
 0x422   : > { %8983 = vst [vmem:[#allocation23_spill] sm:$0xff] %v8208_v46  ;;  %v5568_v35 = vpop.eup %5567  ;;  %v8211_v22 = vpop.permute.xlu0 %3879  ;;  %5581 = vpow2.f32 %v4431_v62  ;;  %v4534_v58 = vadd.f32 1.0, %v5566_v49  ;;  %v4350_v62 = vsub.f32 0.0, %v4286_v47  ;;  %v4288_v29 = vand.u32 2147483647, %v8215_v36 }
 0x423   : > { %v5570_v37 = vpop.eup %5569  ;;  %5583 = vlog2.f32 %v4535_v7  ;;  %v8219_v63 = vadd.f32 %v8095_v61, %v8211_v22  ;;  %v8221_v31 = vpop.f32.mrb[56].mxu0  ;;  %v4536_v7 = vadd.f32 1.0, %v5568_v35  ;;  %v4437_v60 = vmul.f32 1.442695, %v4351_v33 }
 0x424   : > { %8984 = vst [vmem:[#allocation22_spill] sm:$0xff] %v8221_v31  ;;  %v8225_v24 = vpop.f32.mrb[57].mxu0  ;;  %v5572_v46 = vpop.eup %5571  ;;  %v4602_v23 = vmul.f32 0.6931472, %v5570_v37  ;;  %5585 = vlog2.f32 %v4530_v54  ;;  %v4433_v31 = vmul.f32 1.442695, %v4349_v38  ;;  %v8246_v54 = vadd.f32 %v8099_v18, %v8211_v22 }
 0x425   : > { %8985 = vst [vmem:[#allocation15_spill] sm:$0xff] %v8225_v24  ;;  %v8229_v5 = vpop.f32.mrb[56].mxu1  ;;  %v8231_v61 = vpop.f32.mrb[58].mxu0  ;;  %5587 = vlog2.f32 %v4532_v45  ;;  %v4352_v24 = vsub.f32 0.0, %v4288_v29  ;;  %v4289_v35 = vand.u32 2147483647, %v8219_v63 }
 0x426   : > { %8986 = vst [vmem:[#allocation25_spill] sm:$0xff] %v8229_v5  ;;  %8987 = vst [vmem:[#allocation16_spill] sm:$0xff] %v8231_v61  ;;  %v8233_v53 = vpop.f32.mrb[57].mxu1  ;;  %v8235_v49 = vpop.f32.mrb[59].mxu0  ;;  %5589 = vlog2.f32 %v4534_v58  ;;  %v4435_v48 = vmul.f32 1.442695, %v4350_v62  ;;  %v8242_v61 = vadd.f32 %v8103_v12, %v8211_v22 }
 0x427   : > { %8988 = vst [vmem:[#allocation26_spill] sm:$0xff] %v8233_v53  ;;  %8989 = vst [vmem:[#allocation17_spill] sm:$0xff] %v8235_v49  ;;  %v5574_v47 = vpop.eup %5573  ;;  %v8238_v50 = vpop.f32.mrb[58].mxu1  ;;  %v8992_v45 = vmax.f32 %v8041_v27, 0.0  ;;  %5591 = vlog2.f32 %v4536_v7  ;;  %v4439_v29 = vmul.f32 1.442695, %v4352_v24 }
 0x428   : > { %8990 = vst [vmem:[#allocation18_spill] sm:$0xff] %v8238_v50  ;;  %v8248_v38 = vpop.f32.mrb[59].mxu1  ;;  %v4353_v49 = vsub.f32 0.0, %v4289_v35  ;;  %v4592_v62 = vmul.f32 0.6931472, %v8154_v20  ;;  %5593 = vpow2.f32 %v4433_v31  ;;  %v8993_v18 = vmax.f32 %v8062_v9, 0.0  ;;  %v8262_v24 = vpop.permute.xlu1 %3884 }
 0x429   : > { %8991 = vst [vmem:[#allocation27_spill] sm:$0xff] %v8248_v38  ;;  %v5576_v37 = vpop.eup %5575  ;;  %v8252_v33 = vadd.f32 %v4588_v19, %v8992_v45  ;;  %v4606_v50 = vmul.f32 0.6931472, %v5572_v46  ;;  %v4537_v38 = vadd.f32 1.0, %v5574_v47  ;;  %5595 = vpow2.f32 %v4437_v60 }
 0x42a   : > { %v5578_v58 = vpop.eup %5577  ;;  %v4610_v12 = vmul.f32 0.6931472, %v5576_v37  ;;  %v8257_v5 = vadd.f32 %v4602_v23, %v8993_v18  ;;  %v4291_v27 = vand.u32 2147483647, %v8242_v61  ;;  %v8260_v19 = vpop.f32.mrb[60].mxu0  ;;  %v8994_v35 = vmax.f32 %v8071_v55, 0.0 }
 0x42b   : > { %v5580_v53 = vpop.eup %5579  ;;  %5597 = vpow2.f32 %v4435_v48  ;;  %v4441_v46 = vmul.f32 1.442695, %v4353_v49  ;;  %v4290_v31 = vand.u32 2147483647, %v8246_v54  ;;  %v8269_v9 = vpop.f32.mrb[61].mxu0  ;;  %v8274_v37 = vadd.f32 %v8105_v1, %v8262_v24 }
 0x42c   : > { %v5582_v7 = vpop.eup %5581  ;;  %v8266_v20 = vadd.f32 %v4610_v12, %v8994_v35  ;;  %8995 = vst [vmem:[#allocation28_spill] sm:$0xff] %v8269_v9  ;;  %v4596_v60 = vmul.f32 0.6931472, %v8162_v28  ;;  %5599 = vpow2.f32 %v4439_v29  ;;  %v4355_v47 = vsub.f32 0.0, %v4291_v27  ;;  %v8278_v55 = vpop.f32.mrb[62].mxu0 }
 0x42d   : > { %v5584_v23 = vpop.eup %5583  ;;  %v8276_v45 = vpop.f32.mrb[60].mxu1  ;;  %8997 = vst [vmem:[#allocation4_spill] sm:$0xff] %v8278_v55  ;;  %v4539_v12 = vadd.f32 1.0, %v5578_v58  ;;  %v4354_v18 = vsub.f32 0.0, %v4290_v31  ;;  %v4600_v28 = vmul.f32 0.6931472, %v8196_v56  ;;  %5601 = vlog2.f32 %v4537_v38 }
 0x42e   : > { %8996 = vst [vmem:[#allocation5_spill] sm:$0xff] %v8276_v45  ;;  %v4614_v49 = vmul.f32 0.6931472, %v5584_v23  ;;  %v8282_v35 = vpop.f32.mrb[61].mxu1  ;;  %v8284_v9 = vpop.f32.mrb[63].mxu0  ;;  %v4538_v29 = vadd.f32 1.0, %v5580_v53  ;;  %v8289_v1 = vadd.f32 %v8109_v32, %v8211_v22  ;;  %5603 = vpow2.f32 %v4441_v46 }
 0x42f   : > { %8998 = vst [vmem:[#allocation6_spill] sm:$0xff] %v8282_v35  ;;  %8999 = vst [vmem:[#allocation7_spill] sm:$0xff] %v8284_v9  ;;  %v5586_v27 = vpop.eup %5585  ;;  %v9000_v55 = vmax.f32 %v8064_v41, 0.0  ;;  %v9001_v58 = vmax.f32 %v8078_v10, 0.0  ;;  %v4540_v23 = vadd.f32 1.0, %v5582_v7  ;;  %v9002_v56 = vmax.f32 %v8049_v52, 0.0 }
 0x430   : > { %v5588_v48 = vpop.eup %5587  ;;  %v9003_v53 = vmax.f32 %v8051_v59, 0.0  ;;  %v4445_v22 = vmul.f32 1.442695, %v4355_v47  ;;  %v4293_v41 = vand.u32 2147483647, %v8274_v37  ;;  %5605 = vlog2.f32 %v4539_v12 }
 0x431   : > { %v8293_v45 = vadd.f32 %v4606_v50, %v9000_v55  ;;  %v8297_v31 = vadd.f32 %v4614_v49, %v9001_v58  ;;  %v8301_v38 = vadd.f32 %v4592_v62, %v9002_v56  ;;  %v8308_v50 = vpop.f32.mrb[62].mxu1  ;;  %v5590_v55 = vpop.eup %5589  ;;  %v4443_v46 = vmul.f32 1.442695, %v4354_v18 }
 0x432   : > { %v8305_v32 = vadd.f32 %v4596_v60, %v9003_v53  ;;  %9004 = vst [vmem:[#allocation14_spill] sm:$0xff] %v8308_v50  ;;  %v8313_v52 = vpop.f32.mrb[63].mxu1  ;;  %v5592_v62 = vpop.eup %5591  ;;  %v9006_v59 = vmax.f32 %v8060_v6, 0.0  ;;  %5607 = vlog2.f32 %v4538_v29  ;;  %v4292_v49 = vand.u32 2147483647, %v8289_v1 }
 0x433   : > { %9005 = vst [vmem:[#allocation29_spill] sm:$0xff] %v8313_v52  ;;  %v5594_v58 = vpop.eup %5593  ;;  %v4604_v56 = vmul.f32 0.6931472, %v5586_v27  ;;  %5609 = vlog2.f32 %v4540_v23  ;;  %v8324_v18 = vadd.f32 %v8114_v3, %v8262_v24  ;;  %v4608_v10 = vmul.f32 0.6931472, %v5588_v48  ;;  %v3890_v48 = vpop.permute.xlu0 %3889 }
 0x434   : > { %v8317_v60 = vadd.f32 %v4600_v28, %v9006_v59  ;;  %v5596_v53 = vpop.eup %5595  ;;  %v4541_v7 = vadd.f32 1.0, %v5594_v58  ;;  %5611 = vpow2.f32 %v4445_v22  ;;  %v4357_v6 = vsub.f32 0.0, %v4293_v41 }
 0x435   : > { %v5598_v28 = vpop.eup %5597  ;;  %v4543_v29 = vadd.f32 1.0, %v5596_v53  ;;  %5613 = vpow2.f32 %v4443_v46  ;;  %v4295_v47 = vand.u32 2147483647, %v8324_v18  ;;  %v4356_v12 = vsub.f32 0.0, %v4292_v49 }
 0x436   : > { %v5600_v27 = vpop.eup %5599  ;;  %5615 = vlog2.f32 %v4541_v7  ;;  %v8331_v3 = vadd.f32 %v8111_v40, %v8262_v24  ;;  %v9007_v22 = vmax.f32 %v8069_v39, 0.0  ;;  %v4542_v58 = vadd.f32 1.0, %v5598_v28 }
 0x437   : > { %5617 = vlog2.f32 %v4543_v29  ;;  %v4359_v53 = vsub.f32 0.0, %v4295_v47  ;;  %v5602_v46 = vpop.eup %5601  ;;  %v9008_v59 = vmax.f32 %v8073_v25, 0.0  ;;  %v4449_v49 = vmul.f32 1.442695, %v4357_v6 }
 0x438   : > { %v8335_v41 = vadd.f32 %v4604_v56, %v9007_v22  ;;  %v8343_v23 = vadd.f32 %v8129_v44, %v3890_v48  ;;  %v5604_v40 = vpop.eup %5603  ;;  %v4612_v9 = vmul.f32 0.6931472, %v5590_v55  ;;  %v4544_v50 = vadd.f32 1.0, %v5600_v27 }
 0x439   : > { %v8339_v52 = vadd.f32 %v4608_v10, %v9008_v59  ;;  %v4447_v28 = vmul.f32 1.442695, %v4356_v12  ;;  %v4294_v47 = vand.u32 2147483647, %v8331_v3  ;;  %v8350_v25 = vadd.f32 %v8118_v17, %v8262_v24 }
 0x43a   : > { %v4297_v10 = vand.u32 2147483647, %v8343_v23  ;;  %v5606_v6 = vpop.eup %5605  ;;  %v4616_v29 = vmul.f32 0.6931472, %v5592_v62  ;;  %5619 = vlog2.f32 %v4542_v58  ;;  %v4453_v44 = vmul.f32 1.442695, %v4359_v53 }
 0x43b   : > { %v8354_v55 = vadd.f32 %v8136_v11, %v3890_v48  ;;  %v4618_v27 = vmul.f32 0.6931472, %v5602_v46  ;;  %v4545_v22 = vadd.f32 1.0, %v5604_v40  ;;  %5621 = vpow2.f32 %v4449_v49 }
 0x43c   : > { %v5608_v59 = vpop.eup %5607  ;;  %v4361_v12 = vsub.f32 0.0, %v4297_v10  ;;  %v9009_v39 = vmax.f32 %v8081_v21, 0.0  ;;  %5623 = vlog2.f32 %v4544_v50  ;;  %v4358_v58 = vsub.f32 0.0, %v4294_v47  ;;  %v8370_v50 = vpop.permute.xlu1 %3894 }
 0x43d   : > { %v5610_v56 = vpop.eup %5609  ;;  %v4299_v24 = vand.u32 2147483647, %v8354_v55  ;;  %5625 = vpow2.f32 %v4447_v28  ;;  %v4296_v11 = vand.u32 2147483647, %v8350_v25  ;;  %v9010_v49 = vmax.f32 %v8097_v0, 0.0 }
 0x43e   : > { %v8358_v7 = vadd.f32 %v4612_v9, %v9009_v39  ;;  %v5612_v62 = vpop.eup %5611  ;;  %v4457_v53 = vmul.f32 1.442695, %v4361_v12  ;;  %v4622_v10 = vmul.f32 0.6931472, %v5606_v6  ;;  %5627 = vpow2.f32 %v4453_v44 }
 0x43f   : > { %v5614_v46 = vpop.eup %5613  ;;  %v8365_v40 = vadd.f32 %v4616_v29, %v9010_v49  ;;  %v8368_v21 = vadd.f32 %v8133_v16, %v3890_v48  ;;  %v9011_v39 = vmax.f32 %v8101_v2, 0.0  ;;  %v4620_v47 = vmul.f32 0.6931472, %v5608_v59 }
 0x440   : > { %v5616_v9 = vpop.eup %5615  ;;  %5629 = vlog2.f32 %v4545_v22  ;;  %v4363_v12 = vsub.f32 0.0, %v4299_v24  ;;  %v4547_v0 = vadd.f32 1.0, %v5612_v62  ;;  %v8377_v29 = vadd.f32 %v8139_v34, %v3890_v48 }
 0x441   : > { %v8374_v28 = vadd.f32 %v4618_v27, %v9011_v39  ;;  %v5618_v17 = vpop.eup %5617  ;;  %v4626_v35 = vmul.f32 0.6931472, %v5616_v9  ;;  %v8381_v16 = vadd.f32 %v8141_v43, %v8370_v50  ;;  %v4451_v44 = vmul.f32 1.442695, %v4358_v58 }
 0x442   : > { %v4630_v6 = vmul.f32 0.6931472, %v5618_v17  ;;  %v4360_v49 = vsub.f32 0.0, %v4296_v11  ;;  %5631 = vpow2.f32 %v4457_v53  ;;  %v9012_v2 = vmax.f32 %v8116_v42, 0.0 }
 0x443   : > { %v9014_v59 = vmax.f32 %v8167_v51, 0.0  ;;  %v4546_v24 = vadd.f32 1.0, %v5614_v46  ;;  %v4298_v34 = vand.u32 2147483647, %v8368_v21  ;;  %v4624_v48 = vmul.f32 0.6931472, %v5610_v56 }
 0x444   : > { %v8385_v27 = vadd.f32 %v4622_v10, %v9012_v2  ;;  %v9015_v62 = vmax.f32 %v8190_v8, 0.0  ;;  %v4461_v17 = vmul.f32 1.442695, %v4363_v12  ;;  %v8398_v58 = vadd.f32 %v8145_v4, %v8370_v50  ;;  %v5620_v42 = vpop.eup %5619 }
 0x445   : > { %v8389_v22 = vadd.f32 %v4626_v35, %v9014_v59  ;;  %5633 = vlog2.f32 %v4547_v0  ;;  %v4300_v51 = vand.u32 2147483647, %v8377_v29  ;;  %v4301_v35 = vand.u32 2147483647, %v8381_v16  ;;  %v5622_v53 = vpop.eup %5621 }
 0x446   : > { %9013 = vst [vmem:[#allocation30_spill] sm:$0xff] %v8385_v27  ;;  %v8394_v43 = vadd.f32 %v4630_v6, %v9015_v62  ;;  %v9017_v56 = vmax.f32 %v8122_v15, 0.0  ;;  %5635 = vpow2.f32 %v4451_v44  ;;  %v4455_v4 = vmul.f32 1.442695, %v4360_v49  ;;  %v5624_v10 = vpop.eup %5623 }
 0x447   : > { %5637 = vlog2.f32 %v4546_v24  ;;  %v4549_v9 = vadd.f32 1.0, %v5622_v53  ;;  %v4362_v39 = vsub.f32 0.0, %v4298_v34  ;;  %v4365_v12 = vsub.f32 0.0, %v4301_v35  ;;  %v5626_v0 = vpop.eup %5625 }
 0x448   : > { %9016 = vst [vmem:[#allocation31_spill] sm:$0xff] %v8394_v43  ;;  %v8406_v8 = vadd.f32 %v4620_v47, %v9017_v56  ;;  %5639 = vpow2.f32 %v4461_v17  ;;  %v4303_v15 = vand.u32 2147483647, %v8398_v58  ;;  %v5628_v47 = vpop.eup %5627  ;;  %v4364_v62 = vsub.f32 0.0, %v4300_v51 }
 0x449   : > { %5641 = vlog2.f32 %v4549_v9  ;;  %v4465_v44 = vmul.f32 1.442695, %v4365_v12  ;;  %v4551_v56 = vadd.f32 1.0, %v5628_v47  ;;  %v4459_v53 = vmul.f32 1.442695, %v4362_v39  ;;  %v3900_v9 = vpop.permute.xlu0 %3899 }
 0x44a   : > { %v5630_v49 = vpop.eup %5629  ;;  %5643 = vpow2.f32 %v4455_v4  ;;  %v4367_v34 = vsub.f32 0.0, %v4303_v15  ;;  %v8418_v17 = vadd.f32 %v8147_v26, %v8370_v50  ;;  %v4548_v11 = vadd.f32 1.0, %v5626_v0 }
 0x44b   : > { %5645 = vpow2.f32 %v4465_v44  ;;  %v4628_v4 = vmul.f32 0.6931472, %v5620_v42  ;;  %v4463_v47 = vmul.f32 1.442695, %v4364_v62  ;;  %v8424_v15 = vadd.f32 %v8151_v14, %v8370_v50 }
 0x44c   : > { %v5632_v46 = vpop.eup %5631  ;;  %5647 = vlog2.f32 %v4551_v56  ;;  %v8427_v39 = vadd.f32 %v8169_v57, %v3900_v9  ;;  %v9018_v26 = vmax.f32 %v8125_v13, 0.0  ;;  %v4632_v59 = vmul.f32 0.6931472, %v5624_v10  ;;  %v9020_v57 = vld [vmem:[#allocation20_spill] sm:$0xff]  ;;  %v9021_v13 = vld [vmem:[#allocation19_spill] sm:$0xff] }
 0x44d   : > { %v4634_v0 = vmul.f32 0.6931472, %v5630_v49  ;;  %v4469_v56 = vmul.f32 1.442695, %v4367_v34  ;;  %v4553_v51 = vadd.f32 1.0, %v5632_v46  ;;  %5649 = vpow2.f32 %v4459_v53 }
 0x44e   : > { %v8431_v44 = vadd.f32 %v4624_v48, %v9018_v26  ;;  %v4302_v42 = vand.u32 2147483647, %v8418_v17  ;;  %v4305_v62 = vand.u32 2147483647, %v8427_v39  ;;  %5651 = vlog2.f32 %v4548_v11 }
 0x44f   : > { %v5634_v2 = vpop.eup %5633  ;;  %v8437_v50 = vadd.f32 %v9020_v57, %v3900_v9  ;;  %v8440_v48 = vadd.f32 %v9021_v13, %v3900_v9  ;;  %v9022_v49 = vmax.f32 %v8201_v30, 0.0  ;;  %5653 = vpow2.f32 %v4463_v47 }
 0x450   : > { %9019 = vst [vmem:[#allocation32_spill] sm:$0xff] %v8431_v44  ;;  %v5636_v12 = vpop.eup %5635  ;;  %v4304_v46 = vand.u32 2147483647, %v8424_v15  ;;  %v4369_v53 = vsub.f32 0.0, %v4305_v62  ;;  %v9023_v11 = vmax.f32 %v8215_v36, 0.0  ;;  %v9025_v57 = vmax.f32 %v8219_v63, 0.0  ;;  %v3905_v63 = vpop.permute.xlu1 %3904 }
 0x451   : > { %v5638_v10 = vpop.eup %5637  ;;  %v8444_v34 = vadd.f32 %v4628_v4, %v9022_v49  ;;  %5655 = vpow2.f32 %v4469_v56  ;;  %v4307_v13 = vand.u32 2147483647, %v8437_v50  ;;  %v4550_v30 = vadd.f32 1.0, %v5636_v12  ;;  %v9026_v36 = vld [vmem:[#allocation24_spill] sm:$0xff] }
 0x452   : > { %v5640_v26 = vpop.eup %5639  ;;  %v8449_v35 = vadd.f32 %v4632_v59, %v9023_v11  ;;  %v8453_v14 = vadd.f32 %v4634_v0, %v9025_v57  ;;  %5657 = vlog2.f32 %v4553_v51  ;;  %v4366_v4 = vsub.f32 0.0, %v4302_v42 }
 0x453   : > { %v5642_v24 = vpop.eup %5641  ;;  %v4473_v47 = vmul.f32 1.442695, %v4369_v53  ;;  %v4371_v62 = vsub.f32 0.0, %v4307_v13  ;;  %v4306_v27 = vand.u32 2147483647, %v8440_v48  ;;  %v8458_v59 = vadd.f32 %v9026_v36, %v3900_v9 }
 0x454   : > { %9024 = vst [vmem:[#allocation20_spill] sm:$0xff] %v8449_v35  ;;  %v5644_v49 = vpop.eup %5643  ;;  %v4642_v6 = vmul.f32 0.6931472, %v5642_v24  ;;  %v4638_v0 = vmul.f32 0.6931472, %v5634_v2  ;;  %v4555_v57 = vadd.f32 1.0, %v5640_v26 }
 0x455   : > { %v5646_v11 = vpop.eup %5645  ;;  %v4368_v56 = vsub.f32 0.0, %v4304_v46  ;;  %5659 = vpow2.f32 %v4473_v47  ;;  %v9027_v12 = vmax.f32 %v8274_v37, 0.0  ;;  %v4477_v53 = vmul.f32 1.442695, %v4371_v62  ;;  %v9028_v24 = vld [vmem:[#allocation13_spill] sm:$0xff] }
 0x456   : > { %v5648_v43 = vpop.eup %5647  ;;  %v4557_v42 = vadd.f32 1.0, %v5646_v11  ;;  %v8465_v13 = vadd.f32 %v9028_v24, %v3905_v63  ;;  %v4636_v35 = vmul.f32 0.6931472, %v5638_v10  ;;  %5661 = vlog2.f32 %v4550_v30 }
 0x457   : > { %v8462_v51 = vadd.f32 %v4642_v6, %v9027_v12  ;;  %v4646_v44 = vmul.f32 0.6931472, %v5648_v43  ;;  %v4467_v9 = vmul.f32 1.442695, %v4366_v4  ;;  %v4370_v46 = vsub.f32 0.0, %v4306_v27  ;;  %v5650_v47 = vpop.eup %5649  ;;  %v3915_v4 = vpop.permute.xlu1 %3914 }
 0x458   : > { %5663 = vlog2.f32 %v4557_v42  ;;  %v4308_v26 = vand.u32 2147483647, %v8458_v59  ;;  %v9029_v37 = vmax.f32 %v8242_v61, 0.0  ;;  %v9030_v62 = vmax.f32 %v8324_v18, 0.0  ;;  %v5652_v43 = vpop.eup %5651  ;;  %v9042_v18 = vld [vmem:[#allocation25_spill] sm:$0xff] }
 0x459   : > { %v4471_v10 = vmul.f32 1.442695, %v4368_v56  ;;  %5665 = vpow2.f32 %v4477_v53  ;;  %v4552_v30 = vadd.f32 1.0, %v5644_v49  ;;  %v4309_v27 = vand.u32 2147483647, %v8465_v13  ;;  %v5654_v11 = vpop.eup %5653 }
 0x45a   : > { %v8472_v6 = vadd.f32 %v4638_v0, %v9029_v37  ;;  %v8476_v36 = vadd.f32 %v4646_v44, %v9030_v62  ;;  %5667 = vlog2.f32 %v4555_v57  ;;  %v9031_v12 = vmax.f32 %v8246_v54, 0.0  ;;  %v9032_v57 = vld [vmem:[#allocation8_spill] sm:$0xff] }
 0x45b   : > { %5669 = vpow2.f32 %v4467_v9  ;;  %v5656_v44 = vpop.eup %5655  ;;  %v4475_v0 = vmul.f32 1.442695, %v4370_v46  ;;  %v4372_v56 = vsub.f32 0.0, %v4308_v26  ;;  %v4373_v49 = vsub.f32 0.0, %v4309_v27  ;;  %v9033_v27 = vld [vmem:[#allocation9_spill] sm:$0xff] }
 0x45c   : > { %v8482_v42 = vadd.f32 %v4636_v35, %v9031_v12  ;;  %v8488_v53 = vadd.f32 %v9032_v57, %v3905_v63  ;;  %v5658_v24 = vpop.eup %5657  ;;  %v4554_v37 = vadd.f32 1.0, %v5650_v47  ;;  %v4559_v62 = vadd.f32 1.0, %v5656_v44 }
 0x45d   : > { %5671 = vpow2.f32 %v4471_v10  ;;  %v4779_v54 = vpack.c.bf16 %v8305_v32, %v8252_v33  ;;  %v4640_v35 = vmul.f32 0.6931472, %v5652_v43  ;;  %v4481_v46 = vmul.f32 1.442695, %v4373_v49  ;;  %v9034_v33 = vld [vmem:[#allocation23_spill] sm:$0xff]  ;;  %v9035_v43 = vld [vmem:[#allocation21_spill] sm:$0xff]  ;;  %v3910_v49 = vpop.permute.xlu0 %3909 }
 0x45e   : > { %5673 = vlog2.f32 %v4552_v30  ;;  %v4311_v26 = vand.u32 2147483647, %v8488_v53  ;;  %v4781_v47 = vpack.c.bf16 %v8317_v60, %v8301_v38  ;;  %v4479_v10 = vmul.f32 1.442695, %v4372_v56  ;;  %v9036_v30 = vld [vmem:[#allocation10_spill] sm:$0xff] }
 0x45f   : > { %v5660_v61 = vpop.eup %5659  ;;  %5675 = vlog2.f32 %v4559_v62  ;;  %4816 = vmatprep.subr.bf16.mxu0 %v4779_v54  ;;  %v8498_v44 = vadd.f32 %v9033_v27, %v3905_v63  ;;  %v8501_v32 = vadd.f32 %v9034_v33, %v3905_v63  ;;  %v9037_v57 = vpack.c.bf16 %v9035_v43, %v9036_v30  ;;  %v9038_v63 = vld [vmem:[#allocation12_spill] sm:$0xff]  ;;  %v9039_v27 = vld [vmem:[#allocation11_spill] sm:$0xff]  ;;  %v9041_v43 = vld [vmem:[#allocation22_spill] sm:$0xff] }
 0x460   : > { %5677 = vpow2.f32 %v4475_v0  ;;  %v5662_v62 = vpop.eup %5661  ;;  %v4650_v2 = vmul.f32 0.6931472, %v5658_v24  ;;  %v4375_v12 = vsub.f32 0.0, %v4311_v26  ;;  %4857 = vmatprep.subr.bf16.mxu1 %v4781_v47  ;;  %v4561_v60 = vadd.f32 1.0, %v5660_v61 }
 0x461   : > { %4817 = vmatpush1.bf16.msra.mxu0 %v9037_v57  ;;  %5679 = vlog2.f32 %v4554_v37  ;;  %v4310_v56 = vand.u32 2147483647, %v8498_v44  ;;  %v9040_v33 = vpack.c.bf16 %v9038_v63, %v9039_v27  ;;  %v8513_v30 = vadd.f32 %v9041_v43, %v3910_v49 }
 0x462   : > { %v5664_v38 = vpop.eup %5663  ;;  %5681 = vpow2.f32 %v4481_v46  ;;  %v4485_v37 = vmul.f32 1.442695, %v4375_v12  ;;  %v8516_v26 = vadd.f32 %v9042_v18, %v3910_v49  ;;  %v9043_v61 = vmax.f32 %v8289_v1, 0.0 }
 0x463   : > { %4858 = vmatpush1.bf16.msra.mxu1 %v9040_v33  ;;  %v5666_v57 = vpop.eup %5665  ;;  %v4658_v24 = vmul.f32 0.6931472, %v5664_v38  ;;  %5683 = vpow2.f32 %v4479_v10  ;;  %v4374_v54 = vsub.f32 0.0, %v4310_v56  ;;  %v4312_v63 = vand.u32 2147483647, %v8501_v32 }
 0x464   : > { %v5668_v47 = vpop.eup %5667  ;;  %v8520_v0 = vadd.f32 %v4640_v35, %v9043_v61  ;;  %v9044_v33 = vmax.f32 %v8343_v23, 0.0  ;;  %v4556_v38 = vadd.f32 1.0, %v5654_v11  ;;  %v9046_v12 = vmax.f32 %v8381_v16, 0.0 }
 0x465   : > { %v5670_v27 = vpop.eup %5669  ;;  %5685 = vpow2.f32 %v4485_v37  ;;  %v4563_v18 = vadd.f32 1.0, %v5666_v57  ;;  %v4483_v9 = vmul.f32 1.442695, %v4374_v54  ;;  %v4376_v1 = vsub.f32 0.0, %v4312_v63  ;;  %v9048_v63 = vld [vmem:[#allocation15_spill] sm:$0xff] }
 0x466   : > { %v8525_v43 = vadd.f32 %v4650_v2, %v9044_v33  ;;  %v8529_v46 = vadd.f32 %v4658_v24, %v9046_v12  ;;  %v4313_v35 = vand.u32 2147483647, %v8513_v30  ;;  %5687 = vlog2.f32 %v4561_v60 }
 0x467   : > { %v5672_v10 = vpop.eup %5671  ;;  %v4315_v2 = vand.u32 2147483647, %v8516_v26  ;;  %v4654_v61 = vmul.f32 0.6931472, %v5668_v47  ;;  %5689 = vpow2.f32 %v4483_v9  ;;  %v4487_v16 = vmul.f32 1.442695, %v4376_v1 }
 0x468   : > { %9045 = vst [vmem:[#allocation19_spill] sm:$0xff] %v8525_v43  ;;  %9047 = vst [vmem:[#allocation24_spill] sm:$0xff] %v8529_v46  ;;  %v5674_v11 = vpop.eup %5673  ;;  %v4377_v24 = vsub.f32 0.0, %v4313_v35  ;;  %5691 = vlog2.f32 %v4556_v38  ;;  %v4558_v54 = vadd.f32 1.0, %v5670_v27  ;;  %v8537_v33 = vadd.f32 %v9048_v63, %v3910_v49  ;;  %v9049_v47 = vld [vmem:[#allocation26_spill] sm:$0xff]  ;;  %v9051_v1 = vld [vmem:[#allocation16_spill] sm:$0xff] }
 0x469   : > { %v5676_v37 = vpop.eup %5675  ;;  %v4379_v57 = vsub.f32 0.0, %v4315_v2  ;;  %v4560_v60 = vadd.f32 1.0, %v5672_v10  ;;  %5693 = vlog2.f32 %v4563_v18  ;;  %v8540_v9 = vadd.f32 %v9049_v47, %v3910_v49  ;;  %v9054_v49 = vld [vmem:[#allocation18_spill] sm:$0xff] }
 0x46a   : > { %v5678_v12 = vpop.eup %5677  ;;  %v4662_v56 = vmul.f32 0.6931472, %v5676_v37  ;;  %v4489_v23 = vmul.f32 1.442695, %v4377_v24  ;;  %5695 = vpow2.f32 %v4487_v16  ;;  %v8543_v35 = vadd.f32 %v9051_v1, %v3915_v4 }
 0x46b   : > { %v5680_v43 = vpop.eup %5679  ;;  %v4493_v46 = vmul.f32 1.442695, %v4379_v57  ;;  %9050 = vst [vmem:[#allocation13_spill] sm:$0xff] %v8540_v9  ;;  %v9052_v27 = vmax.f32 %v8354_v55, 0.0  ;;  %v9053_v2 = vmax.f32 %v8398_v58, 0.0  ;;  %v4562_v24 = vadd.f32 1.0, %v5678_v12 }
 0x46c   : > { %5697 = vpow2.f32 %v4489_v23  ;;  %v4314_v18 = vand.u32 2147483647, %v8537_v33  ;;  %v5682_v10 = vpop.eup %5681  ;;  %v4644_v16 = vmul.f32 0.6931472, %v5662_v62  ;;  %v8555_v37 = vadd.f32 %v9054_v49, %v3915_v4 }
 0x46d   : > { %v8547_v38 = vadd.f32 %v4654_v61, %v9052_v27  ;;  %v8551_v63 = vadd.f32 %v4662_v56, %v9053_v2  ;;  %5699 = vlog2.f32 %v4558_v54  ;;  %v5684_v57 = vpop.eup %5683  ;;  %v4565_v61 = vadd.f32 1.0, %v5682_v10 }
 0x46e   : > { %5701 = vlog2.f32 %v4560_v60  ;;  %v4378_v47 = vsub.f32 0.0, %v4314_v18  ;;  %v4648_v56 = vmul.f32 0.6931472, %v5674_v11  ;;  %v4316_v23 = vand.u32 2147483647, %v8540_v9 }
 0x46f   : > { %v5686_v58 = vpop.eup %5685  ;;  %5703 = vpow2.f32 %v4493_v46  ;;  %v4317_v1 = vand.u32 2147483647, %v8543_v35  ;;  %v4319_v60 = vand.u32 2147483647, %v8555_v37  ;;  %v4652_v18 = vmul.f32 0.6931472, %v5680_v43  ;;  %v3920_v43 = vpop.permute.xlu0 %3919 }
 0x470   : > { %5705 = vlog2.f32 %v4565_v61  ;;  %v4567_v54 = vadd.f32 1.0, %v5686_v58  ;;  %v4491_v12 = vmul.f32 1.442695, %v4378_v47  ;;  %v5688_v27 = vpop.eup %5687  ;;  %v4380_v2 = vsub.f32 0.0, %v4316_v23 }
 0x471   : > { %5707 = vlog2.f32 %v4562_v24  ;;  %v4381_v49 = vsub.f32 0.0, %v4317_v1  ;;  %v5690_v10 = vpop.eup %5689  ;;  %v4783_v46 = vpack.c.bf16 %v8358_v7, %v8335_v41  ;;  %v4785_v11 = vpack.c.bf16 %v8365_v40, %v8339_v52  ;;  %v9057_v41 = vld [vmem:[#allocation17_spill] sm:$0xff] }
 0x472   : > { %5709 = vlog2.f32 %v4567_v54  ;;  %v5692_v55 = vpop.eup %5691  ;;  %v9055_v61 = vmax.f32 %v8331_v3, 0.0  ;;  %v9056_v24 = vmax.f32 %v8350_v25, 0.0  ;;  %v4495_v23 = vmul.f32 1.442695, %v4380_v2 }
 0x473   : > { %5711 = vpow2.f32 %v4491_v12  ;;  %v5694_v1 = vpop.eup %5693  ;;  %v4564_v54 = vadd.f32 1.0, %v5684_v57  ;;  %v4497_v62 = vmul.f32 1.442695, %v4381_v49  ;;  %v4383_v9 = vsub.f32 0.0, %v4319_v60  ;;  %4818 = vmatprep.subr.bf16.mxu0 %v4783_v46  ;;  %4859 = vmatprep.subr.bf16.mxu1 %v4785_v11 }
 0x474   : > { %v8569_v58 = vadd.f32 %v4644_v16, %v9055_v61  ;;  %v8573_v47 = vadd.f32 %v4648_v56, %v9056_v24  ;;  %v8576_v52 = vadd.f32 %v9057_v41, %v3915_v4  ;;  %v5696_v7 = vpop.eup %5695  ;;  %v4666_v3 = vmul.f32 0.6931472, %v5688_v27  ;;  %v9058_v16 = vld [vmem:[#allocation27_spill] sm:$0xff] }
 0x475   : > { %v4566_v40 = vadd.f32 1.0, %v5690_v10  ;;  %v8579_v61 = vadd.f32 %v9058_v16, %v3915_v4  ;;  %v9059_v25 = vpack.c.bf16 %v8266_v20, %v8257_v5  ;;  %v9060_v57 = vpack.c.bf16 %v8297_v31, %v8293_v45 }
 0x476   : > { %v8588_v56 = vadd.f32 %v8260_v19, %v3920_v43  ;;  %v5698_v12 = vpop.eup %5697  ;;  %v9061_v2 = vmax.f32 %v8368_v21, 0.0  ;;  %v4247_v27 = vmax.f32 %v8488_v53, 0.0  ;;  %v4568_v4 = vadd.f32 1.0, %v5696_v7 }
 0x477   : > { %4819 = vmatpush1.bf16.msra.mxu0 %v9059_v25  ;;  %4860 = vmatpush1.bf16.msra.mxu1 %v9060_v57  ;;  %5713 = vpow2.f32 %v4495_v23  ;;  %v5700_v60 = vpop.eup %5699  ;;  %v8595_v10 = vmul.f32 0.6931472, %v5692_v55  ;;  %v4501_v5 = vmul.f32 1.442695, %v4383_v9  ;;  %v4318_v20 = vand.u32 2147483647, %v8576_v52 }
 0x478   : > { %v8592_v49 = vadd.f32 %v4652_v18, %v9061_v2  ;;  %5715 = vpow2.f32 %v4497_v62  ;;  %v5702_v45 = vpop.eup %5701  ;;  %v4670_v31 = vmul.f32 0.6931472, %v5694_v1  ;;  %v4569_v19 = vadd.f32 1.0, %v5698_v12  ;;  %v9063_v62 = vld [vmem:[#allocation5_spill] sm:$0xff]  ;;  %v9064_v1 = vld [vmem:[#allocation28_spill] sm:$0xff] }
 0x479   : > { %5717 = vlog2.f32 %v4564_v54  ;;  %v4320_v46 = vand.u32 2147483647, %v8579_v61  ;;  %v5704_v21 = vpop.eup %5703  ;;  %v9062_v18 = vmax.f32 %v8427_v39, 0.0  ;;  %v4382_v53 = vsub.f32 0.0, %v4318_v20 }
 0x47a   : > { %5719 = vlog2.f32 %v4566_v40  ;;  %v4321_v55 = vand.u32 2147483647, %v8588_v56  ;;  %v5706_v24 = vpop.eup %5705  ;;  %v8605_v23 = vadd.f32 %v9063_v62, %v3920_v43  ;;  %v8608_v54 = vadd.f32 %v9064_v1, %v3920_v43 }
 0x47b   : > { %v8601_v11 = vadd.f32 %v4666_v3, %v9062_v18  ;;  %5721 = vlog2.f32 %v4568_v4  ;;  %v4384_v9 = vsub.f32 0.0, %v4320_v46  ;;  %v8610_v41 = vpop.eup %5707  ;;  %v4674_v7 = vmul.f32 0.6931472, %v5706_v24  ;;  %v9067_v24 = vld [vmem:[#allocation6_spill] sm:$0xff] }
 0x47c   : > { %5723 = vpow2.f32 %v4501_v5  ;;  %v4499_v39 = vmul.f32 1.442695, %v4382_v53  ;;  %v4385_v3 = vsub.f32 0.0, %v4321_v55  ;;  %v5710_v16 = vpop.eup %5709  ;;  %v9065_v40 = vmax.f32 %v8437_v50, 0.0 }
 0x47d   : > { %5725 = vlog2.f32 %v4569_v19  ;;  %v4503_v57 = vmul.f32 1.442695, %v4384_v9  ;;  %v4323_v12 = vand.u32 2147483647, %v8605_v23  ;;  %v5712_v2 = vpop.eup %5711  ;;  %v9066_v4 = vmax.f32 %v8465_v13, 0.0 }
 0x47e   : > { %v8614_v25 = vadd.f32 %v4670_v31, %v9065_v40  ;;  %v4678_v46 = vmul.f32 0.6931472, %v5710_v16  ;;  %v4571_v18 = vadd.f32 1.0, %v5704_v21  ;;  %5727 = vpow2.f32 %v4499_v39 }
 0x47f   : > { %v8619_v20 = vadd.f32 %v4674_v7, %v9066_v4  ;;  %5729 = vpow2.f32 %v4503_v57  ;;  %v4505_v5 = vmul.f32 1.442695, %v4385_v3  ;;  %v4387_v53 = vsub.f32 0.0, %v4323_v12  ;;  %v3925_v57 = vpop.permute.xlu1 %3924  ;;  %v9070_v3 = vld [vmem:[#allocation14_spill] sm:$0xff] }
 0x480   : > { %v4322_v55 = vand.u32 2147483647, %v8608_v54  ;;  %v8624_v31 = vadd.f32 %v4678_v46, %v4247_v27  ;;  %v4570_v19 = vadd.f32 1.0, %v5712_v2  ;;  %v8627_v9 = vadd.f32 %v9067_v24, %v3920_v43  ;;  %v9068_v46 = vld [vmem:[#allocation4_spill] sm:$0xff] }
 0x481   : > { %v5714_v13 = vpop.eup %5713  ;;  %v4660_v62 = vmul.f32 0.6931472, %v5700_v60  ;;  %v4664_v1 = vmul.f32 0.6931472, %v5702_v45  ;;  %v4246_v21 = vmax.f32 %v8498_v44, 0.0  ;;  %5731 = vlog2.f32 %v4571_v18 }
 0x482   : > { %v4386_v7 = vsub.f32 0.0, %v4322_v55  ;;  %v5716_v39 = vpop.eup %5715  ;;  %v4509_v16 = vmul.f32 1.442695, %v4387_v53  ;;  %v4324_v40 = vand.u32 2147483647, %v8627_v9  ;;  %v4248_v12 = vmax.f32 %v8501_v32, 0.0 }
 0x483   : > { %v5718_v27 = vpop.eup %5717  ;;  %v4572_v43 = vadd.f32 1.0, %v5714_v13  ;;  %v4573_v2 = vadd.f32 1.0, %v5716_v39  ;;  %5733 = vpow2.f32 %v4505_v5  ;;  %v8635_v55 = vadd.f32 %v9068_v46, %v3925_v57 }
 0x484   : > { %v5720_v60 = vpop.eup %5719  ;;  %5735 = vlog2.f32 %v4570_v19  ;;  %v4507_v45 = vmul.f32 1.442695, %v4386_v7  ;;  %v4388_v4 = vsub.f32 0.0, %v4324_v40  ;;  %v9069_v18 = vmax.f32 %v8377_v29, 0.0 }
 0x485   : > { %v5722_v24 = vpop.eup %5721  ;;  %5737 = vlog2.f32 %v4573_v2  ;;  %v8643_v50 = vadd.f32 %v9070_v3, %v3925_v57  ;;  %v4787_v32 = vpack.c.bf16 %v8444_v34, %v8406_v8  ;;  %v9071_v19 = vmax.f32 %v8418_v17, 0.0 }
 0x486   : > { %v8640_v53 = vadd.f32 %v8595_v10, %v9069_v18  ;;  %v5724_v5 = vpop.eup %5723  ;;  %v9072_v7 = vmax.f32 %v8424_v15, 0.0  ;;  %v4249_v29 = vmax.f32 %v8513_v30, 0.0  ;;  %5739 = vpow2.f32 %v4509_v16 }
 0x487   : > { %v8649_v13 = vadd.f32 %v4660_v62, %v9071_v19  ;;  %v5726_v10 = vpop.eup %5725  ;;  %v4676_v40 = vmul.f32 0.6931472, %v5720_v60  ;;  %5741 = vlog2.f32 %v4572_v43  ;;  %v4575_v3 = vadd.f32 1.0, %v5724_v5  ;;  %4820 = vmatprep.subr.bf16.mxu0 %v4787_v32  ;;  %v9074_v60 = vld [vmem:[#allocation32_spill] sm:$0xff]  ;;  %v9076_v32 = vld [vmem:[#allocation7_spill] sm:$0xff] }
 0x488   : > { %v8653_v39 = vadd.f32 %v4664_v1, %v9072_v7  ;;  %v4325_v2 = vand.u32 2147483647, %v8635_v55  ;;  %v5728_v8 = vpop.eup %5727  ;;  %v4680_v34 = vmul.f32 0.6931472, %v5722_v24  ;;  %5743 = vpow2.f32 %v4507_v45  ;;  %v9075_v43 = vld [vmem:[#allocation20_spill] sm:$0xff]  ;;  %v9077_v45 = vld [vmem:[#allocation29_spill] sm:$0xff] }
 0x489   : > { %v4511_v17 = vmul.f32 1.442695, %v4388_v4  ;;  %v4327_v62 = vand.u32 2147483647, %v8643_v50  ;;  %v9073_v15 = vpack.c.bf16 %v8389_v22, %v8374_v28  ;;  %v5730_v1 = vpop.eup %5729  ;;  %5745 = vlog2.f32 %v4575_v3 }
 0x48a   : > { %v4574_v30 = vadd.f32 1.0, %v5728_v8  ;;  %v4389_v16 = vsub.f32 0.0, %v4325_v2  ;;  %v4789_v46 = vpack.c.bf16 %v9075_v43, %v9074_v60  ;;  %v4576_v18 = vadd.f32 1.0, %v5730_v1 }
 0x48b   : > { %4821 = vmatpush1.bf16.msra.mxu0 %v9073_v15  ;;  %v4391_v5 = vsub.f32 0.0, %v4327_v62  ;;  %v8664_v19 = vadd.f32 %v9076_v32, %v3925_v57  ;;  %v8667_v4 = vadd.f32 %v9077_v45, %v3925_v57  ;;  %v4668_v24 = vmul.f32 0.6931472, %v8610_v41  ;;  %v5732_v7 = vpop.eup %5731  ;;  %v9078_v62 = vld [vmem:[#allocation31_spill] sm:$0xff]  ;;  %v9079_v15 = vld [vmem:[#allocation30_spill] sm:$0xff] }
 0x48c   : > { %5747 = vlog2.f32 %v4574_v30  ;;  %v4513_v28 = vmul.f32 1.442695, %v4389_v16  ;;  %4861 = vmatprep.subr.bf16.mxu1 %v4789_v46  ;;  %v4791_v22 = vpack.c.bf16 %v8569_v58, %v8482_v42  ;;  %v4672_v3 = vmul.f32 0.6931472, %v5718_v27 }
 0x48d   : > { %v4253_v2 = vmax.f32 %v8543_v35, 0.0  ;;  %5749 = vlog2.f32 %v4576_v18  ;;  %v4517_v8 = vmul.f32 1.442695, %v4391_v5  ;;  %v9080_v1 = vpack.c.bf16 %v9078_v62, %v9079_v15  ;;  %v5734_v57 = vpop.eup %5733 }
 0x48e   : > { %v4682_v60 = vmul.f32 0.6931472, %v5726_v10  ;;  %5751 = vpow2.f32 %v4511_v17  ;;  %v4326_v41 = vand.u32 2147483647, %v8664_v19  ;;  %v4328_v30 = vand.u32 2147483647, %v8667_v4  ;;  %4822 = vmatprep.subr.bf16.mxu0 %v4791_v22  ;;  %v5736_v16 = vpop.eup %5735 }
 0x48f   : > { %4862 = vmatpush1.bf16.msra.mxu1 %v9080_v1  ;;  %v4758_v42 = vadd.f32 %v4676_v40, %v4246_v21  ;;  %v4760_v58 = vadd.f32 %v4680_v34, %v4248_v12  ;;  %5753 = vpow2.f32 %v4513_v28  ;;  %v4793_v35 = vpack.c.bf16 %v8573_v47, %v8520_v0  ;;  %v5738_v10 = vpop.eup %5737 }
 0x490   : > { %v9081_v27 = vpack.c.bf16 %v8462_v51, %v8453_v14  ;;  %v9082_v17 = vmax.f32 %v8440_v48, 0.0  ;;  %5755 = vpow2.f32 %v4517_v8  ;;  %v4390_v46 = vsub.f32 0.0, %v4326_v41  ;;  %v5740_v5 = vpop.eup %5739 }
 0x491   : > { %v4392_v18 = vsub.f32 0.0, %v4328_v30  ;;  %v9083_v44 = vmax.f32 %v8458_v59, 0.0  ;;  %v4690_v12 = vmul.f32 0.6931472, %v5738_v10  ;;  %4863 = vmatprep.subr.bf16.mxu1 %v4793_v35  ;;  %v4795_v0 = vpack.c.bf16 %v8649_v13, %v8592_v49  ;;  %v5742_v51 = vpop.eup %5741 }
 0x492   : > { %4823 = vmatpush1.bf16.msra.mxu0 %v9081_v27  ;;  %v4754_v43 = vadd.f32 %v4668_v24, %v9082_v17  ;;  %v4797_v14 = vpack.c.bf16 %v8653_v39, %v8640_v53  ;;  %v4761_v47 = vadd.f32 %v4682_v60, %v4249_v29  ;;  %v4686_v40 = vmul.f32 0.6931472, %v5732_v7  ;;  %v5744_v32 = vpop.eup %5743  ;;  %v9085_v29 = vld [vmem:[#allocation24_spill] sm:$0xff]  ;;  %v9086_v7 = vld [vmem:[#allocation19_spill] sm:$0xff] }
 0x493   : > { %v4756_v21 = vadd.f32 %v4672_v3, %v9083_v44  ;;  %v4515_v48 = vmul.f32 1.442695, %v4390_v46  ;;  %v9084_v34 = vpack.c.bf16 %v8476_v36, %v8472_v6  ;;  %v4765_v45 = vadd.f32 %v4690_v12, %v4253_v2  ;;  %4824 = vmatprep.subr.bf16.mxu0 %v4795_v0  ;;  %v5746_v22 = vpop.eup %5745 }
 0x494   : > { %v4519_v59 = vmul.f32 1.442695, %v4392_v18  ;;  %v4799_v24 = vpack.c.bf16 %v4758_v42, %v4754_v43  ;;  %v4251_v49 = vmax.f32 %v8516_v26, 0.0  ;;  %v4684_v13 = vmul.f32 0.6931472, %v5736_v16  ;;  %v9089_v16 = vld [vmem:[#allocation13_spill] sm:$0xff] }
 0x495   : > { %4864 = vmatpush1.bf16.msra.mxu1 %v9084_v34  ;;  %v4801_v28 = vpack.c.bf16 %v4760_v58, %v4756_v21  ;;  %v4255_v53 = vmax.f32 %v8555_v37, 0.0  ;;  %v4577_v39 = vadd.f32 1.0, %v5734_v57  ;;  %v9087_v3 = vpack.c.bf16 %v9085_v29, %v9086_v7 }
 0x496   : > { %4865 = vmatprep.subr.bf16.mxu1 %v4797_v14  ;;  %v4802_v6 = vpack.c.bf16 %v4765_v45, %v4761_v47  ;;  %v4694_v36 = vmul.f32 0.6931472, %v5746_v22  ;;  %v4579_v8 = vadd.f32 1.0, %v5740_v5  ;;  %5757 = vpow2.f32 %v4515_v48  ;;  %v5748_v2 = vpop.eup %5747 }
 0x497   : > { %4825 = vmatpush1.bf16.msra.mxu0 %v9087_v3  ;;  %v4250_v62 = vmax.f32 %v8537_v33, 0.0  ;;  %v4688_v15 = vmul.f32 0.6931472, %v5742_v51  ;;  %v4254_v1 = vmax.f32 %v8576_v52, 0.0  ;;  %v9088_v26 = vpack.c.bf16 %v8551_v63, %v8547_v38  ;;  %v5750_v37 = vpop.eup %5749 }
 0x498   : > { %4826 = vmatprep.subr.bf16.mxu0 %v4799_v24  ;;  %v4763_v57 = vadd.f32 %v4686_v40, %v4251_v49  ;;  %v4767_v60 = vadd.f32 %v4694_v36, %v4255_v53  ;;  %v4692_v41 = vmul.f32 0.6931472, %v5748_v2  ;;  %5759 = vpow2.f32 %v4519_v59  ;;  %v5752_v30 = vpop.eup %5751 }
 0x499   : > { %4866 = vmatpush1.bf16.msra.mxu1 %v9088_v26  ;;  %v4252_v42 = vmax.f32 %v9089_v16, 0.0  ;;  %v4256_v58 = vmax.f32 %v8579_v61, 0.0  ;;  %v4696_v35 = vmul.f32 0.6931472, %v5750_v37  ;;  %5761 = vlog2.f32 %v4577_v39  ;;  %v5754_v52 = vpop.eup %5753 }
 0x49a   : > { %4867 = vmatprep.subr.bf16.mxu1 %v4801_v28  ;;  %v9090_v33 = vpack.c.bf16 %v8619_v20, %v8601_v11  ;;  %v4762_v38 = vadd.f32 %v4684_v13, %v4250_v62  ;;  %v4804_v63 = vpack.c.bf16 %v4767_v60, %v4763_v57  ;;  %v4766_v27 = vadd.f32 %v4692_v41, %v4254_v1  ;;  %v5756_v10 = vpop.eup %5755 }
 0x49b   : > { %5763 = vlog2.f32 %v4579_v8  ;;  %v4764_v17 = vadd.f32 %v4688_v15, %v4252_v42  ;;  %v4768_v43 = vadd.f32 %v4696_v35, %v4256_v58  ;;  %v4578_v46 = vadd.f32 1.0, %v5744_v32 }
 0x49c   : > { %4827 = vmatpush1.bf16.msra.mxu0 %v9090_v33  ;;  %v4581_v18 = vadd.f32 1.0, %v5754_v52  ;;  %v9091_v5 = vpack.c.bf16 %v8624_v31, %v8614_v25  ;;  %v4583_v61 = vadd.f32 1.0, %v5756_v10  ;;  %v4803_v44 = vpack.c.bf16 %v4766_v27, %v4762_v38 }
 0x49d   : > { %v4580_v21 = vadd.f32 1.0, %v5752_v30  ;;  %v4805_v11 = vpack.c.bf16 %v4768_v43, %v4764_v17  ;;  %v4257_v34 = vmax.f32 %v8588_v56, 0.0  ;;  %v4261_v32 = vmax.f32 %v8635_v55, 0.0 }
 0x49e   : > { %4868 = vmatpush1.bf16.msra.mxu1 %v9091_v5  ;;  %5765 = vlog2.f32 %v4581_v18  ;;  %4828 = vmatprep.subr.bf16.mxu0 %v4803_v44  ;;  %v4259_v24 = vmax.f32 %v8605_v23, 0.0  ;;  %v4263_v28 = vmax.f32 %v8643_v50, 0.0  ;;  %v4258_v56 = vmax.f32 %v8608_v54, 0.0  ;;  %v4777_v54 = vld [vmem:[%s8757_s6] sm:$0xf] }
 0x49f   : > { %5767 = vlog2.f32 %v4583_v61  ;;  %4869 = vmatprep.subr.bf16.mxu1 %v4805_v11  ;;  %v4262_v55 = vmax.f32 %v8664_v19, 0.0  ;;  %v4260_v23 = vmax.f32 %v8627_v9, 0.0  ;;  %v4264_v1 = vmax.f32 %v8667_v4, 0.0  ;;  %v4814_v9 = vpop.permute.xlu0 %4813 }
 0x4a0   : > { %5769 = vlog2.f32 %v4578_v46  ;;  %4829 = vmatpush1.bf16.msra.mxu0 %v4802_v6  ;;  %v5758_v20 = vpop.eup %5757 }
 0x4a1   : > { %5771 = vlog2.f32 %v4580_v21  ;;  %v4582_v12 = vadd.f32 1.0, %v5758_v20 }
 0x4a2   : > { %4870 = vmatpush1.bf16.msra.mxu1 %v4804_v63  ;;  %v5760_v0 = vpop.eup %5759 }
 0x4a3   : > { %v5762_v14 = vpop.eup %5761  ;;  %5773 = vlog2.f32 %v4582_v12  ;;  %v4584_v51 = vadd.f32 1.0, %v5760_v0 }
 0x4a4   : > { %v4698_v31 = vmul.f32 0.6931472, %v5762_v14 }
 0x4a5   : > { %v5764_v25 = vpop.eup %5763  ;;  %5775 = vlog2.f32 %v4584_v51 }
 0x4a6   : > { %v4702_v40 = vmul.f32 0.6931472, %v5764_v25  ;;  %v4769_v49 = vadd.f32 %v4698_v31, %v4257_v34  ;;  %v4898_v25 = vlaneseq }
 0x4a8   : > { %v5766_v47 = vpop.eup %5765  ;;  %v4771_v39 = vadd.f32 %v4702_v40, %v4259_v24 }
 0x4a9   : > { %v5768_v48 = vpop.eup %5767  ;;  %v4706_v45 = vmul.f32 0.6931472, %v5766_v47  ;;  %v4899_v47 = vshrl.u32 %v4898_v25, 7 }
 0x4aa   : > { %v5770_v59 = vpop.eup %5769  ;;  %v4710_v22 = vmul.f32 0.6931472, %v5768_v48 }
 0x4ab   : > { %v4773_v13 = vadd.f32 %v4706_v45, %v4261_v32  ;;  %v5772_v53 = vpop.eup %5771  ;;  %v4700_v7 = vmul.f32 0.6931472, %v5770_v59  ;;  %vm4932_vm10 = vcmp.ge.s32.totalorder %v4899_v47, 1  ;;  %vm4933_vm13 = vcmp.lt.s32.totalorder %v4899_v47, 4 }
 0x4ac   : > { %v4775_v29 = vadd.f32 %v4710_v22, %v4263_v28  ;;  %v4704_v8 = vmul.f32 0.6931472, %v5772_v53  ;;  %vm8726_vm6 = vmand %vm4932_vm10, %vm4933_vm13 }
 0x4ad   : > { %v4806_v3 = vpack.c.bf16 %v4773_v13, %v4769_v49  ;;  %v5774_v6 = vpop.eup %5773  ;;  %v4770_v50 = vadd.f32 %v4700_v7, %v4258_v56 }
 0x4ae   : > { %v4808_v36 = vpack.c.bf16 %v4775_v29, %v4771_v39  ;;  %v4708_v2 = vmul.f32 0.6931472, %v5774_v6  ;;  %v4772_v37 = vadd.f32 %v4704_v8, %v4260_v23 }
 0x4af   : > { %v5776_v62 = vpop.eup %5775 }
 0x4b0   : > { %v4774_v15 = vadd.f32 %v4708_v2, %v4262_v55  ;;  %v4712_v26 = vmul.f32 0.6931472, %v5776_v62 }
 0x4b2   : > { %v4776_v57 = vadd.f32 %v4712_v26, %v4264_v1  ;;  %v4807_v60 = vpack.c.bf16 %v4774_v15, %v4770_v50 }
 0x4b4   : > { %4830 = vmatprep.subr.bf16.mxu0 %v4807_v60  ;;  %v4809_v41 = vpack.c.bf16 %v4776_v57, %v4772_v37 }
 0x4b5   : > { %4831 = vmatpush1.bf16.msra.mxu0 %v4806_v3 }
 0x4b6   : > { %4871 = vmatprep.subr.bf16.mxu1 %v4809_v41 }
 0x4b7   : > { %4872 = vmatpush1.bf16.msra.mxu1 %v4808_v36 }
 0x4b8   : > { %4849 = vmatmul.mubr.bf16.vlgmr.msra.gmra.mrb[64].mxu0 %v4777_v54 }
 0x4ba   : > { %4890 = vmatmul.mubr.bf16.vlgmr.msra.gmra.mrb[64].mxu1 %v4777_v54 }
 0x58b   : > { %v4850_v19 = vpop.f32.mrb[64].mxu0 }
 0x58c   : > { %v4851_v30 = vadd.f32 %v4850_v19, %v4814_v9  ;;  %v4852_v16 = vpop.f32.mrb[65].mxu0 }
 0x58d   : > { %v4891_v4 = vpop.f32.mrb[64].mxu1  ;;  %v4853_v42 = vadd.f32 %v4852_v16, %v4814_v9  ;;  %v4854_v58 = vpop.f32.mrb[66].mxu0 }
 0x58e   : > { %v4900_v35 = vsub.f32 0.0, %v4851_v30  ;;  %v4892_v33 = vadd.f32 %v4891_v4, %v4814_v9  ;;  %v4893_v52 = vpop.f32.mrb[65].mxu1  ;;  %v4855_v38 = vpop.f32.mrb[67].mxu0 }
 0x58f   : > { %v4901_v63 = vsub.f32 0.0, %v4853_v42  ;;  %v4894_v27 = vadd.f32 %v4893_v52, %v4814_v9  ;;  %v4895_v10 = vpop.f32.mrb[66].mxu1 }
 0x590   : > { %v4904_v17 = vmul.f32 1.442695, %v4900_v35  ;;  %v4902_v43 = vsub.f32 0.0, %v4892_v33  ;;  %v4896_v46 = vpop.f32.mrb[67].mxu1 }
 0x591   : > { %v4906_v18 = vmul.f32 1.442695, %v4901_v63  ;;  %v4903_v5 = vsub.f32 0.0, %v4894_v27 }
 0x592   : > { %5777 = vpow2.f32 %v4904_v17  ;;  %v4908_v61 = vmul.f32 1.442695, %v4902_v43 }
 0x593   : > { %5779 = vpow2.f32 %v4906_v18  ;;  %v4910_v44 = vmul.f32 1.442695, %v4903_v5 }
 0x594   : > { %5781 = vpow2.f32 %v4908_v61 }
 0x595   : > { %5783 = vpow2.f32 %v4910_v44 }
 0x59c   : > { %v5778_v21 = vpop.eup %5777 }
 0x59d   : > { %v5780_v11 = vpop.eup %5779  ;;  %v4912_v20 = vadd.f32 1.0, %v5778_v21 }
 0x59e   : > { %v5782_v12 = vpop.eup %5781  ;;  %v4913_v0 = vadd.f32 1.0, %v5780_v11 }
 0x59f   : > { %v5784_v14 = vpop.eup %5783  ;;  %5785 = vrcp.f32 %v4912_v20  ;;  %v4914_v51 = vadd.f32 1.0, %v5782_v12 }
 0x5a0   : > { %5787 = vrcp.f32 %v4913_v0  ;;  %v4915_v31 = vadd.f32 1.0, %v5784_v14 }
 0x5a1   : > { %5789 = vrcp.f32 %v4914_v51 }
 0x5a2   : > { %5791 = vrcp.f32 %v4915_v31 }
 0x5a9   : > { %v5786_v40 = vpop.eup %5785 }
 0x5aa   : > { %v5788_v48 = vpop.eup %5787  ;;  %v4924_v34 = vmul.f32 1.002, %v5786_v40 }
 0x5ab   : > { %v5790_v32 = vpop.eup %5789  ;;  %v4925_v59 = vmul.f32 1.002, %v5788_v48 }
 0x5ac   : > { %v5792_v24 = vpop.eup %5791  ;;  %v5124_v28 = vadd.f32 -0.001, %v4924_v34  ;;  %v4926_v22 = vmul.f32 1.002, %v5790_v32 }
 0x5ad   : > { %v5125_v49 = vadd.f32 -0.001, %v4925_v59  ;;  %v4927_v13 = vmul.f32 1.002, %v5792_v24 }
 0x5ae   : > { %v4935_v53 = vsel %vm8726_vm6, %v5124_v28, %v4851_v30  ;;  %v5126_v39 = vadd.f32 -0.001, %v4926_v22 }
 0x5af   : > { %4939 = vst [vmem:[%s394_s22] sm:$0xff] %v4935_v53  ;;  %v4936_v29 = vsel %vm8726_vm6, %v5125_v49, %v4853_v42  ;;  %v5127_v7 = vadd.f32 -0.001, %v4927_v13 }
 0x5b0   : > { %v4937_v3 = vsel %vm8726_vm6, %v5126_v39, %v4892_v33  ;;  %4940 = vst [vmem:[%s394_s22 + $0x8] sm:$0xff] %v4936_v29 }
 0x5b1   : > { %4941 = vst [vmem:[%s394_s22 + $0x10] sm:$0xff] %v4937_v3  ;;  %v4938_v6 = vsel %vm8726_vm6, %v5127_v7, %v4894_v27 }
 0x5b2   : > { %4942 = vst [vmem:[%s394_s22 + $0x18] sm:$0xff] %v4938_v6 }
 0x5b3 PF: > { %p15_p9 = scmp.ge.s32.totalorder %s5891_s9, 6   ;;  %s9094_s27 = smov %s5815_s28 }
 0x5b4   : > { %s9095_s28 = smov %s5900_s12  ;;  %s9096_s29 = smov %s5891_s9 }
 0x5b5   :  { %17 = sbr.rel (!%p15_p9) target bundleno = 2 (0x2), region = 113 }

</bundles_post_ra>
